<compile_context>
chip_gen: v5e
topology: v5e:2x2
jax: 0.10.0
libtpu: 0.0.40
codegen_flags: <defaults>
</compile_context>

<pallas_src>
import functools

import numpy as np
import jax
import jax.numpy as jnp
from jax import lax
from jax.experimental import pallas as pl
from jax.experimental.pallas import tpu as pltpu

PREFAC = 138.93544539709032  # Coulomb prefactor (kJ/mol * nm / e^2), same as torch module
_R2_MIN = 1e-4               # clamp: keeps rsqrt finite for self / coincident-padding
                             # pairs and keeps sr^12 << f32 overflow (no 0*inf NaN).
                             # Genuine pairs closer than 0.01 nm would be silently
                             # capped (physically impossible for nonbonded pairs).


def _nonbonded_kernel(box_ref, pi_ref, pj_ref, out_ref, *, cutoff, tile, n_tiles):
    # box_ref : SMEM (6,)   f32  [bx, by, bz, 1/bx, 1/by, 1/bz]
    # pi_ref  : VMEM (tile, 8)   "i" particle attributes (sublane axis)
    # pj_ref  : VMEM (8, tile)   "j" particle attributes (lane axis); the BlockSpec
    #           index map selects j_tile = (i_tile + k) % n_tiles
    # out_ref : VMEM (1, 1, tile) per-i-tile lane-dense partial-energy accumulator
    i_t = pl.program_id(0)
    k = pl.program_id(1)
    n_half = n_tiles // 2
    cut2 = cutoff * cutoff

    def tile_energy(triangular):
        bx = box_ref[0]
        by = box_ref[1]
        bz = box_ref[2]
        ibx = box_ref[3]
        iby = box_ref[4]
        ibz = box_ref[5]

        pc = pi_ref[...]                                   # (tile, 8)
        xi = pc[:, 0:1]; yi = pc[:, 1:2]; zi = pc[:, 2:3]
        qi = pc[:, 3:4]; hsi = pc[:, 4:5]; sei = pc[:, 5:6]; mi = pc[:, 6:7]

        pr = pj_ref[...]                                   # (8, tile)
        xj = pr[0:1, :]; yj = pr[1:2, :]; zj = pr[2:3, :]
        qj = pr[3:4, :]; hsj = pr[4:5, :]; sej = pr[5:6, :]; mj = pr[6:7, :]

        # Minimum-image displacement (orthorhombic box, reciprocals precomputed so
        # there is no per-pair divide).
        # TODO(synk): triclinic boxes (full 3x3) are not handled; diagonal box assumed.
        dx = xi - xj
        dx = dx - bx * jnp.round(dx * ibx)
        dy = yi - yj
        dy = dy - by * jnp.round(dy * iby)
        dz = zi - zj
        dz = dz - bz * jnp.round(dz * ibz)
        r2 = dx * dx + dy * dy + dz * dz

        # Same-molecule exclusion (i//3 != j//3, mol_id is exact in f32 up to 2^24
        # molecules) and hard cutoff.  Padding atoms carry mol_id = -1 (mutually
        # excluded) and q = sqrt_eps = 0 (exactly zero energy against real atoms),
        # so no explicit validity mask is needed.
        mask = (mi != mj) & (r2 < cut2)
        if triangular:
            # Diagonal tile (j_tile == i_tile): count each unordered pair once.
            li = lax.broadcasted_iota(jnp.int32, (tile, 1), 0)
            lj = lax.broadcasted_iota(jnp.int32, (1, tile), 1)
            mask = mask & (li < lj)

        inv_r = lax.rsqrt(jnp.maximum(r2, _R2_MIN))        # EUP
        inv_r2 = inv_r * inv_r
        # TODO(synk): inv_r2 via pl.reciprocal(r2, approx=True) would move this mul to
        #             the idle EUP slot, but approx error is amplified ~12x by r^-12
        #             and may break the 2e-3 energy tolerance, so keep the exact form.

        coul = (qi * qj) * inv_r          # Coulomb prefactor folded into q (wrapper)
        sig = hsi + hsj                   # 0.5*(sigma_i + sigma_j)
        eps4 = sei * sej                  # 4*sqrt(eps_i*eps_j)
        sr2 = (sig * sig) * inv_r2
        sr6 = sr2 * sr2 * sr2
        lj_e = eps4 * (sr6 * sr6 - sr6)

        e = jnp.where(mask, coul + lj_e, 0.0)
        # Sublane-only reduction per tile; the lane reduction over the partials
        # happens once in the wrapper.
        return jnp.sum(e, axis=0, keepdims=True)           # (1, tile)

    # k == 0 is always the diagonal tile and the first visit of this i row: it
    # (re)initializes the accumulator, so no separate zeroing pass is needed.
    @pl.when(k == 0)
    def _diag():
        out_ref[0] = tile_energy(triangular=True)

    if n_tiles > 1:
        # Cyclic half-shell: j_tile = (i_tile + k) % n_tiles for k = 1..n_half covers
        # every unordered off-diagonal tile pair exactly once.  When n_tiles is even
        # the k == n_half column is shared between row pairs, so only rows
        # i < n_half take it; when n_tiles is odd every row is exactly balanced.
        if n_tiles % 2 == 0:
            off_active = jnp.logical_and(
                k > 0, jnp.logical_or(k != n_half, i_t < n_half))
        else:
            off_active = k > 0

        @pl.when(off_active)
        def _offdiag():
            # Specialized off-diagonal path: no iotas, no triangular compare.
            out_ref[0] = out_ref[0] + tile_energy(triangular=False)


def nonbonded_energy(coords, box, charges, sigma, epsilon, cutoff, tile=512):
    """Total nonbonded (Coulomb + LJ) energy. coords: (N,3), box: (3,3) diagonal."""
    n = coords.shape[0]
    n_pad = ((n + tile - 1) // tile) * tile
    n_tiles = n_pad // tile
    n_half = n_tiles // 2

    mol_id = (jnp.arange(n) // 3).astype(jnp.float32)
    q = charges.astype(jnp.float32) * np.float32(np.sqrt(PREFAC))   # fold prefactor
    hs = 0.5 * sigma.astype(jnp.float32)                             # 0.5*sigma
    se = 2.0 * jnp.sqrt(epsilon.astype(jnp.float32))                 # 2*sqrt(eps)

    def pad(v, fill=0.0):
        return jnp.pad(v.astype(jnp.float32), (0, n_pad - n), constant_values=fill)

    # rows = [x, y, z, sqrt(prefac)*q, 0.5*sigma, 2*sqrt(eps), mol_id, unused]
    prow = jnp.stack(
        [
            pad(coords[:, 0]), pad(coords[:, 1]), pad(coords[:, 2]),
            pad(q), pad(hs), pad(se),
            pad(mol_id, -1.0),                  # padding atoms share mol_id = -1
            jnp.zeros((n_pad,), jnp.float32),
        ],
        axis=0,
    )  # (8, n_pad)  -- "j" particles on the lane axis
    pcol = prow.T  # (n_pad, 8) -- "i" particles on the sublane axis

    bl = jnp.diagonal(box).astype(jnp.float32)
    box_params = jnp.concatenate([bl, 1.0 / bl])  # (6,) box lengths + reciprocals

    kernel = functools.partial(
        _nonbonded_kernel, cutoff=float(cutoff), tile=tile, n_tiles=n_tiles)
    partials = pl.pallas_call(
        kernel,
        grid=(n_tiles, n_half + 1),
        in_specs=[
            pl.BlockSpec(memory_space=pltpu.MemorySpace.SMEM),            # box params
            pl.BlockSpec((tile, 8), lambda i, k: (i, 0)),                 # i-side strip
            pl.BlockSpec((8, tile), lambda i, k: (0, (i + k) % n_tiles)), # j-side strip
        ],
        out_specs=pl.BlockSpec((1, 1, tile), lambda i, k: (i, 0, 0)),
        out_shape=jax.ShapeDtypeStruct((n_tiles, 1, tile), jnp.float32),
        compiler_params=pltpu.CompilerParams(
            dimension_semantics=("parallel", "arbitrary"),
            vmem_limit_bytes=48 * 1024 * 1024),   # > v5e 16 MiB default, < v7x 64 MiB
    )(box_params, pcol, prow)
    return jnp.sum(partials)


def reference_energy(coords, box, charges, sigma, epsilon, cutoff):
    """Pure-JAX all-pairs reference for validation."""
    n = coords.shape[0]
    bl = jnp.diagonal(box)
    d = coords[:, None, :] - coords[None, :, :]
    d = d - bl[None, None, :] * jnp.round(d / bl[None, None, :])
    r2 = jnp.sum(d * d, axis=-1)
    mol = jnp.arange(n) // 3
    ii, jj = jnp.meshgrid(jnp.arange(n), jnp.arange(n), indexing="ij")
    mask = (ii < jj) & (mol[:, None] != mol[None, :]) & (r2 < cutoff * cutoff)
    r2s = jnp.where(mask, r2, 1.0)
    inv_r = 1.0 / jnp.sqrt(r2s)
    coul = PREFAC * charges[:, None] * charges[None, :] * inv_r
    sig = 0.5 * (sigma[:, None] + sigma[None, :])
    eps = jnp.sqrt(epsilon[:, None] * epsilon[None, :])
    sr6 = (sig * sig * inv_r * inv_r) ** 3
    lj = 4.0 * eps * (sr6 * sr6 - sr6)
    return jnp.sum(jnp.where(mask, coul + lj, 0.0))


if __name__ == "__main__":
    # 100 water-like molecules (3 atoms each) on a jittered lattice in a 3.0 nm cubic
    # box, 0.9 nm cutoff (300 atoms).  Run the kernel at three tile sizes to exercise
    # all static code paths: tile=128 -> 3 tiles (odd, wrap-around off-diagonal),
    # tile=256 -> 2 tiles (even, shared-column skip), tile=512 -> 1 tile (diag only).
    nx, ny, nz = 5, 5, 4
    n_mol = nx * ny * nz
    box_len = 3.0
    cutoff = 0.9

    gx = (jnp.arange(nx, dtype=jnp.float32) + 0.5) * (box_len / nx)
    gy = (jnp.arange(ny, dtype=jnp.float32) + 0.5) * (box_len / ny)
    gz = (jnp.arange(nz, dtype=jnp.float32) + 0.5) * (box_len / nz)
    cx, cy, cz = jnp.meshgrid(gx, gy, gz, indexing="ij")
    centers = jnp.stack([cx.ravel(), cy.ravel(), cz.ravel()], axis=-1)  # (n_mol, 3)

    key = jax.random.PRNGKey(0)
    centers = centers + jax.random.uniform(key, centers.shape, jnp.float32, -0.05, 0.05)

    # Rigid water-ish geometry: [O, H, H] offsets from the molecule center.
    offsets = jnp.array(
        [[0.0, 0.0, 0.0], [0.095, 0.0, 0.0], [-0.024, 0.092, 0.0]], jnp.float32)
    coords = (centers[:, None, :] + offsets[None, :, :]).reshape(-1, 3)

    box = jnp.diag(jnp.array([box_len, box_len, box_len], jnp.float32))

    # Deterministic per-particle parameters (TIP3P-ish pattern: [O, H, H] repeated).
    charges = jnp.tile(jnp.array([-0.834, 0.417, 0.417], jnp.float32), n_mol)
    sigma = jnp.tile(jnp.array([0.3150752, 0.10, 0.10], jnp.float32), n_mol)
    epsilon = jnp.tile(jnp.array([0.635968, 0.05, 0.05], jnp.float32), n_mol)

    e_ref = reference_energy(coords, box, charges, sigma, epsilon, cutoff)
    e_ref = np.asarray(jax.block_until_ready(e_ref))

    for tile in (128, 256, 512):
        e_kernel = nonbonded_energy(coords, box, charges, sigma, epsilon, cutoff,
                                    tile=tile)
        jax.block_until_ready(e_kernel)
        np.testing.assert_allclose(np.asarray(e_kernel), e_ref, rtol=2e-3, atol=1e-2)

    print("KERNEL_OK")
</pallas_src>

<mosaic_0001>
module attributes {stable_mosaic.version = 11 : i64} {
  func.func @_nonbonded_kernel(%arg0: i32, %arg1: i32, %arg2: memref<6xf32, #tpu.memory_space<smem>>, %arg3: memref<128x8xf32, #tpu.memory_space<vmem>>, %arg4: memref<8x128xf32, #tpu.memory_space<vmem>>, %arg5: memref<1x1x128xf32, #tpu.memory_space<vmem>>) attributes {dimension_semantics = [#tpu.dimension_semantics<parallel>, #tpu.dimension_semantics<arbitrary>], iteration_bounds = array<i64: 3, 2>, scalar_prefetch = 0 : i64, scratch_operands = 0 : i64, tpu.core_type = #tpu.core_type<tc>, window_params = [{transform_indices = @transform_0, window_bounds = array<i64: 6>}, {transform_indices = @transform_1, window_bounds = array<i64: 128, 8>}, {transform_indices = @transform_2, window_bounds = array<i64: 8, 128>}, {transform_indices = @transform_3, window_bounds = array<i64: 1, 1, 128>}]} {
    %c0_i32 = arith.constant 0 : i32
    %0 = arith.cmpi eq, %arg1, %c0_i32 : i32
    %1 = arith.extui %0 : i1 to i32
    %c0_i32_0 = arith.constant 0 : i32
    %2 = arith.cmpi ne, %1, %c0_i32_0 : i32
    scf.if %2 {
      %c0 = arith.constant 0 : index
      %6 = memref.load %arg2[%c0] : memref<6xf32, #tpu.memory_space<smem>>
      %c1 = arith.constant 1 : index
      %7 = memref.load %arg2[%c1] : memref<6xf32, #tpu.memory_space<smem>>
      %c2 = arith.constant 2 : index
      %8 = memref.load %arg2[%c2] : memref<6xf32, #tpu.memory_space<smem>>
      %c3 = arith.constant 3 : index
      %9 = memref.load %arg2[%c3] : memref<6xf32, #tpu.memory_space<smem>>
      %c4 = arith.constant 4 : index
      %10 = memref.load %arg2[%c4] : memref<6xf32, #tpu.memory_space<smem>>
      %c5 = arith.constant 5 : index
      %11 = memref.load %arg2[%c5] : memref<6xf32, #tpu.memory_space<smem>>
      %c0_3 = arith.constant 0 : index
      %c0_4 = arith.constant 0 : index
      %12 = vector.load %arg3[%c0_3, %c0_4] : memref<128x8xf32, #tpu.memory_space<vmem>>, vector<128x8xf32>
      %13 = vector.extract_strided_slice %12 {offsets = [0, 0], sizes = [128, 1], strides = [1, 1]} : vector<128x8xf32> to vector<128x1xf32>
      %14 = vector.extract_strided_slice %12 {offsets = [0, 1], sizes = [128, 1], strides = [1, 1]} : vector<128x8xf32> to vector<128x1xf32>
      %15 = vector.extract_strided_slice %12 {offsets = [0, 2], sizes = [128, 1], strides = [1, 1]} : vector<128x8xf32> to vector<128x1xf32>
      %16 = vector.extract_strided_slice %12 {offsets = [0, 3], sizes = [128, 1], strides = [1, 1]} : vector<128x8xf32> to vector<128x1xf32>
      %17 = vector.extract_strided_slice %12 {offsets = [0, 4], sizes = [128, 1], strides = [1, 1]} : vector<128x8xf32> to vector<128x1xf32>
      %18 = vector.extract_strided_slice %12 {offsets = [0, 5], sizes = [128, 1], strides = [1, 1]} : vector<128x8xf32> to vector<128x1xf32>
      %19 = vector.extract_strided_slice %12 {offsets = [0, 6], sizes = [128, 1], strides = [1, 1]} : vector<128x8xf32> to vector<128x1xf32>
      %c0_5 = arith.constant 0 : index
      %c0_6 = arith.constant 0 : index
      %20 = vector.load %arg4[%c0_5, %c0_6] : memref<8x128xf32, #tpu.memory_space<vmem>>, vector<8x128xf32>
      %21 = vector.extract_strided_slice %20 {offsets = [0, 0], sizes = [1, 128], strides = [1, 1]} : vector<8x128xf32> to vector<1x128xf32>
      %22 = vector.extract_strided_slice %20 {offsets = [1, 0], sizes = [1, 128], strides = [1, 1]} : vector<8x128xf32> to vector<1x128xf32>
      %23 = vector.extract_strided_slice %20 {offsets = [2, 0], sizes = [1, 128], strides = [1, 1]} : vector<8x128xf32> to vector<1x128xf32>
      %24 = vector.extract_strided_slice %20 {offsets = [3, 0], sizes = [1, 128], strides = [1, 1]} : vector<8x128xf32> to vector<1x128xf32>
      %25 = vector.extract_strided_slice %20 {offsets = [4, 0], sizes = [1, 128], strides = [1, 1]} : vector<8x128xf32> to vector<1x128xf32>
      %26 = vector.extract_strided_slice %20 {offsets = [5, 0], sizes = [1, 128], strides = [1, 1]} : vector<8x128xf32> to vector<1x128xf32>
      %27 = vector.extract_strided_slice %20 {offsets = [6, 0], sizes = [1, 128], strides = [1, 1]} : vector<8x128xf32> to vector<1x128xf32>
      %28 = vector.broadcast %13 : vector<128x1xf32> to vector<128x128xf32>
      %29 = vector.broadcast %21 : vector<1x128xf32> to vector<128x128xf32>
      %30 = arith.subf %28, %29 : vector<128x128xf32>
      %31 = vector.broadcast %9 : f32 to vector<128x128xf32>
      %32 = arith.mulf %30, %31 : vector<128x128xf32>
      %33 = math.roundeven %32 : vector<128x128xf32>
      %34 = vector.broadcast %6 : f32 to vector<128x128xf32>
      %35 = arith.mulf %34, %33 : vector<128x128xf32>
      %36 = arith.subf %30, %35 : vector<128x128xf32>
      %37 = vector.broadcast %14 : vector<128x1xf32> to vector<128x128xf32>
      %38 = vector.broadcast %22 : vector<1x128xf32> to vector<128x128xf32>
      %39 = arith.subf %37, %38 : vector<128x128xf32>
      %40 = vector.broadcast %10 : f32 to vector<128x128xf32>
      %41 = arith.mulf %39, %40 : vector<128x128xf32>
      %42 = math.roundeven %41 : vector<128x128xf32>
      %43 = vector.broadcast %7 : f32 to vector<128x128xf32>
      %44 = arith.mulf %43, %42 : vector<128x128xf32>
      %45 = arith.subf %39, %44 : vector<128x128xf32>
      %46 = vector.broadcast %15 : vector<128x1xf32> to vector<128x128xf32>
      %47 = vector.broadcast %23 : vector<1x128xf32> to vector<128x128xf32>
      %48 = arith.subf %46, %47 : vector<128x128xf32>
      %49 = vector.broadcast %11 : f32 to vector<128x128xf32>
      %50 = arith.mulf %48, %49 : vector<128x128xf32>
      %51 = math.roundeven %50 : vector<128x128xf32>
      %52 = vector.broadcast %8 : f32 to vector<128x128xf32>
      %53 = arith.mulf %52, %51 : vector<128x128xf32>
      %54 = arith.subf %48, %53 : vector<128x128xf32>
      %55 = arith.mulf %36, %36 : vector<128x128xf32>
      %56 = arith.mulf %45, %45 : vector<128x128xf32>
      %57 = arith.addf %55, %56 : vector<128x128xf32>
      %58 = arith.mulf %54, %54 : vector<128x128xf32>
      %59 = arith.addf %57, %58 : vector<128x128xf32>
      %60 = vector.broadcast %19 : vector<128x1xf32> to vector<128x128xf32>
      %61 = vector.broadcast %27 : vector<1x128xf32> to vector<128x128xf32>
      %62 = arith.cmpf one, %60, %61 : vector<128x128xf32>
      %cst = arith.constant 8.100000e-01 : f32
      %63 = vector.broadcast %cst : f32 to vector<128x128xf32>
      %64 = arith.cmpf olt, %59, %63 : vector<128x128xf32>
      %65 = arith.andi %62, %64 : vector<128x128xi1>
      %66 = tpu.iota {dimensions = array<i32: 0>} : vector<128x1xi32>
      %67 = tpu.iota {dimensions = array<i32: 1>} : vector<1x128xi32>
      %68 = vector.broadcast %66 : vector<128x1xi32> to vector<128x128xi32>
      %69 = vector.broadcast %67 : vector<1x128xi32> to vector<128x128xi32>
      %70 = arith.cmpi slt, %68, %69 : vector<128x128xi32>
      %71 = arith.andi %65, %70 : vector<128x128xi1>
      %cst_7 = arith.constant 9.99999974E-5 : f32
      %72 = vector.broadcast %cst_7 : f32 to vector<128x128xf32>
      %73 = arith.maximumf %59, %72 : vector<128x128xf32>
      %74 = math.rsqrt %73 : vector<128x128xf32>
      %75 = arith.mulf %74, %74 : vector<128x128xf32>
      %76 = vector.broadcast %16 : vector<128x1xf32> to vector<128x128xf32>
      %77 = vector.broadcast %24 : vector<1x128xf32> to vector<128x128xf32>
      %78 = arith.mulf %76, %77 : vector<128x128xf32>
      %79 = arith.mulf %78, %74 : vector<128x128xf32>
      %80 = vector.broadcast %17 : vector<128x1xf32> to vector<128x128xf32>
      %81 = vector.broadcast %25 : vector<1x128xf32> to vector<128x128xf32>
      %82 = arith.addf %80, %81 : vector<128x128xf32>
      %83 = vector.broadcast %18 : vector<128x1xf32> to vector<128x128xf32>
      %84 = vector.broadcast %26 : vector<1x128xf32> to vector<128x128xf32>
      %85 = arith.mulf %83, %84 : vector<128x128xf32>
      %86 = arith.mulf %82, %82 : vector<128x128xf32>
      %87 = arith.mulf %86, %75 : vector<128x128xf32>
      %88 = arith.mulf %87, %87 : vector<128x128xf32>
      %89 = arith.mulf %88, %87 : vector<128x128xf32>
      %90 = arith.mulf %89, %89 : vector<128x128xf32>
      %91 = arith.subf %90, %89 : vector<128x128xf32>
      %92 = arith.mulf %85, %91 : vector<128x128xf32>
      %93 = arith.addf %79, %92 : vector<128x128xf32>
      %cst_8 = arith.constant 0.000000e+00 : f32
      %94 = vector.broadcast %cst_8 : f32 to vector<128x128xf32>
      %95 = arith.select %71, %93, %94 : vector<128x128xi1>, vector<128x128xf32>
      %cst_9 = arith.constant dense<0.000000e+00> : vector<128xf32>
      %96 = vector.multi_reduction <add>, %95, %cst_9 [0] : vector<128x128xf32> to vector<128xf32>
      %97 = vector.shape_cast %96 : vector<128xf32> to vector<1x128xf32>
      %c0_10 = arith.constant 0 : index
      %c0_11 = arith.constant 0 : index
      %c0_12 = arith.constant 0 : index
      %98 = vector.load %arg5[%c0_10, %c0_11, %c0_12] : memref<1x1x128xf32, #tpu.memory_space<vmem>>, vector<1x1x128xf32>
      %99 = vector.shape_cast %98 : vector<1x1x128xf32> to vector<1x128xf32>
      %100 = vector.shape_cast %97 : vector<1x128xf32> to vector<1x1x128xf32>
      tpu.vector_store %arg5[%c0_10, %c0_11, %c0_12], %100 {strides = array<i32>} : memref<1x1x128xf32, #tpu.memory_space<vmem>>, vector<1x1x128xf32>,
    } else {
    }
    %c0_i32_1 = arith.constant 0 : i32
    %3 = arith.cmpi sgt, %arg1, %c0_i32_1 : i32
    %4 = arith.extui %3 : i1 to i32
    %c0_i32_2 = arith.constant 0 : i32
    %5 = arith.cmpi ne, %4, %c0_i32_2 : i32
    scf.if %5 {
      %c0 = arith.constant 0 : index
      %c0_3 = arith.constant 0 : index
      %c0_4 = arith.constant 0 : index
      %6 = vector.load %arg5[%c0, %c0_3, %c0_4] : memref<1x1x128xf32, #tpu.memory_space<vmem>>, vector<1x1x128xf32>
      %7 = vector.shape_cast %6 : vector<1x1x128xf32> to vector<1x128xf32>
      %c0_5 = arith.constant 0 : index
      %8 = memref.load %arg2[%c0_5] : memref<6xf32, #tpu.memory_space<smem>>
      %c1 = arith.constant 1 : index
      %9 = memref.load %arg2[%c1] : memref<6xf32, #tpu.memory_space<smem>>
      %c2 = arith.constant 2 : index
      %10 = memref.load %arg2[%c2] : memref<6xf32, #tpu.memory_space<smem>>
      %c3 = arith.constant 3 : index
      %11 = memref.load %arg2[%c3] : memref<6xf32, #tpu.memory_space<smem>>
      %c4 = arith.constant 4 : index
      %12 = memref.load %arg2[%c4] : memref<6xf32, #tpu.memory_space<smem>>
      %c5 = arith.constant 5 : index
      %13 = memref.load %arg2[%c5] : memref<6xf32, #tpu.memory_space<smem>>
      %c0_6 = arith.constant 0 : index
      %c0_7 = arith.constant 0 : index
      %14 = vector.load %arg3[%c0_6, %c0_7] : memref<128x8xf32, #tpu.memory_space<vmem>>, vector<128x8xf32>
      %15 = vector.extract_strided_slice %14 {offsets = [0, 0], sizes = [128, 1], strides = [1, 1]} : vector<128x8xf32> to vector<128x1xf32>
      %16 = vector.extract_strided_slice %14 {offsets = [0, 1], sizes = [128, 1], strides = [1, 1]} : vector<128x8xf32> to vector<128x1xf32>
      %17 = vector.extract_strided_slice %14 {offsets = [0, 2], sizes = [128, 1], strides = [1, 1]} : vector<128x8xf32> to vector<128x1xf32>
      %18 = vector.extract_strided_slice %14 {offsets = [0, 3], sizes = [128, 1], strides = [1, 1]} : vector<128x8xf32> to vector<128x1xf32>
      %19 = vector.extract_strided_slice %14 {offsets = [0, 4], sizes = [128, 1], strides = [1, 1]} : vector<128x8xf32> to vector<128x1xf32>
      %20 = vector.extract_strided_slice %14 {offsets = [0, 5], sizes = [128, 1], strides = [1, 1]} : vector<128x8xf32> to vector<128x1xf32>
      %21 = vector.extract_strided_slice %14 {offsets = [0, 6], sizes = [128, 1], strides = [1, 1]} : vector<128x8xf32> to vector<128x1xf32>
      %c0_8 = arith.constant 0 : index
      %c0_9 = arith.constant 0 : index
      %22 = vector.load %arg4[%c0_8, %c0_9] : memref<8x128xf32, #tpu.memory_space<vmem>>, vector<8x128xf32>
      %23 = vector.extract_strided_slice %22 {offsets = [0, 0], sizes = [1, 128], strides = [1, 1]} : vector<8x128xf32> to vector<1x128xf32>
      %24 = vector.extract_strided_slice %22 {offsets = [1, 0], sizes = [1, 128], strides = [1, 1]} : vector<8x128xf32> to vector<1x128xf32>
      %25 = vector.extract_strided_slice %22 {offsets = [2, 0], sizes = [1, 128], strides = [1, 1]} : vector<8x128xf32> to vector<1x128xf32>
      %26 = vector.extract_strided_slice %22 {offsets = [3, 0], sizes = [1, 128], strides = [1, 1]} : vector<8x128xf32> to vector<1x128xf32>
      %27 = vector.extract_strided_slice %22 {offsets = [4, 0], sizes = [1, 128], strides = [1, 1]} : vector<8x128xf32> to vector<1x128xf32>
      %28 = vector.extract_strided_slice %22 {offsets = [5, 0], sizes = [1, 128], strides = [1, 1]} : vector<8x128xf32> to vector<1x128xf32>
      %29 = vector.extract_strided_slice %22 {offsets = [6, 0], sizes = [1, 128], strides = [1, 1]} : vector<8x128xf32> to vector<1x128xf32>
      %30 = vector.broadcast %15 : vector<128x1xf32> to vector<128x128xf32>
      %31 = vector.broadcast %23 : vector<1x128xf32> to vector<128x128xf32>
      %32 = arith.subf %30, %31 : vector<128x128xf32>
      %33 = vector.broadcast %11 : f32 to vector<128x128xf32>
      %34 = arith.mulf %32, %33 : vector<128x128xf32>
      %35 = math.roundeven %34 : vector<128x128xf32>
      %36 = vector.broadcast %8 : f32 to vector<128x128xf32>
      %37 = arith.mulf %36, %35 : vector<128x128xf32>
      %38 = arith.subf %32, %37 : vector<128x128xf32>
      %39 = vector.broadcast %16 : vector<128x1xf32> to vector<128x128xf32>
      %40 = vector.broadcast %24 : vector<1x128xf32> to vector<128x128xf32>
      %41 = arith.subf %39, %40 : vector<128x128xf32>
      %42 = vector.broadcast %12 : f32 to vector<128x128xf32>
      %43 = arith.mulf %41, %42 : vector<128x128xf32>
      %44 = math.roundeven %43 : vector<128x128xf32>
      %45 = vector.broadcast %9 : f32 to vector<128x128xf32>
      %46 = arith.mulf %45, %44 : vector<128x128xf32>
      %47 = arith.subf %41, %46 : vector<128x128xf32>
      %48 = vector.broadcast %17 : vector<128x1xf32> to vector<128x128xf32>
      %49 = vector.broadcast %25 : vector<1x128xf32> to vector<128x128xf32>
      %50 = arith.subf %48, %49 : vector<128x128xf32>
      %51 = vector.broadcast %13 : f32 to vector<128x128xf32>
      %52 = arith.mulf %50, %51 : vector<128x128xf32>
      %53 = math.roundeven %52 : vector<128x128xf32>
      %54 = vector.broadcast %10 : f32 to vector<128x128xf32>
      %55 = arith.mulf %54, %53 : vector<128x128xf32>
      %56 = arith.subf %50, %55 : vector<128x128xf32>
      %57 = arith.mulf %38, %38 : vector<128x128xf32>
      %58 = arith.mulf %47, %47 : vector<128x128xf32>
      %59 = arith.addf %57, %58 : vector<128x128xf32>
      %60 = arith.mulf %56, %56 : vector<128x128xf32>
      %61 = arith.addf %59, %60 : vector<128x128xf32>
      %62 = vector.broadcast %21 : vector<128x1xf32> to vector<128x128xf32>
      %63 = vector.broadcast %29 : vector<1x128xf32> to vector<128x128xf32>
      %64 = arith.cmpf one, %62, %63 : vector<128x128xf32>
      %cst = arith.constant 8.100000e-01 : f32
      %65 = vector.broadcast %cst : f32 to vector<128x128xf32>
      %66 = arith.cmpf olt, %61, %65 : vector<128x128xf32>
      %67 = arith.andi %64, %66 : vector<128x128xi1>
      %cst_10 = arith.constant 9.99999974E-5 : f32
      %68 = vector.broadcast %cst_10 : f32 to vector<128x128xf32>
      %69 = arith.maximumf %61, %68 : vector<128x128xf32>
      %70 = math.rsqrt %69 : vector<128x128xf32>
      %71 = arith.mulf %70, %70 : vector<128x128xf32>
      %72 = vector.broadcast %18 : vector<128x1xf32> to vector<128x128xf32>
      %73 = vector.broadcast %26 : vector<1x128xf32> to vector<128x128xf32>
      %74 = arith.mulf %72, %73 : vector<128x128xf32>
      %75 = arith.mulf %74, %70 : vector<128x128xf32>
      %76 = vector.broadcast %19 : vector<128x1xf32> to vector<128x128xf32>
      %77 = vector.broadcast %27 : vector<1x128xf32> to vector<128x128xf32>
      %78 = arith.addf %76, %77 : vector<128x128xf32>
      %79 = vector.broadcast %20 : vector<128x1xf32> to vector<128x128xf32>
      %80 = vector.broadcast %28 : vector<1x128xf32> to vector<128x128xf32>
      %81 = arith.mulf %79, %80 : vector<128x128xf32>
      %82 = arith.mulf %78, %78 : vector<128x128xf32>
      %83 = arith.mulf %82, %71 : vector<128x128xf32>
      %84 = arith.mulf %83, %83 : vector<128x128xf32>
      %85 = arith.mulf %84, %83 : vector<128x128xf32>
      %86 = arith.mulf %85, %85 : vector<128x128xf32>
      %87 = arith.subf %86, %85 : vector<128x128xf32>
      %88 = arith.mulf %81, %87 : vector<128x128xf32>
      %89 = arith.addf %75, %88 : vector<128x128xf32>
      %cst_11 = arith.constant 0.000000e+00 : f32
      %90 = vector.broadcast %cst_11 : f32 to vector<128x128xf32>
      %91 = arith.select %67, %89, %90 : vector<128x128xi1>, vector<128x128xf32>
      %cst_12 = arith.constant dense<0.000000e+00> : vector<128xf32>
      %92 = vector.multi_reduction <add>, %91, %cst_12 [0] : vector<128x128xf32> to vector<128xf32>
      %93 = vector.shape_cast %92 : vector<128xf32> to vector<1x128xf32>
      %94 = arith.addf %7, %93 : vector<1x128xf32>
      %c0_13 = arith.constant 0 : index
      %c0_14 = arith.constant 0 : index
      %c0_15 = arith.constant 0 : index
      %95 = vector.load %arg5[%c0_13, %c0_14, %c0_15] : memref<1x1x128xf32, #tpu.memory_space<vmem>>, vector<1x1x128xf32>
      %96 = vector.shape_cast %95 : vector<1x1x128xf32> to vector<1x128xf32>
      %97 = vector.shape_cast %94 : vector<1x128xf32> to vector<1x1x128xf32>
      tpu.vector_store %arg5[%c0_13, %c0_14, %c0_15], %97 {strides = array<i32>} : memref<1x1x128xf32, #tpu.memory_space<vmem>>, vector<1x1x128xf32>,
    } else {
    }
    return
  }
  func.func @transform_0(%arg0: i32, %arg1: i32) -> i32 {
    %c0_i32 = arith.constant 0 : i32
    %c0_i32_0 = arith.constant 0 : i32
    return %c0_i32 : i32
  }
  func.func @transform_1(%arg0: i32, %arg1: i32) -> (i32, i32) {
    %c0_i32 = arith.constant 0 : i32
    %c0_i32_0 = arith.constant 0 : i32
    return %arg0, %c0_i32 : i32, i32
  }
  func.func @transform_2(%arg0: i32, %arg1: i32) -> (i32, i32) {
    %0 = arith.addi %arg0, %arg1 : i32
    %c3_i32 = arith.constant 3 : i32
    %c0_i32 = arith.constant 0 : i32
    %1 = arith.cmpi eq, %c3_i32, %c0_i32 : i32
    %c1_i32 = arith.constant 1 : i32
    %2 = arith.select %1, %c1_i32, %c3_i32 : i32
    %3 = arith.remsi %0, %2 : i32
    %c0_i32_0 = arith.constant 0 : i32
    %4 = arith.cmpi ne, %3, %c0_i32_0 : i32
    %c0_i32_1 = arith.constant 0 : i32
    %5 = arith.cmpi slt, %3, %c0_i32_1 : i32
    %c0_i32_2 = arith.constant 0 : i32
    %6 = arith.cmpi slt, %2, %c0_i32_2 : i32
    %7 = arith.xori %5, %6 : i1
    %8 = arith.andi %7, %4 : i1
    %9 = arith.addi %3, %2 : i32
    %10 = arith.select %8, %9, %3 : i32
    %c0_i32_3 = arith.constant 0 : i32
    %c0_i32_4 = arith.constant 0 : i32
    return %c0_i32_3, %10 : i32, i32
  }
  func.func @transform_3(%arg0: i32, %arg1: i32) -> (i32, i32, i32) {
    %c0_i32 = arith.constant 0 : i32
    %c0_i32_0 = arith.constant 0 : i32
    %c0_i32_1 = arith.constant 0 : i32
    return %arg0, %c0_i32, %c0_i32_0 : i32, i32, i32
  }
}

</mosaic_0001>

<bundles_post_ra>
// kernel: tpu_custom_call.1
= control target key start
LH: loop header
LB: loop body
LE: loop exit
PB: predicated region body
PF: predicated region fallthrough
CT: control target
= control target key end

     0   :  { %8 = vsyncpa [#allocation4], 0  ;;  %s8183_s0 = inlined_call_operand.vmem [shape: f32[6], index: 0, kind: input, shape index: {}]   ;;  %s8184_s1 = inlined_call_operand.vmem [shape: f32[384,8], index: 1, kind: input, shape index: {}]   ;;  %s8185_s2 = inlined_call_operand.vmem [shape: f32[8,384], index: 2, kind: input, shape index: {}]   ;;  %s8186_s3 = inlined_call_operand.hbm [shape: f32[3,1,128], index: 3, kind: output, shape index: {}]  }
   0x1   :  { %9 = vsyncpa [#allocation3], 0 }
   0x2   :  { %11 = vsyncpa [#allocation3 + $0x1], 0  ;;  %s4246_s12 = smov 0   ;;  %s4248_s13 = smov 0  }
   0x3   :  { %s4250_s14 = smov 0   ;;  %s4252_s15 = smov 0  }
   0x4   :  { %s4254_s16 = smov 0   ;;  %s4256_s17 = smov 0  }
   0x5   :  { %s4258_s18 = smov 0   ;;  %s4260_s19 = smov 0  }
   0x6 LB: > { %s3055_s20 = sadd.s32 4294967295, %s4209_s19   ;;  %s3056_s21 = sadd.s32 4294967294, %s4209_s19   ;;  %s4209_s19 = sphi %s4260_s19, %s17_s19   ;;  %s4205_s18 = sphi %s4258_s18, %s8663_s18   ;;  %s4201_s17 = sphi %s4256_s17, %s8662_s17   ;;  %s4197_s16 = sphi %s4254_s16, %s8661_s16   ;;  %s4193_s15 = sphi %s4252_s15, %s8660_s15   ;;  %s4189_s14 = sphi %s4250_s14, %s8659_s14   ;;  %s4185_s13 = sphi %s4248_s13, %s8658_s13   ;;  %s4181_s12 = sphi %s4246_s12, %s8657_s12  }
   0x7   : > { %s26_s22 = sadd.s32 1, %s4201_s17  ;;  %s29_s23 = sadd.s32 1, %s4205_s18 }
   0x8   : > { %p27_p0 = scmp.ge.s32.totalorder %s26_s22, 2  ;;  %s137_s24 = sadd.s32 1, %s4189_s14 }
   0x9   : > { %p147_p1 = scmp.ne.s32.totalorder %s4189_s14, %s4185_s13  ;;  %p148_p2 = scmp.eq.s32.totalorder %s3055_s20, 5 }
   0xa   : > { %s8665_s22 = smov (%p27_p0, %s26_s22), 0  ;;  %s8667_s23 = smov (!%p27_p0, %s29_s23), %s4205_s18 }
   0xb   : > { %p4296_p3 = por %p148_p2, %p147_p1  ;;  %p153_p4 = scmp.ne.s32.totalorder %s4185_s13, %s4181_s12 }
   0xc   : > { %p31_p5 = scmp.ge.s32.totalorder %s8667_s23, 3  ;;  %p154_p6 = scmp.eq.s32.totalorder %s3056_s21, 5 }
   0xd   : > { %p3063_p7 = scmp.ge.s32.totalorder %s4209_s19, 1  ;;  %p161_p8 = scmp.lt.s32.totalorder %s4209_s19, 7 }
   0xe   : > { %s8669_s23 = smov (%p31_p5, %s8667_s23), 0  ;;  %p4306_p9 = por %p154_p6, %p153_p4 }
   0xf   : > { %p162_p10 = pnand %p3063_p7, %p161_p8  ;;  %s134_s27 = ssub.s32 %s4205_s18, %s8669_s23 }
  0x10   : > { %p135_p11 = scmp.eq.s32.totalorder %s134_s27, 0  ;;  %p3870_p13 = scmp.eq.s32.totalorder %s3055_s20, 0 }
  0x11   : > { %p3862_p12 = pneg %p162_p10  ;;  %s173_s30 = sshll.u32 %s8183_s0, 4  ;;  %s174_s30 = int_to_ptr.vmem [resolvable:$true] %s173_s30 }
  0x12   : > { %s4316_s4 = scalar_select %p135_p11, %s4189_s14, %s137_s24  }
  0x13   : > { %p3863_p0 = pnand %p3870_p13, %p3862_p12  ;;  %s4211_s5 = smov [#allocation2]  }
  0x14   : > { %230 = sbr.rel (%p162_p10) target bundleno = 988 (0x3dc), region = 32 }
  0x15   : > { %3865 = dma.vmem_to_smem (!%p3863_p0), %s174_s30, 16, %s4211_s5, [#allocation4]  }
  0x19   : > { %4172 = dma.done.wait (%p3870_p13), [#allocation4], 16  }
  0x1a   : > { %4174 = vsyncadd (%p3870_p13), [#allocation4], 4294967280 }
  0x1b   : > { %237 = sfence }
  0x1c   : > { %s3068_s7 = sshll.u32 %s4197_s16, 4  ;;  %s279_s8 = sadd.s32 %s4193_s15, %s4197_s16 }
  0x1d   : > { %p274_p1 = scmp.lt.s32.totalorder %s3068_s7, 47  ;;  %s281_s9 = ssub.s32 0, %s279_s8 }
  0x1e   : > { %s3070_s11 = smin.u32 %s281_s9, %s279_s8  ;;  %p280_p2 = scmp.lt.s32.totalorder %s279_s8, 0 }
  0x1f   : > { %s8671_s7 = smov (!%p274_p1, %s3068_s7), 47  ;;  %3953 = sdivrem.u32 %s3070_s11, 3 }
  0x20   : > { %s3069_s10 = sshll.u32 %s8671_s7, 3  ;;  %s8239_s20 = sand.u32 1, %s4185_s13  }
  0x21   : > { %s4325_s24 = scalar_lea.vmem %s8184_s1, %s3069_s10  ;;  %s4334_s10 = scalar_lea.vmem [#allocation5], %s8239_s20 }
  0x22   : > { %p3074_p6 = scmp.ne.s32.totalorder %s4193_s15, 0 }
  0x28   : > { %s3954_s27 = spop.drf %3953 }
  0x29   : > { %s3955_s28 = spop.drf %3953 }
  0x2a   : > { %s285_s29 = ssub.s32 0, %s3955_s28 }
  0x2b   : > { %s8673_s29 = smov (!%p280_p2, %s285_s29), %s3955_s28 }
  0x2c   : > { %p3072_p4 = scmp.lt.s32.totalorder %s8673_s29, 0  ;;  %s291_s30 = sadd.s32 3, %s8673_s29 }
  0x2e   : > { %s8675_s30 = smov (!%p3072_p4, %s291_s30), %s8673_s29 }
  0x2f   : > { %p293_p5 = scmp.lt.s32.totalorder %s8675_s30, 2  ;;  %314 = sbr.rel (%p3074_p6) target bundleno = 508 (0x1fc), region = 40 }
  0x31   : > { %s8677_s30 = smov (!%p293_p5, %s8675_s30), 2 }
  0x32   : > { %s3073_s5 = sshll.u32 %s8677_s30, 3 }
  0x33   : > { %s4330_s9 = scalar_lea.vmem %s8185_s2, %s3073_s5 }
  0x34   : > { %v4338_v0 = vld [vmem:[%s4325_s24 + $0x20] sm:$0xff]  ;;  %v4341_v1 = vld [vmem:[%s4325_s24 + $0x10] sm:$0xff]  ;;  %v4212_v3 = vmov 0   ;;  %v4350_v4 = vld [vmem:[%s4325_s24 + $0x28] sm:$0xff]  ;;  %v4213_v17 = vmov 1   ;;  %v4214_v18 = vmov 2  }
  0x35   : > { %v4344_v2 = vld [vmem:[%s4325_s24] sm:$0xff]  ;;  %3958 = vset.pattern.permute.xlu2 %v4212_v3  ;;  %3957 = vset.pattern.permute.xlu1 %v4212_v3  ;;  %v4353_v5 = vld [vmem:[%s4325_s24 + $0x18] sm:$0xff]  ;;  %v4356_v6 = vld [vmem:[%s4325_s24 + $0x8] sm:$0xff]  ;;  %s3077_s6 = sld [smem:[#allocation2 + $0x3]] }
  0x36   : > { %3956 = vset.pattern.permute.xlu0 %v4212_v3  ;;  %360 = vperm.xlu2 %3958, %v4338_v0   ;;  %v4362_v7 = vld [vmem:[%s4325_s24 + $0x40] sm:$0xff]  ;;  %v4365_v8 = vld [vmem:[%s4325_s24 + $0x38] sm:$0xff]  ;;  %v4368_v9 = vld [vmem:[%s4325_s24 + $0x30] sm:$0xff]  ;;  %s315_s8 = sld [smem:[#allocation2]] }
  0x37   : > { %350 = vperm.xlu1 %3957, %v4341_v1   ;;  %340 = vperm.xlu0 %3956, %v4344_v2   ;;  %v4374_v10 = vld [vmem:[%s4325_s24 + $0x58] sm:$0xff]  ;;  %v4377_v11 = vld [vmem:[%s4325_s24 + $0x50] sm:$0xff]  ;;  %v4380_v12 = vld [vmem:[%s4325_s24 + $0x48] sm:$0xff]  ;;  %s4489_s11 = sld [smem:[#allocation2 + $0x4]] }
  0x38   : > { %v4386_v13 = vld [vmem:[%s4325_s24 + $0x70] sm:$0xff]  ;;  %v4389_v14 = vld [vmem:[%s4325_s24 + $0x68] sm:$0xff]  ;;  %v4392_v15 = vld [vmem:[%s4325_s24 + $0x60] sm:$0xff]  ;;  %s4511_s21 = sld [smem:[#allocation2 + $0x1]] }
  0x39   : > { %v4398_v16 = vld [vmem:[%s4325_s24 + $0x78] sm:$0xff]  ;;  %v4419_v19 = vld [vmem:[%s4330_s9] sm:$0xff]  ;;  %s4948_s27 = sld [smem:[#allocation2 + $0x5]] }
  0x3a   : > { %v4422_v20 = vperm.slane %v4419_v19, 0  ;;  %s5105_s28 = sld [smem:[#allocation2 + $0x2]] }
  0x3b   : > { %v4428_v23 = vstv %s3077_s6 }
  0x3c   : > { %v4451_v47 = vstv %s315_s8 }
  0x3e   : > { %365 = vperm.xlu2 %3958, %v4350_v4  }
  0x3f   : > { %355 = vperm.xlu1 %3957, %v4353_v5   ;;  %345 = vperm.xlu0 %3956, %v4356_v6  }
  0x46   : > { %380 = vperm.xlu2 %3958, %v4362_v7  }
  0x47   : > { %375 = vperm.xlu1 %3957, %v4365_v8   ;;  %370 = vperm.xlu0 %3956, %v4368_v9  }
  0x4e   : > { %395 = vperm.xlu2 %3958, %v4374_v10  }
  0x4f   : > { %390 = vperm.xlu1 %3957, %v4377_v11   ;;  %385 = vperm.xlu0 %3956, %v4380_v12  }
  0x56   : > { %410 = vperm.xlu2 %3958, %v4386_v13  }
  0x57   : > { %405 = vperm.xlu1 %3957, %v4389_v14   ;;  %400 = vperm.xlu0 %3956, %v4392_v15  }
  0x5e   : > { %3960 = vset.pattern.permute.xlu2 %v4213_v17 }
  0x5f   : > { %3959 = vset.pattern.permute.xlu1 %v4213_v17  ;;  %415 = vperm.xlu0 %3956, %v4398_v16  }
  0x60   : > { %506 = vperm.xlu2 %3960, %v4356_v6   ;;  %502 = vperm.xlu1 %3959, %v4344_v2  }
  0x67   : > { %3961 = vset.pattern.permute.xlu0 %v4213_v17 }
  0x68   : > { %518 = vperm.xlu2 %3960, %v4338_v0   ;;  %514 = vperm.xlu1 %3959, %v4353_v5  }
  0x69   : > { %510 = vperm.xlu0 %3961, %v4341_v1  }
  0x70   : > { %526 = vperm.xlu2 %3960, %v4368_v9   ;;  %522 = vperm.xlu1 %3959, %v4350_v4  }
  0x71   : > { %530 = vperm.xlu0 %3961, %v4365_v8  }
  0x78   : > { %538 = vperm.xlu2 %3960, %v4380_v12   ;;  %534 = vperm.xlu1 %3959, %v4362_v7  }
  0x79   : > { %542 = vperm.xlu0 %3961, %v4377_v11  }
  0x80   : > { %550 = vperm.xlu2 %3960, %v4392_v15   ;;  %546 = vperm.xlu1 %3959, %v4374_v10  }
  0x81   : > { %554 = vperm.xlu0 %3961, %v4389_v14  }
  0x88   : > { %562 = vperm.xlu2 %3960, %v4398_v16   ;;  %558 = vperm.xlu1 %3959, %v4386_v13  }
  0x89   : > { %3962 = vset.pattern.permute.xlu0 %v4214_v18 }
  0x8a   : > { %649 = vperm.xlu0 %3962, %v4344_v2  }
  0x90   : > { %3964 = vset.pattern.permute.xlu2 %v4214_v18  ;;  %3963 = vset.pattern.permute.xlu1 %v4214_v18  ;;  %v361_v21 = vpop.permute.xlu2 %360 }
  0x91   : > { %657 = vperm.xlu2 %3964, %v4341_v1   ;;  %653 = vperm.xlu1 %3963, %v4356_v6   ;;  %v423_v22 = vsub.f32 %v361_v21, %v4422_v20 }
  0x92   : > { %669 = vperm.xlu0 %3962, %v4350_v4  }
  0x93   : > { %v440_v24 = vmul.f32 %v4428_v23, %v423_v22 }
  0x95   : > { %v3122_v27 = vcvt.f32.s32 %v440_v24  ;;  %v3125_v34 = vand.u32 2147483648, %v440_v24  ;;  %v3120_v36 = vand.u32 2147483647, %v440_v24 }
  0x97   : > { %v3123_v29 = vcvt.s32.f32 %v3122_v27  ;;  %vm4447_vm0 = vcmp.lt.f32.partialorder %v3120_v36, 8388608.0 }
  0x98   : > { %v366_v25 = vpop.permute.xlu2 %365 }
  0x99   : > { %v4432_v26 = vsub.f32 %v366_v25, %v4422_v20  ;;  %665 = vperm.xlu2 %3964, %v4338_v0   ;;  %661 = vperm.xlu1 %3963, %v4353_v5   ;;  %v3124_v33 = vand.u32 2147483647, %v3123_v29 }
  0x9a   : > { %681 = vperm.xlu0 %3962, %v4362_v7  }
  0x9b   : > { %v441_v28 = vmul.f32 %v4428_v23, %v4432_v26  ;;  %v3126_v39 = vor.u32 %v3125_v34, %v3124_v33  ;;  %v4215_v33 = vmov 6  }
  0x9d   : > { %v3130_v30 = vcvt.f32.s32 %v441_v28  ;;  %v3133_v41 = vand.u32 2147483648, %v441_v28  ;;  %v3128_v43 = vand.u32 2147483647, %v441_v28  ;;  %v3127_v53 = vsel %vm4447_vm0, %v3126_v39, %v440_v24 }
  0x9e   : > { %v473_v61 = vmul.f32 %v3127_v53, %v4451_v47 }
  0x9f   : > { %v3131_v35 = vcvt.s32.f32 %v3130_v30  ;;  %vm3129_vm1 = vcmp.lt.f32.partialorder %v3128_v43, 8388608.0 }
  0xa0   : > { %v381_v31 = vpop.permute.xlu2 %380  ;;  %v489_v25 = vsub.f32 %v423_v22, %v473_v61 }
  0xa1   : > { %v4440_v32 = vsub.f32 %v381_v31, %v4422_v20  ;;  %677 = vperm.xlu2 %3964, %v4365_v8   ;;  %673 = vperm.xlu1 %3963, %v4368_v9   ;;  %v3132_v40 = vand.u32 2147483647, %v3131_v35 }
  0xa2   : > { %693 = vperm.xlu0 %3962, %v4374_v10  }
  0xa3   : > { %v444_v37 = vmul.f32 %v4428_v23, %v4440_v32  ;;  %v3134_v54 = vor.u32 %v3133_v41, %v3132_v40 }
  0xa5   : > { %v3154_v38 = vcvt.f32.s32 %v444_v37  ;;  %v3157_v45 = vand.u32 2147483648, %v444_v37  ;;  %v3152_v48 = vand.u32 2147483647, %v444_v37  ;;  %v3135_v3 = vsel %vm3129_vm1, %v3134_v54, %v441_v28 }
  0xa6   : > { %v474_v27 = vmul.f32 %v3135_v3, %v4451_v47  ;;  %v4530_v54 = vstv %s4489_s11 }
  0xa7   : > { %v3155_v44 = vcvt.s32.f32 %v3154_v38  ;;  %vm4480_vm2 = vcmp.lt.f32.partialorder %v3152_v48, 8388608.0  ;;  %v4507_v38 = vmul.f32 %v489_v25, %v489_v25 }
  0xa8   : > { %v396_v46 = vpop.permute.xlu2 %395  ;;  %v490_v39 = vsub.f32 %v4432_v26, %v474_v27 }
  0xa9   : > { %v3156_v49 = vand.u32 2147483647, %v3155_v44  ;;  %v4454_v50 = vsub.f32 %v396_v46, %v4422_v20  ;;  %v351_v51 = vpop.permute.xlu1 %350  ;;  %689 = vperm.xlu2 %3964, %v4377_v11   ;;  %685 = vperm.xlu1 %3963, %v4380_v12   ;;  %v341_v52 = vpop.permute.xlu0 %340 }
  0xaa   : > { %v4461_v55 = vsub.f32 %v351_v51, %v4422_v20  ;;  %705 = vperm.xlu0 %3962, %v4386_v13   ;;  %v4465_v56 = vsub.f32 %v341_v52, %v4422_v20 }
  0xab   : > { %v4469_v57 = vmul.f32 %v4428_v23, %v4454_v50  ;;  %v3158_v58 = vor.u32 %v3157_v45, %v3156_v49  ;;  %v4525_v49 = vperm.slane %v4419_v19, 1 }
  0xac   : > { %v4473_v59 = vmul.f32 %v4428_v23, %v4461_v55  ;;  %v4477_v60 = vmul.f32 %v4428_v23, %v4465_v56 }
  0xad   : > { %v3178_v63 = vcvt.f32.s32 %v4469_v57  ;;  %v3159_v18 = vsel %vm4480_vm2, %v3158_v58, %v444_v37  ;;  %v3176_v40 = vand.u32 2147483647, %v4469_v57  ;;  %v3181_v26 = vand.u32 2147483648, %v4469_v57 }
  0xae   : > { %v3106_v17 = vcvt.f32.s32 %v4473_v59  ;;  %v3090_v21 = vcvt.f32.s32 %v4477_v60  ;;  %v477_v22 = vmul.f32 %v3159_v18, %v4451_v47  ;;  %v3104_v42 = vand.u32 2147483647, %v4473_v59 }
  0xaf   : > { %v3179_v29 = vcvt.s32.f32 %v3178_v63  ;;  %v3088_v43 = vand.u32 2147483647, %v4477_v60  ;;  %v3093_v52 = vand.u32 2147483648, %v4477_v60  ;;  %v4532_v58 = vmul.f32 %v490_v39, %v490_v39 }
  0xb0   : > { %v411_v24 = vpop.permute.xlu2 %410  ;;  %v3107_v35 = vcvt.s32.f32 %v3106_v17  ;;  %v3091_v36 = vcvt.s32.f32 %v3090_v21  ;;  %v493_v46 = vsub.f32 %v4440_v32, %v477_v22  ;;  %vm4534_vm3 = vcmp.lt.f32.partialorder %v3176_v40, 8388608.0 }
  0xb1   : > { %v356_v30 = vpop.permute.xlu1 %355  ;;  %701 = vperm.xlu2 %3964, %v4389_v14   ;;  %697 = vperm.xlu1 %3963, %v4392_v15   ;;  %v346_v28 = vpop.permute.xlu0 %345  ;;  %v3180_v41 = vand.u32 2147483647, %v3179_v29  ;;  %v4516_v44 = vsub.f32 %v411_v24, %v4422_v20  ;;  %v3109_v62 = vand.u32 2147483648, %v4473_v59  ;;  %vm4541_vm4 = vcmp.lt.f32.partialorder %v3104_v42, 8388608.0 }
  0xb2   : > { %v4495_v31 = vsub.f32 %v356_v30, %v4422_v20  ;;  %3966 = vset.pattern.permute.xlu0 %v4215_v33  ;;  %v4499_v34 = vsub.f32 %v346_v28, %v4422_v20  ;;  %v3108_v48 = vand.u32 2147483647, %v3107_v35  ;;  %v3092_v51 = vand.u32 2147483647, %v3091_v36 }
  0xb3   : > { %880 = vperm.xlu0 %3966, %v4356_v6   ;;  %8244 = vst [vmem:[#allocation8_spill] sm:$0xff] %v4516_v44  ;;  %v3182_v32 = vor.u32 %v3181_v26, %v3180_v41  ;;  %vm4545_vm5 = vcmp.lt.f32.partialorder %v3088_v43, 8388608.0  ;;  %v4551_v21 = vmul.f32 %v4428_v23, %v4516_v44  ;;  %v4555_v27 = vmul.f32 %v493_v46, %v493_v46 }
  0xb4   : > { %v4505_v37 = vmul.f32 %v4428_v23, %v4495_v31  ;;  %v4520_v45 = vmul.f32 %v4428_v23, %v4499_v34  ;;  %v3110_v29 = vor.u32 %v3109_v62, %v3108_v48  ;;  %v3094_v22 = vor.u32 %v3093_v52, %v3092_v51 }
  0xb5   : > { %8251 = vst [vmem:[#allocation9_spill] sm:$0xff] %v4551_v21  ;;  %v3183_v40 = vsel %vm4534_vm3, %v3182_v32, %v4469_v57  ;;  %v4573_v43 = vstv %s4511_s21  ;;  %v3202_v26 = vcvt.f32.s32 %v4551_v21 }
  0xb6   : > { %v3114_v53 = vcvt.f32.s32 %v4505_v37  ;;  %v3098_v24 = vcvt.f32.s32 %v4520_v45  ;;  %8252 = vst [vmem:[#allocation10_spill] sm:$0xff] %v4555_v27  ;;  %v3096_v28 = vand.u32 2147483647, %v4520_v45  ;;  %v3101_v36 = vand.u32 2147483648, %v4520_v45 }
  0xb7   : > { %v3111_v57 = vsel %vm4541_vm4, %v3110_v29, %v4473_v59  ;;  %v4593_v32 = vmul.f32 %v3183_v40, %v4451_v47  ;;  %v3095_v62 = vsel %vm4545_vm5, %v3094_v22, %v4477_v60  ;;  %v3112_v17 = vand.u32 2147483647, %v4505_v37 }
  0xb8   : > { %v3115_v30 = vcvt.s32.f32 %v3114_v53  ;;  %v3099_v35 = vcvt.s32.f32 %v3098_v24  ;;  %vm4584_vm6 = vcmp.lt.f32.partialorder %v3096_v28, 8388608.0  ;;  %v3117_v24 = vand.u32 2147483648, %v4505_v37 }
  0xb9   : > { %v376_v63 = vpop.permute.xlu1 %375  ;;  %3965 = vset.pattern.permute.xlu2 %v4215_v33  ;;  %709 = vperm.xlu1 %3963, %v4398_v16   ;;  %v371_v3 = vpop.permute.xlu0 %370  ;;  %v471_v18 = vmul.f32 %v3111_v57, %v4451_v47  ;;  %v4608_v60 = vcvt.s32.f32 %v3202_v26  ;;  %vm4629_vm7 = vcmp.lt.f32.partialorder %v3112_v17, 8388608.0 }
  0xba   : > { %v507_v25 = vpop.permute.xlu2 %506  ;;  %876 = vperm.xlu2 %3965, %v4344_v2   ;;  %v4561_v39 = vsub.f32 %v376_v63, %v4422_v20  ;;  %v4567_v41 = vsub.f32 %v371_v3, %v4422_v20  ;;  %v3100_v48 = vand.u32 2147483647, %v3099_v35  ;;  %v3116_v52 = vand.u32 2147483647, %v3115_v30 }
  0xbb   : > { %900 = vperm.xlu0 %3966, %v4368_v9   ;;  %v4570_v42 = vsub.f32 %v507_v25, %v4525_v49  ;;  %8255 = vst [vmem:[#allocation11_spill] sm:$0xff] %v4608_v60 }
  0xbc   : > { %v4579_v51 = vmul.f32 %v4428_v23, %v4561_v39  ;;  %v4590_v61 = vmul.f32 %v4428_v23, %v4567_v41  ;;  %v3102_v63 = vor.u32 %v3101_v36, %v3100_v48  ;;  %v469_v36 = vmul.f32 %v3095_v62, %v4451_v47 }
  0xbd   : > { %v4600_v59 = vmul.f32 %v4530_v54, %v4570_v42  ;;  %v3118_v40 = vor.u32 %v3117_v24, %v3116_v52 }
  0xbe   : > { %v3146_v25 = vcvt.f32.s32 %v4579_v51  ;;  %v3103_v28 = vsel %vm4584_vm6, %v3102_v63, %v4520_v45  ;;  %v3138_v22 = vcvt.f32.s32 %v4590_v61  ;;  %v3149_v26 = vand.u32 2147483648, %v4579_v51 }
  0xbf   : > { %v3136_v57 = vand.u32 2147483647, %v4590_v61  ;;  %v3226_v53 = vcvt.f32.s32 %v4600_v59  ;;  %v470_v63 = vmul.f32 %v3103_v28, %v4451_v47  ;;  %v3141_v3 = vand.u32 2147483648, %v4590_v61 }
  0xc0   : > { %v3147_v48 = vcvt.s32.f32 %v3146_v25  ;;  %v3139_v45 = vcvt.s32.f32 %v3138_v22  ;;  %v3224_v62 = vand.u32 2147483647, %v4600_v59  ;;  %v3229_v25 = vand.u32 2147483648, %v4600_v59 }
  0xc1   : > { %v391_v29 = vpop.permute.xlu1 %390  ;;  %3967 = vset.pattern.permute.xlu1 %v4215_v33  ;;  %v386_v30 = vpop.permute.xlu0 %385  ;;  %v3144_v33 = vand.u32 2147483647, %v4579_v51  ;;  %v3227_v24 = vcvt.s32.f32 %v3226_v53  ;;  %vm4661_vm10 = vcmp.lt.f32.partialorder %v3136_v57, 8388608.0 }
  0xc2   : > { %v519_v35 = vpop.permute.xlu2 %518  ;;  %888 = vperm.xlu2 %3965, %v4353_v5   ;;  %884 = vperm.xlu1 %3967, %v4341_v1   ;;  %v3148_v46 = vand.u32 2147483647, %v3147_v48  ;;  %v3140_v52 = vand.u32 2147483647, %v3139_v45  ;;  %v4627_v44 = vsub.f32 %v391_v29, %v4422_v20  ;;  %v4634_v21 = vsub.f32 %v386_v30, %v4422_v20 }
  0xc3   : > { %912 = vperm.xlu0 %3966, %v4380_v12   ;;  %v4637_v28 = vsub.f32 %v519_v35, %v4525_v49  ;;  %v487_v48 = vsub.f32 %v4461_v55, %v471_v18  ;;  %v3119_v45 = vsel %vm4629_vm7, %v3118_v40, %v4505_v37  ;;  %v3228_v53 = vand.u32 2147483647, %v3227_v24 }
  0xc4   : > { %8256 = vst [vmem:[#allocation12_spill] sm:$0xff] %v4627_v44  ;;  %v3150_v22 = vor.u32 %v3149_v26, %v3148_v46  ;;  %v4645_v17 = vmul.f32 %v4428_v23, %v4627_v44  ;;  %v486_v29 = vsub.f32 %v4499_v34, %v470_v63  ;;  %v3142_v46 = vor.u32 %v3141_v3, %v3140_v52 }
  0xc5   : > { %vm4648_vm8 = vcmp.lt.f32.partialorder %v3224_v62, 8388608.0  ;;  %v4654_v35 = vmul.f32 %v4428_v23, %v4634_v21  ;;  %vm4657_vm9 = vcmp.lt.f32.partialorder %v3144_v33, 8388608.0  ;;  %v3230_v34 = vor.u32 %v3229_v25, %v3228_v53 }
  0xc6   : > { %v485_v26 = vsub.f32 %v4465_v56, %v469_v36  ;;  %v3151_v63 = vsel %vm4657_vm9, %v3150_v22, %v4579_v51  ;;  %v3170_v33 = vcvt.f32.s32 %v4645_v17  ;;  %v587_v57 = vmul.f32 %v4530_v54, %v4637_v28 }
  0xc7   : > { %v4675_v62 = vmul.f32 %v487_v48, %v487_v48  ;;  %v472_v52 = vmul.f32 %v3119_v45, %v4451_v47  ;;  %v3231_v24 = vsel %vm4648_vm8, %v3230_v34, %v4600_v59  ;;  %v3162_v56 = vcvt.f32.s32 %v4654_v35 }
  0xc8   : > { %v796_v36 = vmul.f32 %v486_v29, %v486_v29  ;;  %v3143_v51 = vsel %vm4661_vm10, %v3142_v46, %v4590_v61  ;;  %v617_v25 = vmul.f32 %v3231_v24, %v4573_v43  ;;  %v3171_v22 = vcvt.s32.f32 %v3170_v33 }
  0xc9   : > { %v406_v55 = vpop.permute.xlu1 %405  ;;  %v401_v18 = vpop.permute.xlu0 %400  ;;  %v3168_v48 = vand.u32 2147483647, %v4645_v17  ;;  %v3173_v45 = vand.u32 2147483648, %v4645_v17  ;;  %v3163_v53 = vcvt.s32.f32 %v3162_v56  ;;  %v3165_v27 = vand.u32 2147483648, %v4654_v35 }
  0xca   : > { %v527_v3 = vpop.permute.xlu2 %526  ;;  %896 = vperm.xlu2 %3965, %v4350_v4   ;;  %892 = vperm.xlu1 %3967, %v4338_v0   ;;  %v633_v30 = vsub.f32 %v4570_v42, %v617_v25  ;;  %v3172_v59 = vand.u32 2147483647, %v3171_v22  ;;  %v3250_v29 = vcvt.f32.s32 %v587_v57  ;;  %v475_v34 = vmul.f32 %v3143_v51, %v4451_v47 }
  0xcb   : > { %924 = vperm.xlu0 %3966, %v4392_v15   ;;  %v476_v15 = vmul.f32 %v3151_v63, %v4451_v47  ;;  %v3160_v61 = vand.u32 2147483647, %v4654_v35  ;;  %v3164_v46 = vand.u32 2147483647, %v3163_v53  ;;  %v3248_v40 = vand.u32 2147483647, %v587_v57 }
  0xcc   : > { %v812_v33 = vmul.f32 %v633_v30, %v633_v30  ;;  %v3251_v24 = vcvt.s32.f32 %v3250_v29  ;;  %v3253_v63 = vand.u32 2147483648, %v587_v57  ;;  %v4694_v37 = vsub.f32 %v401_v18, %v4422_v20 }
  0xcd   : > { %v4696_v56 = vmul.f32 %v485_v26, %v485_v26  ;;  %v488_v42 = vsub.f32 %v4495_v31, %v472_v52  ;;  %v492_v25 = vsub.f32 %v4561_v39, %v476_v15  ;;  %v3174_v22 = vor.u32 %v3173_v45, %v3172_v59 }
  0xce   : > { %v4701_v53 = vadd.f32 %v812_v33, %v796_v36  ;;  %v3166_v30 = vor.u32 %v3165_v27, %v3164_v46  ;;  %v3252_v29 = vand.u32 2147483647, %v3251_v24  ;;  %v448_v18 = vmul.f32 %v4428_v23, %v4694_v37 }
  0xcf   : > { %v491_v31 = vsub.f32 %v4567_v41, %v475_v34  ;;  %vm4708_vm11 = vcmp.lt.f32.partialorder %v3168_v48, 8388608.0  ;;  %vm4712_vm12 = vcmp.lt.f32.partialorder %v3160_v61, 8388608.0  ;;  %vm3249_vm13 = vcmp.lt.f32.partialorder %v3248_v40, 8388608.0 }
  0xd0   : > { %v3254_v52 = vor.u32 %v3253_v63, %v3252_v29  ;;  %v4717_v36 = vsub.f32 %v406_v55, %v4422_v20  ;;  %v4720_v15 = vsub.f32 %v527_v3, %v4525_v49  ;;  %v4725_v41 = vmul.f32 %v488_v42, %v488_v42 }
  0xd1   : > { %v416_v44 = vpop.permute.xlu0 %415  ;;  %v3175_v48 = vsel %vm4708_vm11, %v3174_v22, %v4645_v17  ;;  %v3184_v45 = vand.u32 2147483647, %v448_v18  ;;  %v3186_v59 = vcvt.f32.s32 %v448_v18  ;;  %v4730_v27 = vmul.f32 %v492_v25, %v492_v25 }
  0xd2   : > { %v539_v60 = vpop.permute.xlu2 %538  ;;  %908 = vperm.xlu2 %3965, %v4362_v7   ;;  %v503_v51 = vpop.permute.xlu1 %502  ;;  %904 = vperm.xlu1 %3967, %v4365_v8   ;;  %v3167_v55 = vsel %vm4712_vm12, %v3166_v30, %v4654_v35  ;;  %v3255_v34 = vsel %vm3249_vm13, %v3254_v52, %v587_v57  ;;  %v4735_v3 = vmul.f32 %v491_v31, %v491_v31  ;;  %v3189_v61 = vand.u32 2147483648, %v448_v18 }
  0xd3   : > { %936 = vperm.xlu0 %3966, %v4398_v16   ;;  %v4723_v16 = vsub.f32 %v416_v44, %v4422_v20  ;;  %v620_v20 = vmul.f32 %v3255_v34, %v4573_v43  ;;  %v3187_v44 = vcvt.s32.f32 %v3186_v59  ;;  %v4739_v46 = vmul.f32 %v3175_v48, %v4451_v47 }
  0xd4   : > { %v4743_v17 = vmul.f32 %v4428_v23, %v4717_v36  ;;  %v589_v40 = vmul.f32 %v4530_v54, %v4720_v15  ;;  %v478_v57 = vmul.f32 %v3167_v55, %v4451_v47  ;;  %vm4753_vm14 = vcmp.lt.f32.partialorder %v3184_v45, 8388608.0 }
  0xd5   : > { %v4749_v35 = vmul.f32 %v4428_v23, %v4723_v16  ;;  %v636_v33 = vsub.f32 %v4637_v28, %v620_v20  ;;  %v3188_v63 = vand.u32 2147483647, %v3187_v44  ;;  %v4759_v29 = vsub.f32 %v539_v60, %v4525_v49 }
  0xd6   : > { %v3264_v22 = vand.u32 2147483647, %v589_v40  ;;  %v3266_v30 = vcvt.f32.s32 %v589_v40  ;;  %v4762_v23 = vsub.f32 %v503_v51, %v4525_v49  ;;  %v8192_v28 = vmov 3  }
  0xd7   : > { %v815_v39 = vmul.f32 %v636_v33, %v636_v33  ;;  %v3190_v26 = vor.u32 %v3189_v61, %v3188_v63  ;;  %v3208_v52 = vand.u32 2147483647, %v4749_v35  ;;  %v3194_v48 = vcvt.f32.s32 %v4743_v17 }
  0xd8   : > { %v3267_v51 = vcvt.s32.f32 %v3266_v30  ;;  %v3269_v45 = vand.u32 2147483648, %v589_v40  ;;  %v3213_v20 = vand.u32 2147483648, %v4749_v35  ;;  %v494_v44 = vsub.f32 %v4634_v21, %v478_v57 }
  0xd9   : > { %v4772_v59 = vadd.f32 %v815_v39, %v4507_v38  ;;  %v3191_v55 = vsel %vm4753_vm14, %v3190_v26, %v448_v18  ;;  %v592_v33 = vmul.f32 %v4530_v54, %v4759_v29  ;;  %vm4781_vm15 = vcmp.lt.f32.partialorder %v3264_v22, 8388608.0 }
  0xda   : > { %v551_v42 = vpop.permute.xlu2 %550  ;;  %920 = vperm.xlu2 %3965, %v4374_v10   ;;  %v515_v25 = vpop.permute.xlu1 %514  ;;  %916 = vperm.xlu1 %3967, %v4377_v11   ;;  %v3210_v10 = vcvt.f32.s32 %v4749_v35  ;;  %v481_v61 = vmul.f32 %v3191_v55, %v4451_v47  ;;  %vm4785_vm0 = vcmp.lt.f32.partialorder %v3208_v52, 8388608.0  ;;  %v583_v24 = vmul.f32 %v4530_v54, %v4762_v23 }
  0xdb   : > { %3970 = vset.pattern.permute.xlu0 %v8192_v28  ;;  %v511_v31 = vpop.permute.xlu0 %510  ;;  %8271 = vst [vmem:[#allocation13_spill] sm:$0xff] %v4772_v59  ;;  %v3288_v30 = vand.u32 2147483647, %v592_v33  ;;  %v4793_v39 = vsub.f32 %v551_v42, %v4525_v49  ;;  %v3290_v22 = vcvt.f32.s32 %v592_v33  ;;  %v4801_v60 = vcvt.s32.f32 %v3194_v48 }
  0xdc   : > { %1240 = vperm.xlu0 %3970, %v4341_v1   ;;  %v3211_v34 = vcvt.s32.f32 %v3210_v10  ;;  %v3268_v1 = vand.u32 2147483647, %v3267_v51  ;;  %v497_v21 = vsub.f32 %v4694_v37, %v481_v61  ;;  %v3216_v10 = vand.u32 2147483647, %v583_v24 }
  0xdd   : > { %v4796_v51 = vsub.f32 %v515_v25, %v4525_v49  ;;  %v3291_v61 = vcvt.s32.f32 %v3290_v22  ;;  %vm4813_vm1 = vcmp.lt.f32.partialorder %v3288_v30, 8388608.0 }
  0xde   : > { %v3212_v18 = vand.u32 2147483647, %v3211_v34  ;;  %v3270_v57 = vor.u32 %v3269_v45, %v3268_v1  ;;  %v4799_v34 = vmul.f32 %v494_v44, %v494_v44  ;;  %v3218_v45 = vcvt.f32.s32 %v583_v24 }
  0xdf   : > { %v3293_v1 = vand.u32 2147483648, %v592_v33  ;;  %v595_v44 = vmul.f32 %v4530_v54, %v4793_v39  ;;  %vm4820_vm2 = vcmp.lt.f32.partialorder %v3216_v10, 8388608.0 }
  0xe0   : > { %v3214_v26 = vor.u32 %v3213_v20, %v3212_v18  ;;  %v3271_v37 = vsel %vm4781_vm15, %v3270_v57, %v589_v40  ;;  %v4806_v20 = vmul.f32 %v497_v21, %v497_v21  ;;  %v3219_v40 = vcvt.s32.f32 %v3218_v45 }
  0xe1   : > { %v622_v25 = vmul.f32 %v3271_v37, %v4573_v43  ;;  %v3292_v18 = vand.u32 2147483647, %v3291_v61  ;;  %v3312_v57 = vand.u32 2147483647, %v595_v44  ;;  %v3314_v30 = vcvt.f32.s32 %v595_v44 }
  0xe2   : > { %v563_v52 = vpop.permute.xlu2 %562  ;;  %932 = vperm.xlu2 %3965, %v4386_v13   ;;  %v523_v55 = vpop.permute.xlu1 %522  ;;  %928 = vperm.xlu1 %3967, %v4389_v14   ;;  %v3215_v13 = vsel %vm4785_vm0, %v3214_v26, %v4749_v35  ;;  %v3220_v38 = vand.u32 2147483647, %v3219_v40  ;;  %v3221_v35 = vand.u32 2147483648, %v583_v24  ;;  %v4827_v45 = vsub.f32 %v511_v31, %v4525_v49 }
  0xe3   : > { %v531_v42 = vpop.permute.xlu0 %530  ;;  %v638_v63 = vsub.f32 %v4720_v15, %v622_v25  ;;  %v3294_v22 = vor.u32 %v3293_v1, %v3292_v18  ;;  %v484_v15 = vmul.f32 %v3215_v13, %v4451_v47  ;;  %v3315_v10 = vcvt.s32.f32 %v3314_v30 }
  0xe4   : > { %1260 = vperm.xlu0 %3970, %v4365_v8   ;;  %v586_v8 = vmul.f32 %v4530_v54, %v4796_v51  ;;  %v3222_v25 = vor.u32 %v3221_v35, %v3220_v38  ;;  %v3317_v61 = vand.u32 2147483648, %v595_v44  ;;  %vm4835_vm3 = vcmp.lt.f32.partialorder %v3312_v57, 8388608.0 }
  0xe5   : > { %v817_v26 = vmul.f32 %v638_v63, %v638_v63  ;;  %v3295_v40 = vsel %vm4813_vm1, %v3294_v22, %v592_v33  ;;  %v8282_v63 = vmov 3   ;;  %v3316_v38 = vand.u32 2147483647, %v3315_v10 }
  0xe6   : > { %v3240_v37 = vand.u32 2147483647, %v586_v8  ;;  %v3242_v1 = vcvt.f32.s32 %v586_v8  ;;  %v625_v18 = vmul.f32 %v3295_v40, %v4573_v43  ;;  %v3223_v13 = vsel %vm4820_vm2, %v3222_v25, %v583_v24 }
  0xe7   : > { %v4831_v28 = vadd.f32 %v817_v26, %v4735_v3  ;;  %v616_v35 = vmul.f32 %v3223_v13, %v4573_v43  ;;  %v585_v30 = vmul.f32 %v4530_v54, %v4827_v45  ;;  %v4855_v24 = vsub.f32 %v563_v52, %v4525_v49 }
  0xe8   : > { %vm4843_vm4 = vcmp.lt.f32.partialorder %v3240_v37, 8388608.0  ;;  %v3243_v57 = vcvt.s32.f32 %v3242_v1  ;;  %v641_v21 = vsub.f32 %v4759_v29, %v625_v18  ;;  %v3318_v26 = vor.u32 %v3317_v61, %v3316_v38 }
  0xe9   : > { %v3245_v22 = vand.u32 2147483648, %v586_v8  ;;  %v4861_v37 = vsub.f32 %v523_v55, %v4525_v49  ;;  %v3234_v10 = vcvt.f32.s32 %v585_v30  ;;  %v4865_v40 = vsub.f32 %v531_v42, %v4525_v49 }
  0xea   : > { %3969 = vset.pattern.permute.xlu2 %v8282_v63  ;;  %v535_v31 = vpop.permute.xlu1 %534  ;;  %3968 = vset.pattern.permute.xlu1 %v8282_v63  ;;  %v3244_v25 = vand.u32 2147483647, %v3243_v57  ;;  %v820_v52 = vmul.f32 %v641_v21, %v641_v21  ;;  %v3232_v1 = vand.u32 2147483647, %v585_v30  ;;  %v3237_v63 = vand.u32 2147483648, %v585_v30 }
  0xeb   : > { %v543_v33 = vpop.permute.xlu0 %542  ;;  %v4848_v48 = vpop.permute.xlu2 %657  ;;  %1236 = vperm.xlu2 %3969, %v4356_v6   ;;  %1232 = vperm.xlu1 %3968, %v4344_v2   ;;  %v632_v6 = vsub.f32 %v4762_v23, %v616_v35  ;;  %v3319_v2 = vsel %vm4835_vm3, %v3318_v26, %v595_v44  ;;  %v3235_v18 = vcvt.s32.f32 %v3234_v10  ;;  %v500_v38 = vsub.f32 %v4723_v16, %v484_v15 }
  0xec   : > { %1272 = vperm.xlu0 %3970, %v4377_v11   ;;  %v598_v11 = vmul.f32 %v4530_v54, %v4855_v24  ;;  %v628_v61 = vmul.f32 %v3319_v2, %v4573_v43  ;;  %v3246_v55 = vor.u32 %v3245_v22, %v3244_v25  ;;  %v4873_v23 = vadd.f32 %v820_v52, %v4799_v34 }
  0xed   : > { %v811_v29 = vmul.f32 %v632_v6, %v632_v6  ;;  %vm4885_vm5 = vcmp.lt.f32.partialorder %v3232_v1, 8388608.0  ;;  %v3236_v26 = vand.u32 2147483647, %v3235_v18  ;;  %v590_v15 = vmul.f32 %v4530_v54, %v4865_v40 }
  0xee   : > { %8285 = vst [vmem:[#allocation14_spill] sm:$0xff] %v4873_v23  ;;  %v3336_v13 = vand.u32 2147483647, %v598_v11  ;;  %v3338_v42 = vcvt.f32.s32 %v598_v11  ;;  %v644_v44 = vsub.f32 %v4793_v39, %v628_v61  ;;  %v3247_v35 = vsel %vm4843_vm4, %v3246_v55, %v586_v8 }
  0xef   : > { %v4877_v59 = vadd.f32 %v811_v29, %v4696_v56  ;;  %v619_v21 = vmul.f32 %v3247_v35, %v4573_v43  ;;  %v3341_v39 = vand.u32 2147483648, %v598_v11  ;;  %v588_v8 = vmul.f32 %v4530_v54, %v4861_v37 }
  0xf0   : > { %v3339_v22 = vcvt.s32.f32 %v3338_v42  ;;  %v823_v56 = vmul.f32 %v644_v44, %v644_v44  ;;  %v3238_v25 = vor.u32 %v3237_v63, %v3236_v26  ;;  %vm4900_vm6 = vcmp.lt.f32.partialorder %v3336_v13, 8388608.0 }
  0xf1   : > { %v635_v3 = vsub.f32 %v4796_v51, %v619_v21  ;;  %v3258_v2 = vcvt.f32.s32 %v588_v8  ;;  %v4909_v1 = vsub.f32 %v535_v31, %v4525_v49  ;;  %v4912_v29 = vsub.f32 %v543_v33, %v4525_v49 }
  0xf2   : > { %v4882_v57 = vpop.permute.xlu1 %546  ;;  %v3340_v52 = vand.u32 2147483647, %v3339_v22  ;;  %v3239_v51 = vsel %vm4885_vm5, %v3238_v25, %v585_v30  ;;  %v3256_v55 = vand.u32 2147483647, %v588_v8  ;;  %v3274_v13 = vcvt.f32.s32 %v590_v15 }
  0xf3   : > { %v4889_v6 = vpop.permute.xlu0 %554  ;;  %v4891_v16 = vpop.permute.xlu2 %665  ;;  %1248 = vperm.xlu2 %3969, %v4338_v0   ;;  %1244 = vperm.xlu1 %3968, %v4353_v5   ;;  %v4906_v0 = vadd.f32 %v823_v56, %v4806_v20  ;;  %v814_v5 = vmul.f32 %v635_v3, %v635_v3  ;;  %v618_v63 = vmul.f32 %v3239_v51, %v4573_v43  ;;  %v3259_v18 = vcvt.s32.f32 %v3258_v2 }
  0xf4   : > { %1284 = vperm.xlu0 %3970, %v4389_v14   ;;  %v3342_v61 = vor.u32 %v3341_v39, %v3340_v52  ;;  %v3261_v14 = vand.u32 2147483648, %v588_v8  ;;  %v3272_v42 = vand.u32 2147483647, %v590_v15  ;;  %v3277_v33 = vand.u32 2147483648, %v590_v15 }
  0xf5   : > { %8290 = vst [vmem:[#allocation15_spill] sm:$0xff] %v4906_v0  ;;  %v4918_v20 = vadd.f32 %v814_v5, %v4725_v41  ;;  %v634_v44 = vsub.f32 %v4827_v45, %v618_v63  ;;  %v3260_v30 = vand.u32 2147483647, %v3259_v18  ;;  %v3275_v21 = vcvt.s32.f32 %v3274_v13 }
  0xf6   : > { %v3343_v31 = vsel %vm4900_vm6, %v3342_v61, %v598_v11  ;;  %v3196_v26 = vand.u32 2147483647, %v4801_v60  ;;  %v3197_v22 = vand.u32 2147483648, %v4743_v17  ;;  %v591_v41 = vmul.f32 %v4530_v54, %v4909_v1 }
  0xf7   : > { %v631_v35 = vmul.f32 %v3343_v31, %v4573_v43  ;;  %v4932_v11 = vmul.f32 %v4530_v54, %v4912_v29  ;;  %v813_v45 = vmul.f32 %v634_v44, %v634_v44  ;;  %v3262_v39 = vor.u32 %v3261_v14, %v3260_v30 }
  0xf8   : > { %v3276_v3 = vand.u32 2147483647, %v3275_v21  ;;  %v810_v25 = vmul.f32 %v500_v38, %v500_v38  ;;  %vm3257_vm7 = vcmp.lt.f32.partialorder %v3256_v55, 8388608.0  ;;  %vm4937_vm8 = vcmp.lt.f32.partialorder %v3272_v42, 8388608.0 }
  0xf9   : > { %v647_v56 = vsub.f32 %v4855_v24, %v631_v35  ;;  %v3282_v10 = vcvt.f32.s32 %v591_v41  ;;  %v3263_v24 = vsel %vm3257_vm7, %v3262_v39, %v588_v8  ;;  %v3280_v38 = vand.u32 2147483647, %v591_v41 }
  0xfa   : > { %v4924_v34 = vpop.permute.xlu1 %558  ;;  %v3278_v51 = vor.u32 %v3277_v33, %v3276_v3  ;;  %v4952_v55 = vperm.slane %v4419_v19, 2  ;;  %v3298_v14 = vcvt.f32.s32 %v4932_v11  ;;  %v3285_v42 = vand.u32 2147483648, %v591_v41 }
  0xfb   : > { %1256 = vperm.xlu2 %3969, %v4368_v9   ;;  %1252 = vperm.xlu1 %3968, %v4350_v4   ;;  %v4941_v52 = vpop.permute.xlu2 %677  ;;  %v4946_v9 = vadd.f32 %v813_v45, %v4675_v62  ;;  %v826_v5 = vmul.f32 %v647_v56, %v647_v56  ;;  %v621_v4 = vmul.f32 %v3263_v24, %v4573_v43  ;;  %v3283_v61 = vcvt.s32.f32 %v3282_v10  ;;  %v8296_v10 = vld [vmem:[#allocation11_spill] sm:$0xff] }
  0xfc   : > { %v4943_v2 = vpop.permute.xlu0 %649  ;;  %v3279_v18 = vsel %vm4937_vm8, %v3278_v51, %v590_v15  ;;  %v3296_v62 = vand.u32 2147483647, %v4932_v11  ;;  %v3299_v33 = vcvt.s32.f32 %v3298_v14  ;;  %v3301_v44 = vand.u32 2147483648, %v4932_v11 }
  0xfd   : > { %v4954_v63 = vadd.f32 %v826_v5, %v810_v25  ;;  %v637_v8 = vsub.f32 %v4861_v37, %v621_v4  ;;  %v623_v13 = vmul.f32 %v3279_v18, %v4573_v43  ;;  %v3284_v31 = vand.u32 2147483647, %v3283_v61  ;;  %v8298_v5 = vld [vmem:[#allocation9_spill] sm:$0xff]  ;;  %v8301_v61 = vld [vmem:[#allocation12_spill] sm:$0xff] }
  0xfe   : > { %v4965_v19 = vsub.f32 %v4882_v57, %v4525_v49  ;;  %v4969_v15 = vsub.f32 %v4889_v6, %v4525_v49  ;;  %v3198_v35 = vor.u32 %v3197_v22, %v3196_v26  ;;  %vm3281_vm9 = vcmp.lt.f32.partialorder %v3280_v38, 8388608.0 }
  0xff   : > { %8293 = vst [vmem:[#allocation16_spill] sm:$0xff] %v4954_v63  ;;  %v816_v30 = vmul.f32 %v637_v8, %v637_v8  ;;  %v639_v37 = vsub.f32 %v4865_v40, %v623_v13  ;;  %v3286_v21 = vor.u32 %v3285_v42, %v3284_v31  ;;  %vm4975_vm10 = vcmp.lt.f32.partialorder %v3296_v62, 8388608.0 }
 0x100   : > { %v3300_v57 = vand.u32 2147483647, %v3299_v33  ;;  %v594_v6 = vmul.f32 %v4530_v54, %v4965_v19  ;;  %v4991_v25 = vstv %s4948_s27  ;;  %v596_v60 = vmul.f32 %v4530_v54, %v4969_v15 }
 0x101   : > { %v4983_v26 = vadd.f32 %v816_v30, %v4532_v58  ;;  %v818_v40 = vmul.f32 %v639_v37, %v639_v37  ;;  %v3287_v22 = vsel %vm3281_vm9, %v3286_v21, %v591_v41  ;;  %v8297_v58 = vand.u32 2147483647, %v8296_v10  ;;  %v8305_v37 = vld [vmem:[#allocation10_spill] sm:$0xff] }
 0x102   : > { %v624_v39 = vmul.f32 %v3287_v22, %v4573_v43  ;;  %v3302_v3 = vor.u32 %v3301_v44, %v3300_v57  ;;  %v8299_v24 = vand.u32 2147483648, %v8298_v5  ;;  %v3306_v51 = vcvt.f32.s32 %v594_v6 }
 0x103   : > { %1268 = vperm.xlu2 %3969, %v4380_v12   ;;  %v4973_v45 = vpop.permute.xlu1 %653  ;;  %1264 = vperm.xlu1 %3968, %v4362_v7   ;;  %v4987_v12 = vsub.f32 %v4848_v48, %v4952_v55  ;;  %v496_v7 = vsub.f32 %v4454_v50, %v4593_v32  ;;  %v5004_v48 = vadd.f32 %v818_v40, %v4730_v27  ;;  %v5006_v4 = vpop.permute.xlu2 %689  ;;  %v8302_v62 = vand.u32 2147483647, %v4743_v17 }
 0x104   : > { %v5001_v41 = vor.u32 %v8299_v24, %v8297_v58  ;;  %v5008_v38 = vpop.permute.xlu0 %669  ;;  %v495_v18 = vsub.f32 %v8301_v61, %v4739_v46  ;;  %v640_v32 = vsub.f32 %v4909_v1, %v624_v39  ;;  %v3303_v27 = vsel %vm4975_vm10, %v3302_v3, %v4932_v11 }
 0x105   : > { %8300 = vst [vmem:[#allocation11_spill] sm:$0xff] %v5004_v48  ;;  %vm5014_vm11 = vcmp.lt.f32.partialorder %v8302_v62, 8388608.0  ;;  %v626_v8 = vmul.f32 %v3303_v27, %v4573_v43  ;;  %v5028_v46 = vmul.f32 %v4991_v25, %v4987_v12  ;;  %v3307_v13 = vcvt.s32.f32 %v3306_v51  ;;  %v8313_v27 = vld [vmem:[#allocation8_spill] sm:$0xff]  ;;  %v5248_v48 = vld [vmem:[%s4325_s24 + $0x38] sm:$0xff] }
 0x106   : > { %v3199_v14 = vsel %vm5014_vm11, %v3198_v35, %v4743_v17  ;;  %v819_v31 = vmul.f32 %v640_v32, %v640_v32  ;;  %v3304_v42 = vand.u32 2147483647, %v594_v6  ;;  %v3322_v33 = vcvt.f32.s32 %v596_v60  ;;  %v5036_v35 = vld [vmem:[%s4325_s24 + $0x60] sm:$0xff]  ;;  %8326 = vst [vmem:[#allocation21_spill] sm:$0xff] %v5248_v48 }
 0x107   : > { %v5032_v1 = vsub.f32 %v4891_v16, %v4952_v55  ;;  %v642_v11 = vsub.f32 %v4912_v29, %v626_v8  ;;  %v3308_v44 = vand.u32 2147483647, %v3307_v13  ;;  %v3309_v30 = vand.u32 2147483648, %v594_v6  ;;  %v5047_v16 = vld [vmem:[%s4325_s24 + $0x58] sm:$0xff] }
 0x108   : > { %v3320_v17 = vand.u32 2147483647, %v596_v60  ;;  %v5040_v21 = vadd.f32 %v819_v31, %v8305_v37  ;;  %v3323_v56 = vcvt.s32.f32 %v3322_v33  ;;  %v3325_v57 = vand.u32 2147483648, %v596_v60  ;;  %8306 = vst [vmem:[#allocation9_spill] sm:$0xff] %v5047_v16 }
 0x109   : > { %v5044_v40 = vsub.f32 %v4924_v34, %v4525_v49  ;;  %v805_v29 = vmul.f32 %v495_v18, %v495_v18  ;;  %v482_v22 = vmul.f32 %v3199_v14, %v4451_v47  ;;  %v821_v39 = vmul.f32 %v642_v11, %v642_v11 }
 0x10a   : > { %v3310_v3 = vor.u32 %v3309_v30, %v3308_v44  ;;  %v3362_v58 = vcvt.f32.s32 %v5028_v46  ;;  %vm3305_vm12 = vcmp.lt.f32.partialorder %v3304_v42, 8388608.0  ;;  %v3324_v24 = vand.u32 2147483647, %v3323_v56  ;;  %v5082_v30 = vld [vmem:[%s4325_s24 + $0x78] sm:$0xff] }
 0x10b   : > { %1280 = vperm.xlu2 %3969, %v5036_v35   ;;  %1276 = vperm.xlu1 %3968, %v5047_v16   ;;  %v5051_v10 = vpop.permute.xlu1 %661  ;;  %v597_v51 = vmul.f32 %v4530_v54, %v5044_v40  ;;  %v5056_v49 = vadd.f32 %v821_v39, %v805_v29  ;;  %vm3321_vm13 = vcmp.lt.f32.partialorder %v3320_v17, 8388608.0  ;;  %v5060_v61 = vmul.f32 %v4991_v25, %v5032_v1  ;;  %v5069_v14 = vpop.permute.xlu2 %701 }
 0x10c   : > { %v3311_v34 = vsel %vm3305_vm12, %v3310_v3, %v594_v6  ;;  %v3326_v62 = vor.u32 %v3325_v57, %v3324_v24  ;;  %v806_v50 = vmul.f32 %v496_v7, %v496_v7  ;;  %v8308_v32 = vand.u32 2147483647, %v8298_v5  ;;  %v5071_v6 = vpop.permute.xlu0 %681 }
 0x10d   : > { %8307 = vst [vmem:[#allocation12_spill] sm:$0xff] %v5056_v49  ;;  %v627_v18 = vmul.f32 %v3311_v34, %v4573_v43  ;;  %v3330_v54 = vcvt.f32.s32 %v597_v51  ;;  %v498_v13 = vsub.f32 %v4717_v36, %v482_v22  ;;  %v3363_v42 = vcvt.s32.f32 %v3362_v58  ;;  %v5090_v36 = vld [vmem:[%s4325_s24 + $0x70] sm:$0xff] }
 0x10e   : > { %vm5065_vm14 = vcmp.lt.f32.partialorder %v8308_v32, 8388608.0  ;;  %v3327_v31 = vsel %vm3321_vm13, %v3326_v62, %v596_v60  ;;  %v3378_v11 = vcvt.f32.s32 %v5060_v61  ;;  %v3328_v37 = vand.u32 2147483647, %v597_v51  ;;  %8311 = vst [vmem:[#allocation10_spill] sm:$0xff] %v5090_v36 }
 0x10f   : > { %v3207_v8 = vsel %vm5065_vm14, %v5001_v41, %v8298_v5  ;;  %v643_v7 = vsub.f32 %v4965_v19, %v627_v18  ;;  %v629_v33 = vmul.f32 %v3327_v31, %v4573_v43  ;;  %v3331_v44 = vcvt.s32.f32 %v3330_v54 }
 0x110   : > { %v5087_v5 = vsub.f32 %v4943_v2, %v4952_v55  ;;  %v3333_v41 = vand.u32 2147483648, %v597_v51  ;;  %v4217_v56 = vmov 4   ;;  %v483_v57 = vmul.f32 %v3207_v8, %v4451_v47  ;;  %v5102_v2 = vld [vmem:[%s4325_s24] sm:$0xff] }
 0x111   : > { %v822_v17 = vmul.f32 %v643_v7, %v643_v7  ;;  %v645_v19 = vsub.f32 %v4969_v15, %v629_v33  ;;  %v3332_v60 = vand.u32 2147483647, %v3331_v44  ;;  %3971 = vset.pattern.permute.xlu0 %v4217_v56  ;;  %v808_v29 = vmul.f32 %v498_v13, %v498_v13 }
 0x112   : > { %v5099_v39 = vmul.f32 %v4991_v25, %v5087_v5  ;;  %1329 = vperm.xlu0 %3971, %v5102_v2   ;;  %v3364_v15 = vand.u32 2147483647, %v3363_v42  ;;  %v3365_v3 = vand.u32 2147483648, %v5028_v46  ;;  %v3360_v47 = vand.u32 2147483647, %v5028_v46 }
 0x113   : > { %1292 = vperm.xlu2 %3969, %v5082_v30   ;;  %1288 = vperm.xlu1 %3968, %v5090_v36   ;;  %v5095_v22 = vadd.f32 %v822_v17, %v806_v50  ;;  %v824_v58 = vmul.f32 %v645_v19, %v645_v19  ;;  %v3334_v24 = vor.u32 %v3333_v41, %v3332_v60  ;;  %v5108_v34 = vpop.permute.xlu1 %673  ;;  %v3379_v18 = vcvt.s32.f32 %v3378_v11  ;;  %v5135_v17 = vld [vmem:[%s4325_s24 + $0x10] sm:$0xff]  ;;  %v5145_v41 = vld [vmem:[%s4325_s24 + $0x8] sm:$0xff] }
 0x114   : > { %vm3329_vm15 = vcmp.lt.f32.partialorder %v3328_v37, 8388608.0  ;;  %v3346_v62 = vcvt.f32.s32 %v5099_v39  ;;  %v499_v54 = vsub.f32 %v8313_v27, %v483_v57  ;;  %v3366_v7 = vor.u32 %v3365_v3, %v3364_v15  ;;  %v5124_v33 = vpop.permute.xlu0 %693  ;;  %v5126_v11 = vpop.permute.xlu2 %876  ;;  %v5154_v15 = vld [vmem:[%s4325_s24 + $0x28] sm:$0xff] }
 0x115   : > { %v5112_v50 = vadd.f32 %v824_v58, %v808_v29  ;;  %v3335_v32 = vsel %vm3329_vm15, %v3334_v24, %v597_v51  ;;  %v5118_v31 = vsub.f32 %v4973_v45, %v4952_v55  ;;  %v5122_v42 = vsub.f32 %v5008_v38, %v4952_v55  ;;  %8316 = vst [vmem:[#allocation8_spill] sm:$0xff] %v5154_v15 }
 0x116   : > { %v630_v8 = vmul.f32 %v3335_v32, %v4573_v43  ;;  %v3347_v13 = vcvt.s32.f32 %v3346_v62  ;;  %vm5128_vm0 = vcmp.lt.f32.partialorder %v3360_v47, 8388608.0  ;;  %v3380_v43 = vand.u32 2147483647, %v3379_v18 }
 0x117   : > { %8312 = vst [vmem:[#allocation17_spill] sm:$0xff] %v5112_v50  ;;  %v3381_v44 = vand.u32 2147483648, %v5060_v61  ;;  %v3376_v38 = vand.u32 2147483647, %v5060_v61  ;;  %v3349_v19 = vand.u32 2147483648, %v5099_v39  ;;  %v5142_v60 = vmul.f32 %v4991_v25, %v5118_v31 }
 0x118   : > { %v646_v45 = vsub.f32 %v5044_v40, %v630_v8  ;;  %v3348_v37 = vand.u32 2147483647, %v3347_v13  ;;  %v809_v40 = vmul.f32 %v499_v54, %v499_v54  ;;  %v3344_v57 = vand.u32 2147483647, %v5099_v39 }
 0x119   : > { %v5151_v29 = vmul.f32 %v4991_v25, %v5122_v42  ;;  %v3367_v3 = vsel %vm5128_vm0, %v3366_v7, %v5028_v46  ;;  %v5161_v58 = vstv %s5105_s28  ;;  %v5165_v24 = vsub.f32 %v4941_v52, %v4952_v55 }
 0x11a   : > { %1349 = vperm.xlu0 %3971, %v5154_v15   ;;  %v3382_v47 = vor.u32 %v3381_v44, %v3380_v43  ;;  %v3354_v62 = vcvt.f32.s32 %v5142_v60  ;;  %vm5170_vm1 = vcmp.lt.f32.partialorder %v3376_v38, 8388608.0  ;;  %v3350_v27 = vor.u32 %v3349_v19, %v3348_v37  ;;  %v5194_v44 = vld [vmem:[%s4325_s24 + $0x20] sm:$0xff] }
 0x11b   : > { %3973 = vset.pattern.permute.xlu2 %v4217_v56  ;;  %3972 = vset.pattern.permute.xlu1 %v4217_v56  ;;  %v825_v56 = vmul.f32 %v646_v45, %v646_v45  ;;  %v5174_v54 = vpop.permute.xlu1 %685  ;;  %v765_v46 = vmul.f32 %v3367_v3, %v5161_v58  ;;  %vm5177_vm2 = vcmp.lt.f32.partialorder %v3344_v57, 8388608.0  ;;  %v3386_v13 = vcvt.f32.s32 %v5151_v29  ;;  %8322 = vst [vmem:[#allocation19_spill] sm:$0xff] %v5194_v44 }
 0x11c   : > { %1337 = vperm.xlu2 %3973, %v5135_v17   ;;  %1333 = vperm.xlu1 %3972, %v5145_v41   ;;  %v3355_v52 = vcvt.s32.f32 %v3354_v62  ;;  %v5184_v7 = vmul.f32 %v4991_v25, %v5165_v24  ;;  %v3383_v51 = vsel %vm5170_vm1, %v3382_v47, %v5060_v61  ;;  %v5191_v43 = vsub.f32 %v5051_v10, %v4952_v55  ;;  %v5200_v37 = vpop.permute.xlu0 %705  ;;  %v5202_v19 = vpop.permute.xlu2 %888 }
 0x11d   : > { %v5167_v18 = vadd.f32 %v825_v56, %v809_v40  ;;  %v3351_v45 = vsel %vm5177_vm2, %v3350_v27, %v5099_v39  ;;  %v3387_v38 = vcvt.s32.f32 %v3386_v13  ;;  %v5205_v40 = vld [vmem:[%s4325_s24 + $0x18] sm:$0xff]  ;;  %v781_v10 = vsub.f32 %v4987_v12, %v765_v46  ;;  %v5210_v56 = vld [vmem:[%s4325_s24 + $0x40] sm:$0xff] }
 0x11e   : > { %v3356_v61 = vand.u32 2147483647, %v3355_v52  ;;  %8323 = vst [vmem:[#allocation20_spill] sm:$0xff] %v5210_v56  ;;  %v767_v57 = vmul.f32 %v3383_v51, %v5161_v58  ;;  %v3402_v39 = vcvt.f32.s32 %v5184_v7  ;;  %v733_v3 = vmul.f32 %v4991_v25, %v5191_v43 }
 0x11f   : > { %8317 = vst [vmem:[#allocation18_spill] sm:$0xff] %v5167_v18  ;;  %v5219_v47 = vsub.f32 %v5071_v6, %v4952_v55  ;;  %v763_v62 = vmul.f32 %v3351_v45, %v5161_v58  ;;  %v3352_v12 = vand.u32 2147483647, %v5142_v60  ;;  %v3357_v32 = vand.u32 2147483648, %v5142_v60 }
 0x120   : > { %v3384_v27 = vand.u32 2147483647, %v5151_v29  ;;  %v3388_v46 = vand.u32 2147483647, %v3387_v38  ;;  %v3389_v8 = vand.u32 2147483648, %v5151_v29  ;;  %v3370_v52 = vcvt.f32.s32 %v733_v3 }
 0x121   : > { %v5228_v13 = vsub.f32 %v5108_v34, %v4952_v55  ;;  %v5230_v51 = vmul.f32 %v781_v10, %v781_v10  ;;  %v3358_v6 = vor.u32 %v3357_v32, %v3356_v61  ;;  %v5234_v45 = vmul.f32 %v4991_v25, %v5219_v47 }
 0x122   : > { %1361 = vperm.xlu0 %3971, %v5210_v56   ;;  %v783_v38 = vsub.f32 %v5032_v1, %v767_v57  ;;  %v3400_v49 = vand.u32 2147483647, %v5184_v7  ;;  %v3403_v56 = vcvt.s32.f32 %v3402_v39  ;;  %v3405_v63 = vand.u32 2147483648, %v5184_v7 }
 0x123   : > { %v5236_v50 = vpop.permute.xlu1 %697  ;;  %v779_v34 = vsub.f32 %v5087_v5, %v763_v62  ;;  %vm5242_vm3 = vcmp.lt.f32.partialorder %v3352_v12, 8388608.0  ;;  %v3371_v61 = vcvt.s32.f32 %v3370_v52  ;;  %v3410_v32 = vcvt.f32.s32 %v5234_v45  ;;  %v5260_v62 = vld [vmem:[%s4325_s24 + $0x30] sm:$0xff] }
 0x124   : > { %1345 = vperm.xlu2 %3973, %v5194_v44   ;;  %1341 = vperm.xlu1 %3972, %v5205_v40   ;;  %vm5251_vm4 = vcmp.lt.f32.partialorder %v3384_v27, 8388608.0  ;;  %v3390_v57 = vor.u32 %v3389_v8, %v3388_v46  ;;  %v3368_v39 = vand.u32 2147483647, %v733_v3  ;;  %v5257_v5 = vmul.f32 %v4991_v25, %v5228_v13  ;;  %v5273_v18 = vpop.permute.xlu2 %896 }
 0x125   : > { %v3359_v12 = vsel %vm5242_vm3, %v3358_v6, %v5142_v60  ;;  %v3372_v52 = vand.u32 2147483647, %v3371_v61  ;;  %v3411_v27 = vcvt.s32.f32 %v3410_v32  ;;  %v3404_v0 = vand.u32 2147483647, %v3403_v56  ;;  %v5275_v44 = vpop.permute.xlu0 %880 }
 0x126   : > { %v5269_v46 = vsub.f32 %v5006_v4, %v4952_v55  ;;  %v3413_v8 = vand.u32 2147483648, %v5234_v45  ;;  %v3394_v15 = vcvt.f32.s32 %v5257_v5  ;;  %v3408_v6 = vand.u32 2147483647, %v5234_v45 }
 0x127   : > { %v3412_v10 = vand.u32 2147483647, %v3411_v27  ;;  %v5280_v56 = vsub.f32 %v5124_v33, %v4952_v55  ;;  %v843_v61 = vmul.f32 %v779_v34, %v779_v34  ;;  %v764_v4 = vmul.f32 %v3359_v12, %v5161_v58  ;;  %v5316_v27 = vld [vmem:[%s4325_s24 + $0x50] sm:$0xff] }
 0x128   : > { %v3391_v32 = vsel %vm5251_vm4, %v3390_v57, %v5151_v29  ;;  %vm3369_vm5 = vcmp.lt.f32.partialorder %v3368_v39, 8388608.0  ;;  %v3395_v23 = vcvt.s32.f32 %v3394_v15  ;;  %v5298_v12 = vmul.f32 %v783_v38, %v783_v38  ;;  %8334 = vst [vmem:[#allocation23_spill] sm:$0xff] %v5316_v27 }
 0x129   : > { %vm5300_vm6 = vcmp.lt.f32.partialorder %v3400_v49, 8388608.0  ;;  %v5307_v1 = vmul.f32 %v4991_v25, %v5269_v46  ;;  %v768_v57 = vmul.f32 %v3391_v32, %v5161_v58  ;;  %vm5310_vm7 = vcmp.lt.f32.partialorder %v3408_v6, 8388608.0  ;;  %v5328_v6 = vld [vmem:[%s4325_s24 + $0x48] sm:$0xff] }
 0x12a   : > { %1373 = vperm.xlu0 %3971, %v5047_v16   ;;  %v5319_v49 = vor.u32 %v3405_v63, %v3404_v0 }
 0x12b   : > { %v5296_v34 = vpop.permute.xlu1 %709 }
 0x12c   : > { %1357 = vperm.xlu2 %3973, %v5248_v48   ;;  %1353 = vperm.xlu1 %3972, %v5260_v62   ;;  %v3373_v48 = vand.u32 2147483648, %v733_v3 }
 0x12e   : > { %v3374_v60 = vor.u32 %v3373_v48, %v3372_v52  ;;  %v5288_v48 = vmul.f32 %v4991_v25, %v5280_v56  ;;  %v5291_v52 = vld [vmem:[%s4330_s9] sm:$0xff] }
 0x12f   : > { %8329 = vst [vmem:[#allocation22_spill] sm:$0xff] %v5291_v52  ;;  %v5294_v33 = vperm.slane %v5291_v52, 6  ;;  %v5332_v52 = vadd.f32 %v843_v61, %v4877_v59  ;;  %v3397_v59 = vand.u32 2147483648, %v5257_v5 }
 0x130   : > { %v3375_v16 = vsel %vm3369_vm5, %v3374_v60, %v733_v3  ;;  %v3414_v3 = vor.u32 %v3413_v8, %v3412_v10  ;;  %v3434_v38 = vcvt.f32.s32 %v5288_v48  ;;  %v5324_v8 = vsub.f32 %v5069_v14, %v4952_v55 }
 0x131   : > { %v766_v15 = vmul.f32 %v3375_v16, %v5161_v58  ;;  %v780_v16 = vsub.f32 %v5118_v31, %v764_v4  ;;  %v3396_v10 = vand.u32 2147483647, %v3395_v23  ;;  %vm940_vm8 = vcmp.ne.f32.partialorder %v5126_v11, %v5294_v33 }
 0x132   : > { %v3435_v32 = vcvt.s32.f32 %v3434_v38  ;;  %1385 = vperm.xlu0 %3971, %v5090_v36   ;;  %v3415_v63 = vsel %vm5310_vm7, %v3414_v3, %v5234_v45  ;;  %v3392_v14 = vand.u32 2147483647, %v5257_v5  ;;  %v5343_v31 = vsub.f32 %v5174_v54, %v4952_v55  ;;  %v5362_v54 = vpop.permute.xlu2 %908 }
 0x133   : > { %v782_v60 = vsub.f32 %v5191_v43, %v766_v15  ;;  %v784_v23 = vsub.f32 %v5122_v42, %v768_v57  ;;  %v3432_v43 = vand.u32 2147483647, %v5288_v48  ;;  %vm956_vm9 = vcmp.lt.f32.partialorder %v5332_v52, 0.81  ;;  %v5364_v15 = vpop.permute.xlu0 %900 }
 0x134   : > { %1369 = vperm.xlu2 %3973, %v5316_v27   ;;  %1365 = vperm.xlu1 %3972, %v5328_v6   ;;  %v3436_v11 = vand.u32 2147483647, %v3435_v32  ;;  %v3437_v61 = vand.u32 2147483648, %v5288_v48  ;;  %vm5350_vm10 = vmand %vm940_vm8, %vm956_vm9  ;;  %v8335_v4 = vmov 0  ;;  %v5356_v45 = vmul.f32 %v4991_v25, %v5343_v31  ;;  %v5381_v3 = vpop.permute.xlu1 %884 }
 0x135   : > { %v846_v0 = vmul.f32 %v782_v60, %v782_v60  ;;  %v8336_v4 = vsel %vm5350_vm10, 4294967295, %v8335_v4  ;;  %v5360_v42 = vsub.f32 %v5200_v37, %v4952_v55  ;;  %v771_v57 = vmul.f32 %v3415_v63, %v5161_v58 }
 0x136   : > { %8337 = vst [vmem:[#allocation24_spill] sm:$0xff] %v8336_v4  ;;  %v3398_v39 = vor.u32 %v3397_v59, %v3396_v10  ;;  %v3407_v60 = vsel %vm5300_vm6, %v5319_v49, %v5184_v7  ;;  %v3426_v37 = vcvt.f32.s32 %v5307_v1  ;;  %v3418_v32 = vcvt.f32.s32 %v5356_v45  ;;  %v5390_v7 = vld [vmem:[%s4325_s24 + $0x68] sm:$0xff] }
 0x137   : > { %v5369_v38 = vadd.f32 %v846_v0, %v4918_v20  ;;  %v5379_v4 = vmul.f32 %v4991_v25, %v5360_v42  ;;  %v844_v63 = vmul.f32 %v780_v16, %v780_v16  ;;  %v848_v10 = vmul.f32 %v784_v23, %v784_v23  ;;  %8338 = vst [vmem:[#allocation25_spill] sm:$0xff] %v5390_v7 }
 0x138   : > { %v5385_v20 = vmul.f32 %v4991_v25, %v5324_v8  ;;  %vm943_vm11 = vcmp.ne.f32.partialorder %v5202_v19, %v5294_v33  ;;  %vm5393_vm12 = vcmp.lt.f32.partialorder %v3392_v14, 8388608.0  ;;  %vm5397_vm13 = vcmp.lt.f32.partialorder %v3432_v43, 8388608.0 }
 0x139   : > { %v3438_v16 = vor.u32 %v3437_v61, %v3436_v11  ;;  %v3419_v0 = vcvt.s32.f32 %v3418_v32  ;;  %v787_v23 = vsub.f32 %v5219_v47, %v771_v57  ;;  %v3399_v59 = vsel %vm5393_vm12, %v3398_v39, %v5257_v5 }
 0x13a   : > { %v3458_v36 = vcvt.f32.s32 %v5379_v4  ;;  %vm959_vm14 = vcmp.lt.f32.partialorder %v5369_v38, 0.81  ;;  %v3416_v14 = vand.u32 2147483647, %v5356_v45  ;;  %v8343_v11 = vmov 0 }
 0x13b   : > { %v3420_v43 = vand.u32 2147483647, %v3419_v0  ;;  %vm5413_vm15 = vmand %vm943_vm11, %vm959_vm14  ;;  %v5419_v47 = vsub.f32 %v5236_v50, %v4952_v55  ;;  %v3456_v5 = vand.u32 2147483647, %v5379_v4  ;;  %v3461_v57 = vand.u32 2147483648, %v5379_v4  ;;  %v5434_v50 = vpop.permute.xlu2 %920 }
 0x13c   : > { %1381 = vperm.xlu2 %3973, %v5390_v7   ;;  %1377 = vperm.xlu1 %3972, %v5036_v35   ;;  %v3421_v7 = vand.u32 2147483648, %v5356_v45  ;;  %v8344_v11 = vsel %vm5413_vm15, 4294967295, %v8343_v11  ;;  %v3459_v61 = vcvt.s32.f32 %v3458_v36  ;;  %v5424_v39 = vadd.f32 %v848_v10, %v4983_v26 }
 0x13d   : > { %8345 = vst [vmem:[#allocation26_spill] sm:$0xff] %v8344_v11  ;;  %v769_v32 = vmul.f32 %v3399_v59, %v5161_v58  ;;  %v3439_v19 = vsel %vm5397_vm13, %v3438_v16, %v5288_v48  ;;  %v5432_v0 = vmul.f32 %v4991_v25, %v5419_v47  ;;  %v5436_v11 = vpop.permute.xlu0 %912  ;;  %v3427_v36 = vcvt.s32.f32 %v3426_v37  ;;  %v5451_v37 = vpop.permute.xlu1 %892 }
 0x13e   : > { %v3422_v29 = vor.u32 %v3421_v7, %v3420_v43  ;;  %v3460_v27 = vand.u32 2147483647, %v3459_v61  ;;  %vm945_vm0 = vcmp.ne.f32.partialorder %v5273_v18, %v5294_v33  ;;  %vm961_vm1 = vcmp.lt.f32.partialorder %v5424_v39, 0.81 }
 0x13f   : > { %v3450_v26 = vcvt.f32.s32 %v5385_v20  ;;  %v851_v10 = vmul.f32 %v787_v23, %v787_v23  ;;  %vm5442_vm2 = vcmp.lt.f32.partialorder %v3416_v14, 8388608.0  ;;  %v3442_v7 = vcvt.f32.s32 %v5432_v0  ;;  %vm5447_vm3 = vmand %vm945_vm0, %vm961_vm1 }
 0x140   : > { %v774_v16 = vmul.f32 %v3439_v19, %v5161_v58  ;;  %v3423_v18 = vsel %vm5442_vm2, %v3422_v29, %v5356_v45  ;;  %vm5457_vm4 = vcmp.lt.f32.partialorder %v3456_v5, 8388608.0  ;;  %v3462_v59 = vor.u32 %v3461_v57, %v3460_v27 }
 0x141   : > { %v785_v14 = vsub.f32 %v5228_v13, %v769_v32  ;;  %v3443_v43 = vcvt.s32.f32 %v3442_v7  ;;  %v860_v61 = vadd.f32 %v844_v63, %v4701_v53  ;;  %vm941_vm5 = vcmp.ne.f32.partialorder %v5275_v44, %v5294_v33 }
 0x142   : > { %v770_v19 = vmul.f32 %v3407_v60, %v5161_v58  ;;  %v3429_v48 = vand.u32 2147483648, %v5307_v1  ;;  %v3440_v45 = vand.u32 2147483647, %v5432_v0  ;;  %v3445_v5 = vand.u32 2147483648, %v5432_v0 }
 0x143   : > { %v772_v27 = vmul.f32 %v3423_v18, %v5161_v58  ;;  %v3463_v13 = vsel %vm5457_vm4, %v3462_v59, %v5379_v4  ;;  %v3444_v53 = vand.u32 2147483647, %v3443_v43  ;;  %vm957_vm6 = vcmp.lt.f32.partialorder %v860_v61, 0.81  ;;  %v5486_v23 = vpop.permute.xlu2 %932 }
 0x144   : > { %1389 = vperm.xlu1 %3972, %v5082_v30   ;;  %v3428_v63 = vand.u32 2147483647, %v3427_v36  ;;  %v790_v44 = vsub.f32 %v5280_v56, %v774_v16  ;;  %vm5475_vm7 = vmand %vm941_vm5, %vm957_vm6  ;;  %v5481_v60 = vsub.f32 %v5296_v34, %v4952_v55  ;;  %v3451_v32 = vcvt.s32.f32 %v3450_v26 }
 0x145   : > { %v849_v29 = vmul.f32 %v785_v14, %v785_v14  ;;  %v3446_v7 = vor.u32 %v3445_v5, %v3444_v53  ;;  %v4218_v18 = vmov 5   ;;  %v5484_v4 = vadd.f32 %v851_v10, %v5040_v21  ;;  %v5512_v16 = vpop.permute.xlu1 %904 }
 0x146   : > { %3975 = vset.pattern.permute.xlu0 %v4218_v18  ;;  %3974 = vset.pattern.permute.xlu2 %v4218_v18  ;;  %v8354_v56 = vand.u32 2147483647, %v5307_v1  ;;  %v777_v55 = vmul.f32 %v3463_v13, %v5161_v58  ;;  %v745_v34 = vmul.f32 %v4991_v25, %v5481_v60  ;;  %vm948_vm9 = vcmp.ne.f32.partialorder %v5362_v54, %v5294_v33 }
 0x147   : > { %1414 = vperm.xlu0 %3975, %v5145_v41   ;;  %1410 = vperm.xlu2 %3974, %v5102_v2   ;;  %v5502_v21 = vsub.f32 %v5165_v24, %v770_v19  ;;  %v788_v26 = vsub.f32 %v5343_v31, %v772_v27  ;;  %vm5505_vm11 = vcmp.lt.f32.partialorder %v3440_v45, 8388608.0  ;;  %vm964_vm12 = vcmp.lt.f32.partialorder %v5484_v4, 0.81  ;;  %v5510_v41 = vpop.permute.xlu0 %924 }
 0x148   : > { %vm5490_vm8 = vcmp.lt.f32.partialorder %v8354_v56, 8388608.0  ;;  %v3430_v25 = vor.u32 %v3429_v48, %v3428_v63  ;;  %v854_v59 = vmul.f32 %v790_v44, %v790_v44  ;;  %v3447_v2 = vsel %vm5505_vm11, %v3446_v7, %v5432_v0  ;;  %vm5517_vm13 = vmand %vm948_vm9, %vm964_vm12 }
 0x149   : > { %v3466_v24 = vcvt.f32.s32 %v745_v34  ;;  %v3448_v31 = vand.u32 2147483647, %v5385_v20  ;;  %v3452_v14 = vand.u32 2147483647, %v3451_v32  ;;  %v5522_v43 = vmax.f32 %v860_v61, 0.0001 }
 0x14a   : > { %v865_v19 = vadd.f32 %v849_v29, %v4831_v28  ;;  %v3453_v48 = vand.u32 2147483648, %v5385_v20  ;;  %v793_v45 = vsub.f32 %v5360_v42, %v777_v55  ;;  %vm946_vm14 = vcmp.ne.f32.partialorder %v5364_v15, %v5294_v33  ;;  %v8371_v55 = vld [vmem:[#allocation19_spill] sm:$0xff] }
 0x14b   : > { %v3467_v5 = vcvt.s32.f32 %v3466_v24  ;;  %v852_v0 = vmul.f32 %v788_v26, %v788_v26  ;;  %v775_v27 = vmul.f32 %v3447_v2, %v5161_v58  ;;  %v3464_v13 = vand.u32 2147483647, %v745_v34  ;;  %v5547_v44 = vpop.permute.xlu2 %1236  ;;  %v8376_v24 = vld [vmem:[#allocation13_spill] sm:$0xff] }
 0x14c   : > { %3976 = vset.pattern.permute.xlu1 %v4218_v18  ;;  %vm962_vm0 = vcmp.lt.f32.partialorder %v865_v19, 0.81  ;;  %v3469_v53 = vand.u32 2147483648, %v745_v34  ;;  %v5536_v63 = vadd.f32 %v854_v59, %v5095_v22  ;;  %vm951_vm2 = vcmp.ne.f32.partialorder %v5434_v50, %v5294_v33  ;;  %v8366_v50 = vld [vmem:[#allocation14_spill] sm:$0xff] }
 0x14d   : > { %1418 = vperm.xlu1 %3976, %v5135_v17   ;;  %v3468_v61 = vand.u32 2147483647, %v3467_v5  ;;  %vm5531_vm1 = vmand %vm946_vm14, %vm962_vm0  ;;  %v3431_v17 = vsel %vm5490_vm8, %v3430_v25, %v5307_v1  ;;  %v3454_v42 = vor.u32 %v3453_v48, %v3452_v14  ;;  %v5544_v15 = vmax.f32 %v5332_v52, 0.0001  ;;  %v5562_v18 = vpop.permute.xlu1 %916  ;;  %v8375_v25 = vld [vmem:[#allocation18_spill] sm:$0xff] }
 0x14e   : > { %3977 = vrsqrt.f32 %v5522_v43  ;;  %v857_v32 = vmul.f32 %v793_v45, %v793_v45  ;;  %vm967_vm4 = vcmp.lt.f32.partialorder %v5536_v63, 0.81  ;;  %v861_v22 = vadd.f32 %v5230_v51, %v4946_v9 }
 0x14f   : > { %v3470_v29 = vor.u32 %v3469_v53, %v3468_v61  ;;  %1434 = vperm.xlu0 %3975, %v5260_v62   ;;  %1422 = vperm.xlu2 %3974, %v5205_v40   ;;  %v791_v1 = vsub.f32 %v5419_v47, %v775_v27  ;;  %vm3465_vm5 = vcmp.lt.f32.partialorder %v3464_v13, 8388608.0  ;;  %vm5555_vm6 = vmand %vm951_vm2, %vm967_vm4  ;;  %v8363_v52 = vmov 0  ;;  %v5583_v36 = vpop.permute.xlu0 %936  ;;  %v8385_v27 = vld [vmem:[#allocation11_spill] sm:$0xff] }
 0x150   : > { %v8364_v52 = vsel %vm5555_vm6, 4294967295, %v8363_v52  ;;  %vm942_vm8 = vcmp.ne.f32.partialorder %v5381_v3, %v5294_v33  ;;  %v868_v7 = vadd.f32 %v852_v0, %v8366_v50  ;;  %vm5564_vm9 = vcmp.lt.f32.partialorder %v3448_v31, 8388608.0 }
 0x151   : > { %8365 = vst [vmem:[#allocation27_spill] sm:$0xff] %v8364_v52  ;;  %v5569_v40 = vmax.f32 %v5369_v38, 0.0001  ;;  %v3471_v51 = vsel %vm3465_vm5, %v3470_v29, %v745_v34  ;;  %vm958_vm11 = vcmp.lt.f32.partialorder %v861_v22, 0.81  ;;  %v3455_v62 = vsel %vm5564_vm9, %v3454_v42, %v5385_v20  ;;  %v8389_v42 = vld [vmem:[#allocation21_spill] sm:$0xff] }
 0x152   : > { %v778_v47 = vmul.f32 %v3471_v51, %v5161_v58  ;;  %vm5575_vm12 = vmand %vm942_vm8, %vm958_vm11  ;;  %v5579_v56 = vmax.f32 %v861_v22, 0.0001  ;;  %vm949_vm14 = vcmp.ne.f32.partialorder %v5436_v11, %v5294_v33  ;;  %v773_v38 = vmul.f32 %v3431_v17, %v5161_v58  ;;  %v8390_v29 = vld [vmem:[#allocation16_spill] sm:$0xff] }
 0x153   : > { %3979 = vrsqrt.f32 %v5544_v15  ;;  %vm965_vm0 = vcmp.lt.f32.partialorder %v868_v7, 0.81  ;;  %v855_v34 = vmul.f32 %v791_v1, %v791_v1  ;;  %v8372_v10 = vmov 0  ;;  %v5610_v14 = vpop.permute.xlu2 %1248 }
 0x154   : > { %v5588_v20 = vpop.eup %3977  ;;  %v794_v26 = vsub.f32 %v5481_v60, %v778_v47  ;;  %vm5591_vm2 = vmand %vm949_vm14, %vm965_vm0  ;;  %v5596_v11 = vadd.f32 %v857_v32, %v8375_v25  ;;  %vm954_vm4 = vcmp.ne.f32.partialorder %v5486_v23, %v5294_v33  ;;  %v850_v59 = vmul.f32 %v5502_v21, %v5502_v21 }
 0x155   : > { %1426 = vperm.xlu1 %3976, %v8371_v55   ;;  %v8373_v10 = vsel %vm5591_vm2, 4294967295, %v8372_v10  ;;  %v776_v2 = vmul.f32 %v3455_v62, %v5161_v58  ;;  %3981 = vrsqrt.f32 %v5569_v40  ;;  %v863_v60 = vadd.f32 %v5298_v12, %v8376_v24  ;;  %v8380_v12 = vld [vmem:[#allocation8_spill] sm:$0xff]  ;;  %v8394_v62 = vld [vmem:[#allocation22_spill] sm:$0xff] }
 0x156   : > { %8374 = vst [vmem:[#allocation14_spill] sm:$0xff] %v8373_v10  ;;  %v5606_v31 = vmax.f32 %v865_v19, 0.0001  ;;  %3983 = vrsqrt.f32 %v5579_v56  ;;  %vm970_vm5 = vcmp.lt.f32.partialorder %v5596_v11, 0.81  ;;  %v789_v23 = vsub.f32 %v5269_v46, %v773_v38  ;;  %v8381_v19 = vld [vmem:[#allocation15_spill] sm:$0xff]  ;;  %v5626_v46 = vpop.permute.xlu1 %928 }
 0x157   : > { %vm5613_vm8 = vmand %vm954_vm4, %vm970_vm5  ;;  %v8377_v48 = vmov 0  ;;  %vm944_vm9 = vcmp.ne.f32.partialorder %v5451_v37, %v5294_v33  ;;  %v5619_v58 = vmax.f32 %v863_v60, 0.0001  ;;  %1446 = vperm.xlu0 %3975, %v5328_v6   ;;  %1430 = vperm.xlu2 %3974, %v8380_v12   ;;  %v858_v21 = vmul.f32 %v794_v26, %v794_v26 }
 0x158   : > { %v8378_v48 = vsel %vm5613_vm8, 4294967295, %v8377_v48  ;;  %vm960_vm11 = vcmp.lt.f32.partialorder %v863_v60, 0.81  ;;  %v871_v45 = vadd.f32 %v855_v34, %v8381_v19  ;;  %vm952_vm14 = vcmp.ne.f32.partialorder %v5510_v41, %v5294_v33 }
 0x159   : > { %8379 = vst [vmem:[#allocation19_spill] sm:$0xff] %v8378_v48  ;;  %v5628_v5 = vpop.eup %3979  ;;  %v792_v0 = vsub.f32 %v5324_v8, %v776_v2  ;;  %v1066_v37 = vmul.f32 %v5588_v20, %v5522_v43  ;;  %vm5633_vm0 = vmand %vm944_vm9, %vm960_vm11  ;;  %v8382_v6 = vmov 0  ;;  %3985 = vrsqrt.f32 %v5619_v58 }
 0x15a   : > { %v8383_v6 = vsel %vm5633_vm0, 4294967295, %v8382_v6  ;;  %v866_v13 = vadd.f32 %v850_v59, %v8385_v27  ;;  %v5640_v61 = vmax.f32 %v5424_v39, 0.0001  ;;  %3987 = vrsqrt.f32 %v5606_v31  ;;  %v8398_v59 = vld [vmem:[#allocation20_spill] sm:$0xff] }
 0x15b   : > { %8384 = vst [vmem:[#allocation18_spill] sm:$0xff] %v8383_v6  ;;  %vm968_vm4 = vcmp.lt.f32.partialorder %v871_v45, 0.81  ;;  %vm947_vm5 = vcmp.ne.f32.partialorder %v5512_v16, %v5294_v33  ;;  %v5645_v8 = vpop.eup %3981  ;;  %v5647_v41 = vmax.f32 %v868_v7, 0.0001  ;;  %v8386_v53 = vmov 0  ;;  %v1241_v16 = vpop.permute.xlu0 %1240 }
 0x15c   : > { %vm5649_vm9 = vmand %vm952_vm14, %vm968_vm4  ;;  %v5653_v17 = vmax.f32 %v866_v13, 0.0001  ;;  %v5656_v39 = vpop.eup %3983  ;;  %v853_v32 = vmul.f32 %v789_v23, %v789_v23  ;;  %vm963_vm11 = vcmp.lt.f32.partialorder %v866_v13, 0.81  ;;  %v5659_v22 = vadd.f32 %v858_v21, %v8390_v29  ;;  %v8399_v23 = vld [vmem:[#allocation12_spill] sm:$0xff]  ;;  %v8403_v13 = vld [vmem:[#allocation23_spill] sm:$0xff] }
 0x15d   : > { %v8387_v53 = vsel %vm5649_vm9, 4294967295, %v8386_v53  ;;  %1438 = vperm.xlu1 %3976, %v8389_v42   ;;  %vm955_vm8 = vcmp.ne.f32.partialorder %v5583_v36, %v5294_v33  ;;  %v856_v1 = vmul.f32 %v792_v0, %v792_v0  ;;  %v5664_v50 = vmax.f32 %v5484_v4, 0.0001  ;;  %vm5666_vm14 = vmand %vm947_vm5, %vm963_vm11  ;;  %v5681_v4 = vpop.permute.xlu2 %1256 }
 0x15e   : > { %8388 = vst [vmem:[#allocation13_spill] sm:$0xff] %v8387_v53  ;;  %v8391_v7 = vmov 0  ;;  %3989 = vrsqrt.f32 %v5653_v17  ;;  %v1067_v9 = vmul.f32 %v5588_v20, %v1066_v37  ;;  %v5674_v51 = vmul.f32 %v5628_v5, %v5544_v15  ;;  %v5710_v36 = vpop.permute.xlu1 %1232 }
 0x15f   : > { %v8392_v7 = vsel %vm5666_vm14, 4294967295, %v8391_v7  ;;  %3991 = vrsqrt.f32 %v5640_v61  ;;  %vm971_vm4 = vcmp.lt.f32.partialorder %v5659_v22, 0.81  ;;  %v5679_v47 = vperm.slane %v8394_v62, 3  ;;  %v5683_v38 = vpop.eup %3985  ;;  %1458 = vperm.xlu0 %3975, %v5036_v35   ;;  %1442 = vperm.xlu2 %3974, %v8398_v59  }
 0x160   : > { %8393 = vst [vmem:[#allocation8_spill] sm:$0xff] %v8392_v7  ;;  %v5687_v55 = vmul.f32 %v5645_v8, %v5569_v40  ;;  %v1076_v34 = vmul.f32 %v5656_v39, %v5579_v56  ;;  %3993 = vrsqrt.f32 %v5647_v41  ;;  %vm5695_vm5 = vmand %vm955_vm8, %vm971_vm4  ;;  %v8395_v26 = vmov 0  ;;  %v5701_v2 = vpop.eup %3987 }
 0x161   : > { %v8396_v26 = vsel %vm5695_vm5, 4294967295, %v8395_v26  ;;  %v1068_v25 = vmul.f32 0.5, %v1067_v9  ;;  %v1096_v24 = vmul.f32 %v5683_v38, %v5619_v58  ;;  %v5705_v60 = vmax.f32 %v871_v45, 0.0001 }
 0x162   : > { %8397 = vst [vmem:[#allocation15_spill] sm:$0xff] %v8396_v26  ;;  %v869_v12 = vadd.f32 %v853_v32, %v8399_v23  ;;  %vm950_vm8 = vcmp.ne.f32.partialorder %v5562_v18, %v5294_v33  ;;  %3995 = vrsqrt.f32 %v5664_v50  ;;  %v5714_v35 = vmax.f32 %v5536_v63, 0.0001  ;;  %v8404_v23 = vld [vmem:[#allocation17_spill] sm:$0xff] }
 0x163   : > { %v1069_v21 = vsub.f32 1.5, %v1068_v25  ;;  %vm1072_vm11 = vweird.f32 %v5588_v20  ;;  %v1297_v19 = vmul.f32 %v5679_v47, %v5547_v44  ;;  %v1097_v0 = vmul.f32 %v5683_v38, %v1096_v24 }
 0x164   : > { %vm966_vm4 = vcmp.lt.f32.partialorder %v869_v12, 0.81  ;;  %v5719_v45 = vmax.f32 %v869_v12, 0.0001  ;;  %v5722_v37 = vpop.eup %3989  ;;  %v1116_v18 = vmul.f32 %v5701_v2, %v5606_v31  ;;  %vm1071_vm5 = vweird.f32 %v5522_v43 }
 0x165   : > { %v1070_v27 = vmul.f32 %v5588_v20, %v1069_v21  ;;  %vm5728_vm9 = vmand %vm950_vm8, %vm966_vm4  ;;  %v8400_v63 = vmov 0  ;;  %v1077_v44 = vmul.f32 %v5656_v39, %v1076_v34  ;;  %1450 = vperm.xlu1 %3976, %v8403_v13   ;;  %v5734_v42 = vpop.eup %3991  ;;  %3997 = vrsqrt.f32 %v5705_v60  ;;  %v1261_v21 = vpop.permute.xlu0 %1260 }
 0x166   : > { %v8401_v63 = vsel %vm5728_vm9, 4294967295, %v8400_v63  ;;  %vm1073_vm14 = vmor %vm1071_vm5, %vm1072_vm11  ;;  %v1098_v32 = vmul.f32 0.5, %v1097_v0  ;;  %vm1101_vm2 = vweird.f32 %v5619_v58  ;;  %vm1102_vm0 = vweird.f32 %v5683_v38  ;;  %v5739_v29 = vpop.eup %3993  ;;  %v5753_v0 = vpop.permute.xlu2 %1268 }
 0x167   : > { %8402 = vst [vmem:[#allocation11_spill] sm:$0xff] %v8401_v63  ;;  %v5742_v43 = vsel %vm1073_vm14, %v5588_v20, %v1070_v27  ;;  %3999 = vrsqrt.f32 %v5719_v45  ;;  %v1300_v9 = vmul.f32 %v5679_v47, %v5610_v14  ;;  %v1078_v34 = vmul.f32 0.5, %v1077_v44  ;;  %1470 = vperm.xlu0 %3975, %v5082_v30   ;;  %vm1103_vm8 = vmor %vm1101_vm2, %vm1102_vm0 }
 0x168   : > { %v1126_v25 = vmul.f32 %v5722_v37, %v5653_v17  ;;  %v5750_v59 = vmul.f32 %v1297_v19, %v5742_v43  ;;  %v1099_v24 = vsub.f32 1.5, %v1098_v32  ;;  %v872_v12 = vadd.f32 %v856_v1, %v8404_v23  ;;  %v5755_v20 = vpop.eup %3995  ;;  %v8405_v19 = vld [vmem:[#allocation9_spill] sm:$0xff] }
 0x169   : > { %v1079_v27 = vsub.f32 1.5, %v1078_v34  ;;  %v1298_v14 = vmul.f32 %v5679_v47, %v1241_v16  ;;  %vm953_vm5 = vcmp.ne.f32.partialorder %v5626_v46, %v5294_v33  ;;  %1454 = vperm.xlu2 %3974, %v8405_v19   ;;  %v1117_v13 = vmul.f32 %v5701_v2, %v1116_v18  ;;  %v5771_v16 = vpop.permute.xlu1 %1244 }
 0x16a   : > { %v1100_v44 = vmul.f32 %v5683_v38, %v1099_v24  ;;  %vm969_vm11 = vcmp.lt.f32.partialorder %v872_v12, 0.81  ;;  %v5768_v1 = vmax.f32 %v872_v12, 0.0001  ;;  %v1146_v30 = vmul.f32 %v5739_v29, %v5647_v41 }
 0x16b   : > { %v5776_v33 = vmax.f32 %v5659_v22, 0.0001  ;;  %v1080_v46 = vmul.f32 %v5656_v39, %v1079_v27  ;;  %vm1081_vm4 = vweird.f32 %v5579_v56  ;;  %vm5780_vm14 = vmand %vm953_vm5, %vm969_vm11  ;;  %v8406_v58 = vmov 0  ;;  %v5784_v32 = vpop.eup %3997 }
 0x16c   : > { %v8407_v58 = vsel %vm5780_vm14, 4294967295, %v8406_v58  ;;  %4001 = vrsqrt.f32 %v5714_v35  ;;  %v5788_v18 = vsel %vm1103_vm8, %v5683_v38, %v1100_v44  ;;  %vm8409_vm2 = vweird.f32 %v5656_v39  ;;  %v8411_v38 = vld [vmem:[#allocation25_spill] sm:$0xff] }
 0x16d   : > { %8408 = vst [vmem:[#allocation21_spill] sm:$0xff] %v8407_v58  ;;  %vm1083_vm0 = vmor %vm1081_vm4, %vm8409_vm2  ;;  %v1118_v22 = vmul.f32 0.5, %v1117_v13  ;;  %v1127_v34 = vmul.f32 %v5722_v37, %v1126_v25  ;;  %v5793_v24 = vpop.eup %3999  ;;  %v5797_v56 = vmul.f32 %v5734_v42, %v5640_v61  ;;  %v5800_v23 = vmul.f32 %v1300_v9, %v5788_v18  ;;  %1462 = vperm.xlu1 %3976, %v8411_v38   ;;  %v1273_v26 = vpop.permute.xlu0 %1272 }
 0x16e   : > { %v5803_v12 = vsel %vm1083_vm0, %v5656_v39, %v1080_v46  ;;  %4003 = vrsqrt.f32 %v5768_v1  ;;  %vm1122_vm5 = vweird.f32 %v5701_v2  ;;  %vm1121_vm8 = vweird.f32 %v5606_v31  ;;  %v1281_v46 = vpop.permute.xlu2 %1280 }
 0x16f   : > { %8410 = vst [vmem:[#allocation16_spill] sm:$0xff] %v5800_v23  ;;  %v5808_v27 = vmul.f32 %v1298_v14, %v5803_v12  ;;  %v1119_v25 = vsub.f32 1.5, %v1118_v22  ;;  %v1128_v19 = vmul.f32 0.5, %v1127_v34  ;;  %4005 = vrsqrt.f32 %v5776_v33  ;;  %vm1123_vm4 = vmor %vm1121_vm8, %vm1122_vm5 }
 0x170   : > { %v1302_v9 = vmul.f32 %v5679_v47, %v5681_v4  ;;  %v1147_v39 = vmul.f32 %v5739_v29, %v1146_v30  ;;  %v1156_v44 = vmul.f32 %v5793_v24, %v5719_v45  ;;  %vm1132_vm11 = vweird.f32 %v5722_v37  ;;  %v8412_v30 = vld [vmem:[#allocation10_spill] sm:$0xff] }
 0x171   : > { %v1120_v13 = vmul.f32 %v5701_v2, %v1119_v25  ;;  %v1129_v14 = vsub.f32 1.5, %v1128_v19  ;;  %v5822_v22 = vmul.f32 %v5755_v20, %v5664_v50  ;;  %v1303_v31 = vmul.f32 %v5679_v47, %v1261_v21  ;;  %1466 = vperm.xlu2 %3974, %v8412_v30   ;;  %v5837_v21 = vpop.permute.xlu1 %1252 }
 0x172   : > { %v1148_v34 = vmul.f32 0.5, %v1147_v39  ;;  %v1057_v4 = vmul.f32 %v5628_v5, %v5674_v51  ;;  %v5828_v38 = vpop.eup %4001  ;;  %v1176_v25 = vmul.f32 %v5784_v32, %v5705_v60  ;;  %vm1131_vm2 = vweird.f32 %v5653_v17 }
 0x173   : > { %v5833_v19 = vsel %vm1123_vm4, %v5701_v2, %v1120_v13  ;;  %v1130_v58 = vmul.f32 %v5722_v37, %v1129_v14  ;;  %v5842_v51 = vmax.f32 %v5596_v11, 0.0001  ;;  %vm1133_vm0 = vmor %vm1131_vm2, %vm1132_vm11  ;;  %vm1152_vm5 = vweird.f32 %v5739_v29 }
 0x174   : > { %v5839_v39 = vpop.eup %4003  ;;  %v5845_v30 = vmul.f32 %v1302_v9, %v5833_v19  ;;  %v1149_v2 = vsub.f32 1.5, %v1148_v34  ;;  %v1305_v17 = vmul.f32 %v5679_v47, %v5753_v0  ;;  %v1058_v14 = vmul.f32 0.5, %v1057_v4 }
 0x175   : > { %v5851_v13 = vsel %vm1133_vm0, %v5722_v37, %v1130_v58  ;;  %v1157_v63 = vmul.f32 %v5793_v24, %v1156_v44  ;;  %v5856_v11 = vpop.eup %4005  ;;  %vm1151_vm8 = vweird.f32 %v5647_v41  ;;  %vm1062_vm11 = vweird.f32 %v5628_v5 }
 0x176   : > { %v5859_v9 = vmul.f32 %v1303_v31, %v5851_v13  ;;  %v1150_v53 = vmul.f32 %v5739_v29, %v1149_v2  ;;  %v1186_v37 = vmul.f32 %v5839_v39, %v5768_v1  ;;  %vm1153_vm4 = vmor %vm1151_vm8, %vm1152_vm5  ;;  %v1059_v58 = vsub.f32 1.5, %v1058_v14 }
 0x177   : > { %v1158_v0 = vmul.f32 0.5, %v1157_v63  ;;  %v1177_v34 = vmul.f32 %v5784_v32, %v1176_v25  ;;  %4007 = vrsqrt.f32 %v5842_v51  ;;  %vm1061_vm2 = vweird.f32 %v5544_v15  ;;  %v1293_v63 = vpop.permute.xlu2 %1292 }
 0x178   : > { %8413 = vst [vmem:[#allocation22_spill] sm:$0xff] %v5859_v9  ;;  %v5869_v44 = vsel %vm1153_vm4, %v5739_v29, %v1150_v53  ;;  %v1296_v41 = vmul.f32 %v5679_v47, %v5710_v36  ;;  %v1060_v4 = vmul.f32 %v5628_v5, %v1059_v58  ;;  %vm1162_vm0 = vweird.f32 %v5793_v24  ;;  %vm1063_vm5 = vmor %vm1061_vm2, %vm1062_vm11 }
 0x179   : > { %v5875_v31 = vmul.f32 %v1305_v17, %v5869_v44  ;;  %v1159_v2 = vsub.f32 1.5, %v1158_v0  ;;  %v1206_v25 = vmul.f32 %v5856_v11, %v5776_v33  ;;  %v1306_v15 = vmul.f32 %v5679_v47, %v1273_v26  ;;  %v5892_v58 = vpop.permute.xlu1 %1264 }
 0x17a   : > { %v1178_v53 = vmul.f32 0.5, %v1177_v34  ;;  %v1087_v36 = vmul.f32 %v5645_v8, %v5687_v55  ;;  %v5887_v29 = vsel %vm1063_vm5, %v5628_v5, %v1060_v4  ;;  %vm1161_vm8 = vweird.f32 %v5719_v45  ;;  %v1285_v45 = vpop.permute.xlu0 %1284 }
 0x17b   : > { %8414 = vst [vmem:[#allocation20_spill] sm:$0xff] %v5875_v31  ;;  %v1160_v17 = vmul.f32 %v5793_v24, %v1159_v2  ;;  %v1187_v14 = vmul.f32 %v5839_v39, %v1186_v37  ;;  %v5895_v0 = vmul.f32 %v1296_v41, %v5887_v29  ;;  %vm1163_vm11 = vmor %vm1161_vm8, %vm1162_vm0  ;;  %vm1182_vm4 = vweird.f32 %v5784_v32 }
 0x17c   : > { %v1179_v26 = vsub.f32 1.5, %v1178_v53  ;;  %v1088_v34 = vmul.f32 0.5, %v1087_v36  ;;  %vm1181_vm2 = vweird.f32 %v5705_v60  ;;  %v1308_v5 = vmul.f32 %v5679_v47, %v1281_v46 }
 0x17d   : > { %v5899_v55 = vsel %vm1163_vm11, %v5793_v24, %v1160_v17  ;;  %v1188_v4 = vmul.f32 0.5, %v1187_v14  ;;  %v5903_v37 = vpop.eup %4007  ;;  %vm1092_vm0 = vweird.f32 %v5645_v8  ;;  %vm1183_vm5 = vmor %vm1181_vm2, %vm1182_vm4  ;;  %v1299_v24 = vmul.f32 %v5679_v47, %v5771_v16 }
 0x17e   : > { %v5906_v2 = vmul.f32 %v1306_v15, %v5899_v55  ;;  %v1180_v41 = vmul.f32 %v5784_v32, %v1179_v26  ;;  %v1089_v53 = vsub.f32 1.5, %v1088_v34  ;;  %vm1192_vm8 = vweird.f32 %v5839_v39 }
 0x17f   : > { %v1189_v36 = vsub.f32 1.5, %v1188_v4  ;;  %v1207_v60 = vmul.f32 %v5856_v11, %v1206_v25  ;;  %vm1091_vm11 = vweird.f32 %v5569_v40  ;;  %v1309_v17 = vmul.f32 %v5679_v47, %v1285_v45  ;;  %v5925_v34 = vpop.permute.xlu2 %1337 }
 0x180   : > { %8415 = vst [vmem:[#allocation12_spill] sm:$0xff] %v5906_v2  ;;  %v5915_v46 = vsel %vm1183_vm5, %v5784_v32, %v1180_v41  ;;  %v1090_v15 = vmul.f32 %v5645_v8, %v1089_v53  ;;  %vm1093_vm4 = vmor %vm1091_vm11, %vm1092_vm0  ;;  %vm1191_vm2 = vweird.f32 %v5768_v1  ;;  %v1166_v32 = vmul.f32 %v5828_v38, %v5714_v35 }
 0x181   : > { %v5921_v14 = vmul.f32 %v1308_v5, %v5915_v46  ;;  %v1190_v16 = vmul.f32 %v5839_v39, %v1189_v36  ;;  %v1208_v26 = vmul.f32 0.5, %v1207_v60  ;;  %vm1193_vm5 = vmor %vm1191_vm2, %vm1192_vm8  ;;  %v1107_v40 = vmul.f32 %v5734_v42, %v5797_v56  ;;  %v1277_v4 = vpop.permute.xlu1 %1276 }
 0x182   : > { %v5930_v25 = vsel %vm1093_vm4, %v5645_v8, %v1090_v15  ;;  %vm1212_vm0 = vweird.f32 %v5856_v11  ;;  %v1311_v8 = vmul.f32 %v5679_v47, %v1293_v63  ;;  %vm1211_vm8 = vweird.f32 %v5776_v33 }
 0x183   : > { %8416 = vst [vmem:[#allocation23_spill] sm:$0xff] %v5921_v14  ;;  %v5935_v5 = vmul.f32 %v1299_v24, %v5930_v25  ;;  %v5938_v45 = vsel %vm1193_vm5, %v5839_v39, %v1190_v16  ;;  %v1209_v1 = vsub.f32 1.5, %v1208_v26  ;;  %v1108_v53 = vmul.f32 0.5, %v1107_v40  ;;  %vm1213_vm11 = vmor %vm1211_vm8, %vm1212_vm0 }
 0x184   : > { %8417 = vst [vmem:[#allocation17_spill] sm:$0xff] %v5938_v45  ;;  %v5942_v41 = vmul.f32 %v1309_v17, %v5938_v45  ;;  %v1137_v56 = vmul.f32 %v5755_v20, %v5822_v22  ;;  %vm1112_vm4 = vweird.f32 %v5734_v42  ;;  %v1167_v24 = vmul.f32 %v5828_v38, %v1166_v32 }
 0x185   : > { %v1210_v36 = vmul.f32 %v5856_v11, %v1209_v1  ;;  %v1109_v39 = vsub.f32 1.5, %v1108_v53  ;;  %v1196_v60 = vmul.f32 %v5903_v37, %v5842_v51  ;;  %v1301_v63 = vmul.f32 %v5679_v47, %v5837_v21 }
 0x186   : > { %8418 = vst [vmem:[#allocation9_spill] sm:$0xff] %v5942_v41  ;;  %v1138_v17 = vmul.f32 0.5, %v1137_v56  ;;  %vm1111_vm2 = vweird.f32 %v5640_v61  ;;  %v1168_v16 = vmul.f32 0.5, %v1167_v24  ;;  %vm1142_vm0 = vweird.f32 %v5755_v20 }
 0x187   : > { %v5954_v15 = vsel %vm1213_vm11, %v5856_v11, %v1210_v36  ;;  %v1110_v22 = vmul.f32 %v5734_v42, %v1109_v39  ;;  %vm1113_vm5 = vmor %vm1111_vm2, %vm1112_vm4  ;;  %v5964_v32 = vpop.permute.xlu2 %1345  ;;  %v1304_v21 = vmul.f32 %v5679_v47, %v5892_v58  ;;  %vm1172_vm8 = vweird.f32 %v5828_v38  ;;  %v1330_v36 = vpop.permute.xlu0 %1329 }
 0x188   : > { %v5959_v33 = vmul.f32 %v1311_v8, %v5954_v15  ;;  %v1139_v26 = vsub.f32 1.5, %v1138_v17  ;;  %v1169_v40 = vsub.f32 1.5, %v1168_v16  ;;  %vm1141_vm11 = vweird.f32 %v5664_v50 }
 0x189   : > { %v1114_v11 = vsel %vm1113_vm5, %v5734_v42, %v1110_v22  ;;  %v1307_v61 = vmul.f32 %v5679_v47, %v1277_v4  ;;  %v1289_v53 = vpop.permute.xlu1 %1288  ;;  %vm1143_vm4 = vmor %vm1141_vm11, %vm1142_vm0  ;;  %vm1171_vm2 = vweird.f32 %v5714_v35  ;;  %v1197_v42 = vmul.f32 %v5903_v37, %v1196_v60 }
 0x18a   : > { %8419 = vst [vmem:[#allocation25_spill] sm:$0xff] %v5959_v33  ;;  %v5970_v1 = vmul.f32 %v1301_v63, %v1114_v11  ;;  %v1140_v8 = vmul.f32 %v5755_v20, %v1139_v26  ;;  %v1170_v56 = vmul.f32 %v5828_v38, %v1169_v40  ;;  %vm1173_vm5 = vmor %vm1171_vm2, %vm1172_vm8  ;;  %v5982_v39 = vperm.slane %v8394_v62, 4 }
 0x18b   : > { %v1198_v63 = vmul.f32 0.5, %v1197_v42  ;;  %vm1202_vm0 = vweird.f32 %v5903_v37  ;;  %v1310_v17 = vmul.f32 %v5679_v47, %v1289_v53  ;;  %vm1201_vm8 = vweird.f32 %v5842_v51 }
 0x18c   : > { %v5979_v58 = vsel %vm1143_vm4, %v5755_v20, %v1140_v8  ;;  %v5988_v4 = vsel %vm1173_vm5, %v5828_v38, %v1170_v56  ;;  %v1393_v60 = vadd.f32 %v5982_v39, %v1330_v36  ;;  %vm1203_vm11 = vmor %vm1201_vm8, %vm1202_vm0  ;;  %v1215_v8 = vmul.f32 %v5887_v29, %v5887_v29 }
 0x18d   : > { %v5985_v50 = vmul.f32 %v1304_v21, %v5979_v58  ;;  %v5991_v24 = vmul.f32 %v1307_v61, %v5988_v4  ;;  %v1199_v20 = vsub.f32 1.5, %v1198_v63  ;;  %v1218_v42 = vmul.f32 %v5930_v25, %v5930_v25 }
 0x18e   : > { %v1490_v38 = vmul.f32 %v1393_v60, %v1393_v60  ;;  %v988_v41 = vlaneseq  ;;  %v6022_v25 = vperm.slane %v8394_v62, 5  ;;  %v1395_v62 = vadd.f32 %v5982_v39, %v5925_v34 }
 0x18f   : > { %v5993_v35 = vpop.permute.xlu2 %1357  ;;  %v1200_v16 = vmul.f32 %v5903_v37, %v1199_v20  ;;  %v1350_v26 = vpop.permute.xlu0 %1349 }
 0x190   : > { %v1506_v47 = vmul.f32 %v1490_v38, %v1215_v8  ;;  %v6019_v14 = vand.u32 127, %v988_v41 }
 0x191   : > { %v1334_v22 = vpop.permute.xlu1 %1333  ;;  %v6001_v21 = vsel %vm1203_vm11, %v5903_v37, %v1200_v16  ;;  %v1398_v37 = vadd.f32 %v5982_v39, %v1350_v26  ;;  %v1216_v26 = vmul.f32 %v5742_v43, %v5742_v43 }
 0x192   : > { %v6004_v40 = vmul.f32 %v1310_v17, %v6001_v21  ;;  %v1522_v56 = vmul.f32 %v1506_v47, %v1506_v47  ;;  %v1394_v29 = vadd.f32 %v5982_v39, %v1334_v22 }
 0x193   : > { %v1495_v38 = vmul.f32 %v1398_v37, %v1398_v37 }
 0x194   : > { %8420 = vst [vmem:[#allocation10_spill] sm:$0xff] %v6004_v40  ;;  %v1538_v20 = vmul.f32 %v1522_v56, %v1506_v47  ;;  %v1491_v2 = vmul.f32 %v1394_v29, %v1394_v29 }
 0x196   : > { %v1554_v33 = vmul.f32 %v1538_v20, %v1538_v20  ;;  %v1507_v29 = vmul.f32 %v1491_v2, %v1216_v26 }
 0x197   : > { %v6008_v61 = vpop.permute.xlu2 %1369  ;;  %v1362_v63 = vpop.permute.xlu0 %1361 }
 0x198   : > { %v1401_v22 = vadd.f32 %v5982_v39, %v1362_v63 }
 0x199   : > { %v1342_v53 = vpop.permute.xlu1 %1341 }
 0x19a   : > { %v1396_v36 = vadd.f32 %v5982_v39, %v1342_v53  ;;  %v1220_v53 = vmul.f32 %v1114_v11, %v1114_v11  ;;  %v1570_v11 = vsub.f32 %v1554_v33, %v1538_v20  ;;  %v1223_v20 = vmul.f32 %v5979_v58, %v5979_v58 }
 0x19c   : > { %v1493_v51 = vmul.f32 %v1396_v36, %v1396_v36  ;;  %v6017_v36 = vshrl.u32 %v988_v41, 7  ;;  %v1511_v47 = vmul.f32 %v1495_v38, %v1220_v53  ;;  %v1498_v53 = vmul.f32 %v1401_v22, %v1401_v22 }
 0x19d   : > { %v1492_v22 = vmul.f32 %v1395_v62, %v1395_v62 }
 0x19e   : > { %v1509_v17 = vmul.f32 %v1493_v51, %v1218_v42  ;;  %vm1007_vm4 = vcmp.lt.s32.totalorder %v6017_v36, %v6019_v14  ;;  %v1527_v38 = vmul.f32 %v1511_v47, %v1511_v47  ;;  %v992_v33 = vadd.s32 24, %v6017_v36 }
 0x19f   : > { %v6014_v60 = vpop.permute.xlu2 %1381  ;;  %v1374_v51 = vpop.permute.xlu0 %1373  ;;  %vm6038_vm2 = vmand %vm5350_vm10, %vm1007_vm4  ;;  %v6046_v26 = vadd.s32 40, %v6017_v36 }
 0x1a0   : > { %v1525_v8 = vmul.f32 %v1509_v17, %v1509_v17  ;;  %v1543_v58 = vmul.f32 %v1527_v38, %v1511_v47  ;;  %vm1010_vm10 = vcmp.lt.s32.totalorder %v992_v33, %v6019_v14  ;;  %v1226_v33 = vmul.f32 %v5988_v4, %v5988_v4 }
 0x1a1   : > { %v1354_v16 = vpop.permute.xlu1 %1353  ;;  %vm1012_vm5 = vcmp.lt.s32.totalorder %v6046_v26, %v6019_v14  ;;  %vm6084_vm0 = vmand %vm5413_vm15, %vm1010_vm10  ;;  %v1406_v28 = vadd.f32 %v5982_v39, %v6014_v60 }
 0x1a2   : > { %v1541_v42 = vmul.f32 %v1525_v8, %v1509_v17  ;;  %v1399_v7 = vadd.f32 %v5982_v39, %v1354_v16  ;;  %v1523_v16 = vmul.f32 %v1507_v29, %v1507_v29  ;;  %v1404_v8 = vadd.f32 %v5982_v39, %v1374_v51  ;;  %vm6129_vm4 = vmand %vm5447_vm3, %vm1012_vm5 }
 0x1a4   : > { %v1557_v17 = vmul.f32 %v1541_v42, %v1541_v42  ;;  %v1496_v34 = vmul.f32 %v1399_v7, %v1399_v7  ;;  %v1539_v48 = vmul.f32 %v1523_v16, %v1507_v29  ;;  %v1219_v29 = vmul.f32 %v5788_v18, %v5788_v18 }
 0x1a5   : > { %v6091_v18 = vadd.s32 16, %v6017_v36 }
 0x1a7   : > { %v1411_v56 = vpop.permute.xlu2 %1410  ;;  %vm1009_vm11 = vcmp.lt.s32.totalorder %v6091_v18, %v6019_v14 }
 0x1a8   : > { %v1474_v37 = vmul.f32 %v6022_v25, %v1411_v56  ;;  %v6062_v56 = vadd.s32 8, %v6017_v36 }
 0x1a9   : > { %v1366_v41 = vpop.permute.xlu1 %1365 }
 0x1aa   : > { %v1586_v43 = vmul.f32 %v1570_v11, %v1474_v37  ;;  %v1217_v37 = vmul.f32 %v5803_v12, %v5803_v12  ;;  %v1221_v11 = vmul.f32 %v5833_v19, %v5833_v19  ;;  %v1402_v62 = vadd.f32 %v5982_v39, %v1366_v41  ;;  %v1386_v41 = vpop.permute.xlu0 %1385 }
 0x1ab   : > { %v6067_v19 = vadd.s32 64, %v6017_v36  ;;  %vm1008_vm8 = vcmp.lt.s32.totalorder %v6062_v56, %v6019_v14 }
 0x1ac   : > { %v6034_v63 = vadd.f32 %v1586_v43, %v5895_v0  ;;  %v1397_v0 = vadd.f32 %v5982_v39, %v5964_v32  ;;  %v1514_v43 = vmul.f32 %v1498_v53, %v1223_v20  ;;  %v1573_v32 = vsub.f32 %v1557_v17, %v1541_v42  ;;  %vm1024_vm3 = vmand %vm5475_vm7, %vm1008_vm8 }
 0x1ad   : > { %v1512_v12 = vmul.f32 %v1496_v34, %v1221_v11  ;;  %v1508_v47 = vmul.f32 %v1492_v22, %v1217_v37  ;;  %v6070_v42 = vadd.s32 48, %v6017_v36  ;;  %v6073_v53 = vadd.s32 88, %v6017_v36 }
 0x1ae   : > { %v1494_v51 = vmul.f32 %v1397_v0, %v1397_v0  ;;  %v1530_v17 = vmul.f32 %v1514_v43, %v1514_v43  ;;  %v1501_v20 = vmul.f32 %v1404_v8, %v1404_v8  ;;  %v1499_v16 = vmul.f32 %v1402_v62, %v1402_v62 }
 0x1af   : > { %v1423_v7 = vpop.permute.xlu2 %1422  ;;  %v1559_v11 = vmul.f32 %v1543_v58, %v1543_v58  ;;  %v1224_v0 = vmul.f32 %v5869_v44, %v5869_v44  ;;  %v1528_v37 = vmul.f32 %v1512_v12, %v1512_v12  ;;  %v1400_v22 = vadd.f32 %v5982_v39, %v5993_v35 }
 0x1b0   : > { %v1477_v9 = vmul.f32 %v6022_v25, %v1423_v7  ;;  %v1524_v7 = vmul.f32 %v1508_v47, %v1508_v47  ;;  %v1510_v8 = vmul.f32 %v1494_v51, %v1219_v29  ;;  %v1407_v44 = vadd.f32 %v5982_v39, %v1386_v41 }
 0x1b1   : > { %v1378_v40 = vpop.permute.xlu1 %1377  ;;  %v1517_v31 = vmul.f32 %v1501_v20, %v1226_v33  ;;  %v1515_v45 = vmul.f32 %v1499_v16, %v1224_v0  ;;  %v1575_v4 = vsub.f32 %v1559_v11, %v1543_v58  ;;  %v6108_v51 = vadd.s32 112, %v6017_v36 }
 0x1b2   : > { %v1589_v38 = vmul.f32 %v1573_v32, %v1477_v9  ;;  %v6101_v32 = vadd.s32 72, %v6017_v36  ;;  %v1544_v62 = vmul.f32 %v1528_v37, %v1512_v12  ;;  %v1405_v23 = vadd.f32 %v5982_v39, %v1378_v40 }
 0x1b3   : > { %vm1015_vm15 = vcmp.lt.s32.totalorder %v6067_v19, %v6019_v14  ;;  %v6114_v35 = vadd.s32 32, %v6017_v36  ;;  %v1526_v41 = vmul.f32 %v1510_v8, %v1510_v8  ;;  %v1497_v58 = vmul.f32 %v1400_v22, %v1400_v22 }
 0x1b4   : > { %v6078_v34 = vadd.f32 %v1589_v38, %v5935_v5  ;;  %v1555_v5 = vmul.f32 %v1539_v48, %v1539_v48  ;;  %v1546_v38 = vmul.f32 %v1530_v17, %v1514_v43  ;;  %v1540_v43 = vmul.f32 %v1524_v7, %v1508_v47  ;;  %vm6174_vm7 = vmand %vm5517_vm13, %vm1015_vm15 }
 0x1b5   : > { %v1504_v16 = vmul.f32 %v1407_v44, %v1407_v44  ;;  %v1533_v40 = vmul.f32 %v1517_v31, %v1517_v31  ;;  %v1531_v12 = vmul.f32 %v1515_v45, %v1515_v45  ;;  %vm1013_vm10 = vcmp.lt.s32.totalorder %v6070_v42, %v6019_v14  ;;  %vm1025_vm13 = vmand %vm5575_vm12, %vm1009_vm11 }
 0x1b6   : > { %v1571_v29 = vsub.f32 %v1555_v5, %v1539_v48  ;;  %v1562_v0 = vmul.f32 %v1546_v38, %v1546_v38  ;;  %v1560_v5 = vmul.f32 %v1544_v62, %v1544_v62  ;;  %v1227_v37 = vmul.f32 %v5915_v46, %v5915_v46 }
 0x1b7   : > { %v1431_v10 = vpop.permute.xlu2 %1430  ;;  %v6139_v7 = vmul.f32 %v1526_v41, %v1510_v8  ;;  %v1556_v26 = vmul.f32 %v1540_v43, %v1540_v43  ;;  %v1403_v22 = vadd.f32 %v5982_v39, %v6008_v61  ;;  %v6152_v46 = vmul.f32 %v1531_v12, %v1515_v45 }
 0x1b8   : > { %v1479_v6 = vmul.f32 %v6022_v25, %v1431_v10  ;;  %v1222_v10 = vmul.f32 %v5851_v13, %v5851_v13  ;;  %v1229_v13 = vmul.f32 %v6001_v21, %v6001_v21  ;;  %vm1018_vm5 = vcmp.lt.s32.totalorder %v6073_v53, %v6019_v14 }
 0x1b9   : > { %v1390_v52 = vpop.permute.xlu1 %1389  ;;  %v1415_v17 = vpop.permute.xlu0 %1414  ;;  %v8429_v57 = vsel %vm6038_vm2, %v6034_v63, 0.0  ;;  %v1558_v54 = vmul.f32 %v6139_v7, %v6139_v7  ;;  %vm6203_vm2 = vmand %vm5531_vm1, %vm1013_vm10  ;;  %vm1016_vm1 = vcmp.lt.s32.totalorder %v6101_v32, %v6019_v14  ;;  %vm1011_vm12 = vcmp.lt.s32.totalorder %v6114_v35, %v6019_v14  ;;  %v8462_v35 = vld [vmem:[#allocation25_spill] sm:$0xff] }
 0x1ba   : > { %v1591_v20 = vmul.f32 %v1575_v4, %v1479_v6  ;;  %v1475_v48 = vmul.f32 %v6022_v25, %v1415_v17  ;;  %v1513_v33 = vmul.f32 %v1497_v58, %v1222_v10  ;;  %v1520_v44 = vmul.f32 %v1504_v16, %v1229_v13  ;;  %vm6233_vm8 = vmand %vm5555_vm6, %vm1018_vm5 }
 0x1bb   : > { %v1576_v17 = vsub.f32 %v1560_v5, %v1544_v62  ;;  %v1408_v61 = vadd.f32 %v5982_v39, %v1390_v52  ;;  %v1572_v58 = vsub.f32 %v1556_v26, %v1540_v43  ;;  %v1500_v16 = vmul.f32 %v1403_v22, %v1403_v22 }
 0x1bc   : > { %v6122_v11 = vadd.f32 %v1591_v20, %v5970_v1  ;;  %v1587_v47 = vmul.f32 %v1571_v29, %v1475_v48  ;;  %v1502_v1 = vmul.f32 %v1405_v23, %v1405_v23  ;;  %v1549_v23 = vmul.f32 %v1533_v40, %v1517_v31 }
 0x1bd   : > { %v1578_v29 = vsub.f32 %v1562_v0, %v1546_v38  ;;  %v1529_v38 = vmul.f32 %v1513_v33, %v1513_v33  ;;  %v1536_v62 = vmul.f32 %v1520_v44, %v1520_v44  ;;  %v1563_v52 = vmul.f32 %v6152_v46, %v6152_v46 }
 0x1be   : > { %v1623_v49 = vsel %vm6129_vm4, %v6122_v11, 0.0  ;;  %v1603_v21 = vadd.f32 %v1587_v47, %v5750_v59  ;;  %v1518_v20 = vmul.f32 %v1502_v1, %v1227_v37  ;;  %v1565_v2 = vmul.f32 %v1549_v23, %v1549_v23 }
 0x1bf   : > { %v1443_v4 = vpop.permute.xlu2 %1442  ;;  %v1225_v43 = vmul.f32 %v5899_v55, %v5899_v55  ;;  %v1505_v47 = vmul.f32 %v1408_v61, %v1408_v61  ;;  %v6193_v55 = vmul.f32 %v1529_v38, %v1513_v33  ;;  %v1552_v37 = vmul.f32 %v1536_v62, %v1520_v44  ;;  %v8441_v62 = vld [vmem:[#allocation17_spill] sm:$0xff] }
 0x1c0   : > { %v1482_v8 = vmul.f32 %v6022_v25, %v1443_v4  ;;  %v1619_v41 = vsel %vm1024_vm3, %v1603_v21, 0.0  ;;  %v1534_v13 = vmul.f32 %v1518_v20, %v1518_v20  ;;  %v1579_v3 = vsub.f32 %v1563_v52, %v6152_v46  ;;  %v8442_v52 = vld [vmem:[#allocation20_spill] sm:$0xff] }
 0x1c1   : > { %v1419_v10 = vpop.permute.xlu1 %1418  ;;  %v1634_v59 = vadd.f32 %v1619_v41, %v8429_v57  ;;  %v1435_v31 = vpop.permute.xlu0 %1434  ;;  %v1516_v1 = vmul.f32 %v1500_v16, %v1225_v43  ;;  %v1581_v33 = vsub.f32 %v1565_v2, %v1549_v23  ;;  %v1574_v46 = vsub.f32 %v1558_v54, %v6139_v7  ;;  %v8443_v43 = vld [vmem:[#allocation14_spill] sm:$0xff] }
 0x1c2   : > { %v1594_v45 = vmul.f32 %v1578_v29, %v1482_v8  ;;  %v1476_v56 = vmul.f32 %v6022_v25, %v1419_v10  ;;  %v1480_v48 = vmul.f32 %v6022_v25, %v1435_v31  ;;  %v1550_v44 = vmul.f32 %v1534_v13, %v1518_v20 }
 0x1c3   : > { %v1532_v39 = vmul.f32 %v1516_v1, %v1516_v1  ;;  %v1568_v61 = vmul.f32 %v1552_v37, %v1552_v37  ;;  %vm1021_vm15 = vcmp.lt.s32.totalorder %v6108_v51, %v6019_v14  ;;  %v1503_v31 = vmul.f32 %v1406_v28, %v1406_v28  ;;  %v8455_v51 = vld [vmem:[#allocation23_spill] sm:$0xff] }
 0x1c4   : > { %v6167_v40 = vadd.f32 %v1594_v45, %v5985_v50  ;;  %v1588_v12 = vmul.f32 %v1572_v58, %v1476_v56  ;;  %v1592_v0 = vmul.f32 %v1576_v17, %v1480_v48  ;;  %v1230_v50 = vmul.f32 %v5954_v15, %v5954_v15  ;;  %v8438_v45 = vld [vmem:[#allocation16_spill] sm:$0xff]  ;;  %v8439_v58 = vld [vmem:[#allocation18_spill] sm:$0xff] }
 0x1c5   : > { %v8434_v17 = vsel %vm6084_vm0, %v6078_v34, 0.0  ;;  %v1561_v53 = vmul.f32 %v6193_v55, %v6193_v55  ;;  %vm8440_vm6 = vnez %v8439_v58  ;;  %v1001_v38 = vadd.s32 96, %v6017_v36 }
 0x1c6   : > { %v1626_v5 = vsel %vm6174_vm7, %v6167_v40, 0.0  ;;  %v1604_v19 = vadd.f32 %v1588_v12, %v5808_v27  ;;  %v6196_v15 = vadd.f32 %v1592_v0, %v5845_v30  ;;  %v1521_v21 = vmul.f32 %v1505_v47, %v1230_v50  ;;  %vm1027_vm0 = vmand %vm8440_vm6, %vm1011_vm12 }
 0x1c7   : > { %v1455_v26 = vpop.permute.xlu2 %1454  ;;  %v996_v16 = vadd.s32 56, %v6017_v36  ;;  %v1228_v48 = vmul.f32 %v8441_v62, %v8441_v62  ;;  %vm8444_vm11 = vnez %v8443_v43  ;;  %v1548_v0 = vmul.f32 %v1532_v39, %v1516_v1 }
 0x1c8   : > { %v1485_v18 = vmul.f32 %v6022_v25, %v1455_v26  ;;  %v1620_v22 = vsel %vm1025_vm13, %v1604_v19, 0.0  ;;  %v1624_v30 = vsel %vm6203_vm2, %v6196_v15, 0.0  ;;  %v1537_v9 = vmul.f32 %v1521_v21, %v1521_v21  ;;  %vm6260_vm10 = vmand %vm8444_vm11, %vm1016_vm1 }
 0x1c9   : > { %v1635_v4 = vadd.f32 %v1634_v59, %v1620_v22  ;;  %v1427_v42 = vpop.permute.xlu1 %1426  ;;  %v1447_v8 = vpop.permute.xlu0 %1446  ;;  %v1566_v59 = vmul.f32 %v1550_v44, %v1550_v44  ;;  %v1584_v47 = vsub.f32 %v1568_v61, %v1552_v37  ;;  %v1577_v22 = vsub.f32 %v1561_v53, %v6193_v55 }
 0x1ca   : > { %v1597_v29 = vmul.f32 %v1581_v33, %v1485_v18  ;;  %v1478_v41 = vmul.f32 %v6022_v25, %v1427_v42  ;;  %v1483_v23 = vmul.f32 %v6022_v25, %v1447_v8  ;;  %v1553_v54 = vmul.f32 %v1537_v9, %v1521_v21  ;;  %v8447_v21 = vld [vmem:[#allocation10_spill] sm:$0xff]  ;;  %v8448_v42 = vld [vmem:[#allocation19_spill] sm:$0xff] }
 0x1cb   : > { %v1636_v20 = vadd.f32 %v1635_v4, %v8434_v17  ;;  %v1582_v15 = vsub.f32 %v1566_v59, %v1550_v44  ;;  %vm1014_vm3 = vcmp.lt.s32.totalorder %v996_v16, %v6019_v14  ;;  %vm8449_vm5 = vnez %v8448_v42 }
 0x1cc   : > { %v6226_v60 = vadd.f32 %v1597_v29, %v5991_v24  ;;  %v1590_v10 = vmul.f32 %v1574_v46, %v1478_v41  ;;  %v1595_v34 = vmul.f32 %v1579_v3, %v1483_v23  ;;  %v1519_v3 = vmul.f32 %v1503_v31, %v1228_v48  ;;  %vm6281_vm13 = vmand %vm8449_vm5, %vm1021_vm15  ;;  %v8452_v29 = vld [vmem:[#allocation22_spill] sm:$0xff]  ;;  %v8453_v23 = vld [vmem:[#allocation8_spill] sm:$0xff] }
 0x1cd   : > { %vm1019_vm2 = vcmp.lt.s32.totalorder %v1001_v38, %v6019_v14  ;;  %v1569_v55 = vmul.f32 %v1553_v54, %v1553_v54  ;;  %v1564_v46 = vmul.f32 %v1548_v0, %v1548_v0  ;;  %vm8454_vm4 = vnez %v8453_v23 }
 0x1ce   : > { %v1629_v24 = vsel %vm6233_vm8, %v6226_v60, 0.0  ;;  %v1606_v56 = vadd.f32 %v1590_v10, %v8438_v45  ;;  %v1611_v2 = vadd.f32 %v1595_v34, %v8442_v52  ;;  %vm1030_vm1 = vmand %vm8454_vm4, %vm1014_vm3  ;;  %v1004_v10 = vadd.s32 120, %v6017_v36  ;;  %v8460_v52 = vld [vmem:[#allocation12_spill] sm:$0xff] }
 0x1cf   : > { %v1467_v12 = vpop.permute.xlu2 %1466  ;;  %v1585_v34 = vsub.f32 %v1569_v55, %v1553_v54  ;;  %v1580_v53 = vsub.f32 %v1564_v46, %v1548_v0  ;;  %v1002_v63 = vadd.s32 104, %v6017_v36 }
 0x1d0   : > { %v1488_v13 = vmul.f32 %v6022_v25, %v1467_v12  ;;  %v1622_v50 = vsel %vm1027_vm0, %v1606_v56, 0.0  ;;  %v1627_v19 = vsel %vm6260_vm10, %v1611_v2, 0.0  ;;  %vm1022_vm0 = vcmp.lt.s32.totalorder %v1004_v10, %v6019_v14 }
 0x1d1   : > { %v1637_v26 = vadd.f32 %v1636_v20, %v1622_v50  ;;  %v1439_v27 = vpop.permute.xlu1 %1438  ;;  %v1459_v32 = vpop.permute.xlu0 %1458  ;;  %v8456_v20 = vld [vmem:[#allocation13_spill] sm:$0xff] }
 0x1d2   : > { %v1600_v18 = vmul.f32 %v1584_v47, %v1488_v13  ;;  %v1481_v33 = vmul.f32 %v6022_v25, %v1439_v27  ;;  %v1486_v1 = vmul.f32 %v6022_v25, %v1459_v32  ;;  %vm8457_vm12 = vnez %v8456_v20  ;;  %v8463_v13 = vld [vmem:[#allocation15_spill] sm:$0xff] }
 0x1d3   : > { %v1638_v37 = vadd.f32 %v1637_v26, %v1623_v49  ;;  %v1535_v49 = vmul.f32 %v1519_v3, %v1519_v3  ;;  %vm6294_vm15 = vmand %vm8457_vm12, %vm1019_vm2  ;;  %vm8464_vm10 = vnez %v8463_v13 }
 0x1d4   : > { %v1616_v44 = vadd.f32 %v1600_v18, %v8447_v21  ;;  %v1593_v4 = vmul.f32 %v1577_v22, %v1481_v33  ;;  %v1598_v6 = vmul.f32 %v1582_v15, %v1486_v1  ;;  %vm6316_vm3 = vmand %vm8464_vm10, %vm1022_vm0 }
 0x1d5   : > { %v1639_v11 = vadd.f32 %v1638_v37, %v1624_v30  ;;  %v999_v30 = vadd.s32 80, %v6017_v36  ;;  %v1551_v31 = vmul.f32 %v1535_v49, %v1519_v3  ;;  %v8467_v36 = vld [vmem:[#allocation9_spill] sm:$0xff] }
 0x1d6   : > { %v1632_v8 = vsel %vm6281_vm13, %v1616_v44, 0.0  ;;  %v1609_v41 = vadd.f32 %v1593_v4, %v8452_v29  ;;  %v1614_v17 = vadd.f32 %v1598_v6, %v8455_v51 }
 0x1d7   : > { %vm1017_vm6 = vcmp.lt.s32.totalorder %v999_v30, %v6019_v14  ;;  %v1567_v12 = vmul.f32 %v1551_v31, %v1551_v31 }
 0x1d8   : > { %v1625_v61 = vsel %vm1030_vm1, %v1609_v41, 0.0  ;;  %v1630_v7 = vsel %vm6294_vm15, %v1614_v17, 0.0  ;;  %vm1033_vm11 = vmand %vm5728_vm9, %vm1017_vm6  ;;  %vm1020_vm9 = vcmp.lt.s32.totalorder %v1002_v63, %v6019_v14 }
 0x1d9   : > { %v1640_v9 = vadd.f32 %v1639_v11, %v1625_v61  ;;  %v1451_v59 = vpop.permute.xlu1 %1450  ;;  %v1471_v45 = vpop.permute.xlu0 %1470  ;;  %v1583_v15 = vsub.f32 %v1567_v12, %v1551_v31  ;;  %vm1036_vm7 = vmand %vm5780_vm14, %vm1020_vm9 }
 0x1da   : > { %v1484_v56 = vmul.f32 %v6022_v25, %v1451_v59  ;;  %v1489_v58 = vmul.f32 %v6022_v25, %v1471_v45 }
 0x1db   : > { %v1641_v38 = vadd.f32 %v1640_v9, %v1626_v5 }
 0x1dc   : > { %v1596_v16 = vmul.f32 %v1580_v53, %v1484_v56  ;;  %v1601_v62 = vmul.f32 %v1585_v34, %v1489_v58 }
 0x1dd   : > { %v1642_v48 = vadd.f32 %v1641_v38, %v1627_v19 }
 0x1de   : > { %v1612_v2 = vadd.f32 %v1596_v16, %v8460_v52  ;;  %v1617_v0 = vadd.f32 %v1601_v62, %v8462_v35 }
 0x1e0   : > { %v1628_v5 = vsel %vm1033_vm11, %v1612_v2, 0.0  ;;  %v1633_v47 = vsel %vm6316_vm3, %v1617_v0, 0.0 }
 0x1e1   : > { %v1643_v50 = vadd.f32 %v1642_v48, %v1628_v5  ;;  %v1463_v19 = vpop.permute.xlu1 %1462 }
 0x1e2   : > { %v1487_v54 = vmul.f32 %v6022_v25, %v1463_v19 }
 0x1e3   : > { %v1644_v26 = vadd.f32 %v1643_v50, %v1629_v24 }
 0x1e4   : > { %v1599_v27 = vmul.f32 %v1583_v15, %v1487_v54 }
 0x1e5   : > { %v1645_v3 = vadd.f32 %v1644_v26, %v1630_v7 }
 0x1e6   : > { %v1615_v32 = vadd.f32 %v1599_v27, %v8467_v36 }
 0x1e8   : > { %v1631_v33 = vsel %vm1036_vm7, %v1615_v32, 0.0 }
 0x1e9   : > { %v1646_v22 = vadd.f32 %v1645_v3, %v1631_v33 }
 0x1eb   : > { %v1647_v1 = vadd.f32 %v1646_v22, %v1632_v8 }
 0x1ed   : > { %v1648_v25 = vadd.f32 %v1647_v1, %v1633_v47 }
 0x1ef   : > { %v1649_v37 = vrot.slane %v1648_v25, 4 }
 0x1f1   : > { %v1650_v21 = vadd.f32 %v1649_v37, %v1648_v25 }
 0x1f3   : > { %v1651_v57 = vrot.slane %v1650_v21, 2 }
 0x1f5   : > { %v1652_v44 = vadd.f32 %v1651_v57, %v1650_v21 }
 0x1f7   : > { %v1653_v60 = vrot.slane %v1652_v44, 1 }
 0x1f9   : > { %v1654_v24 = vadd.f32 %v1653_v60, %v1652_v44 }
 0x1fb   : > { %1655 = vst [vmem:[%s4334_s10] sm:$0x1] %v1654_v24 }
 0x1fc PF: > { %p3080_p7 = scmp.le.s32.totalorder %s4193_s15, 0 }
 0x1fe   : > { %1659 = sbr.rel (%p3080_p7) target bundleno = 974 (0x3ce), region = 44 }
 0x203   : > { %v6335_v14 = vld [vmem:[%s4325_s24 + $0x20] sm:$0xff]  ;;  %v6338_v4 = vld [vmem:[%s4325_s24 + $0x10] sm:$0xff]  ;;  %v4219_v28 = vmov 0   ;;  %v6347_v6 = vld [vmem:[%s4325_s24 + $0x28] sm:$0xff]  ;;  %v4220_v30 = vmov 1   ;;  %v4221_v61 = vmov 2  }
 0x204   : > { %v6341_v42 = vld [vmem:[%s4325_s24] sm:$0xff]  ;;  %4028 = vset.pattern.permute.xlu2 %v4219_v28  ;;  %4027 = vset.pattern.permute.xlu1 %v4219_v28  ;;  %v6350_v55 = vld [vmem:[%s4325_s24 + $0x18] sm:$0xff]  ;;  %v6353_v11 = vld [vmem:[%s4325_s24 + $0x8] sm:$0xff]  ;;  %s3083_s15 = sld [smem:[#allocation2 + $0x3]] }
 0x205   : > { %4026 = vset.pattern.permute.xlu0 %v4219_v28  ;;  %1706 = vperm.xlu2 %4028, %v6335_v14   ;;  %v6359_v49 = vld [vmem:[%s4325_s24 + $0x40] sm:$0xff]  ;;  %v6362_v8 = vld [vmem:[%s4325_s24 + $0x38] sm:$0xff]  ;;  %v6365_v29 = vld [vmem:[%s4325_s24 + $0x30] sm:$0xff]  ;;  %s1661_s29 = sld [smem:[#allocation2]] }
 0x206   : > { %1696 = vperm.xlu1 %4027, %v6338_v4   ;;  %1686 = vperm.xlu0 %4026, %v6341_v42   ;;  %v6371_v41 = vld [vmem:[%s4325_s24 + $0x58] sm:$0xff]  ;;  %v6374_v46 = vld [vmem:[%s4325_s24 + $0x50] sm:$0xff]  ;;  %v6377_v23 = vld [vmem:[%s4325_s24 + $0x48] sm:$0xff]  ;;  %s6496_s30 = sld [smem:[#allocation2 + $0x4]] }
 0x207   : > { %v6383_v51 = vld [vmem:[%s4325_s24 + $0x70] sm:$0xff]  ;;  %v6386_v17 = vld [vmem:[%s4325_s24 + $0x68] sm:$0xff]  ;;  %v6389_v20 = vld [vmem:[%s4325_s24 + $0x60] sm:$0xff]  ;;  %s6505_s5 = sld [smem:[#allocation2 + $0x1]] }
 0x208   : > { %v6395_v39 = vld [vmem:[%s4325_s24 + $0x78] sm:$0xff]  ;;  %v6416_v10 = vld [vmem:[%s4330_s9] sm:$0xff]  ;;  %s6924_s7 = sld [smem:[#allocation2 + $0x5]] }
 0x209   : > { %v6419_v7 = vperm.slane %v6416_v10, 0  ;;  %s7077_s20 = sld [smem:[#allocation2 + $0x2]] }
 0x20a   : > { %v6426_v59 = vstv %s3083_s15 }
 0x20b   : > { %v6457_v36 = vstv %s1661_s29 }
 0x20d   : > { %1711 = vperm.xlu2 %4028, %v6347_v6  }
 0x20e   : > { %1701 = vperm.xlu1 %4027, %v6350_v55   ;;  %1691 = vperm.xlu0 %4026, %v6353_v11  }
 0x215   : > { %1726 = vperm.xlu2 %4028, %v6359_v49  }
 0x216   : > { %1721 = vperm.xlu1 %4027, %v6362_v8   ;;  %1716 = vperm.xlu0 %4026, %v6365_v29  }
 0x21d   : > { %1741 = vperm.xlu2 %4028, %v6371_v41  }
 0x21e   : > { %1736 = vperm.xlu1 %4027, %v6374_v46   ;;  %1731 = vperm.xlu0 %4026, %v6377_v23  }
 0x225   : > { %1756 = vperm.xlu2 %4028, %v6383_v51  }
 0x226   : > { %1751 = vperm.xlu1 %4027, %v6386_v17   ;;  %1746 = vperm.xlu0 %4026, %v6389_v20  }
 0x22d   : > { %4030 = vset.pattern.permute.xlu2 %v4220_v30 }
 0x22e   : > { %4029 = vset.pattern.permute.xlu1 %v4220_v30  ;;  %1761 = vperm.xlu0 %4026, %v6395_v39  }
 0x22f   : > { %1852 = vperm.xlu2 %4030, %v6353_v11   ;;  %1848 = vperm.xlu1 %4029, %v6341_v42  }
 0x236   : > { %4031 = vset.pattern.permute.xlu0 %v4220_v30 }
 0x237   : > { %1864 = vperm.xlu2 %4030, %v6335_v14   ;;  %1860 = vperm.xlu1 %4029, %v6350_v55  }
 0x238   : > { %1856 = vperm.xlu0 %4031, %v6338_v4  }
 0x23f   : > { %1872 = vperm.xlu2 %4030, %v6365_v29   ;;  %1868 = vperm.xlu1 %4029, %v6347_v6  }
 0x240   : > { %1876 = vperm.xlu0 %4031, %v6362_v8  }
 0x247   : > { %1884 = vperm.xlu2 %4030, %v6377_v23   ;;  %1880 = vperm.xlu1 %4029, %v6359_v49  }
 0x248   : > { %1888 = vperm.xlu0 %4031, %v6374_v46  }
 0x24f   : > { %1896 = vperm.xlu2 %4030, %v6389_v20   ;;  %1892 = vperm.xlu1 %4029, %v6371_v41  }
 0x250   : > { %1900 = vperm.xlu0 %4031, %v6386_v17  }
 0x257   : > { %1908 = vperm.xlu2 %4030, %v6395_v39   ;;  %1904 = vperm.xlu1 %4029, %v6383_v51  }
 0x258   : > { %4032 = vset.pattern.permute.xlu0 %v4221_v61 }
 0x259   : > { %1995 = vperm.xlu0 %4032, %v6341_v42  }
 0x25f   : > { %4034 = vset.pattern.permute.xlu2 %v4221_v61  ;;  %4033 = vset.pattern.permute.xlu1 %v4221_v61  ;;  %v1707_v34 = vpop.permute.xlu2 %1706 }
 0x260   : > { %v6422_v9 = vsub.f32 %v1707_v34, %v6419_v7  ;;  %2003 = vperm.xlu2 %4034, %v6338_v4   ;;  %1999 = vperm.xlu1 %4033, %v6353_v11  }
 0x261   : > { %2015 = vperm.xlu0 %4032, %v6347_v6  }
 0x262   : > { %v1786_v31 = vmul.f32 %v6426_v59, %v6422_v9 }
 0x264   : > { %v3506_v56 = vcvt.f32.s32 %v1786_v31  ;;  %v3509_v2 = vand.u32 2147483648, %v1786_v31  ;;  %v3504_v43 = vand.u32 2147483647, %v1786_v31 }
 0x266   : > { %v3507_v38 = vcvt.s32.f32 %v3506_v56  ;;  %vm6447_vm14 = vcmp.lt.f32.partialorder %v3504_v43, 8388608.0 }
 0x267   : > { %v1712_v45 = vpop.permute.xlu2 %1711 }
 0x268   : > { %v6432_v53 = vsub.f32 %v1712_v45, %v6419_v7  ;;  %2011 = vperm.xlu2 %4034, %v6335_v14   ;;  %2007 = vperm.xlu1 %4033, %v6350_v55   ;;  %v3508_v52 = vand.u32 2147483647, %v3507_v38 }
 0x269   : > { %2027 = vperm.xlu0 %4032, %v6359_v49  }
 0x26a   : > { %v1787_v58 = vmul.f32 %v6426_v59, %v6432_v53  ;;  %v3510_v63 = vor.u32 %v3509_v2, %v3508_v52 }
 0x26c   : > { %v3514_v16 = vcvt.f32.s32 %v1787_v58  ;;  %v3517_v0 = vand.u32 2147483648, %v1787_v58  ;;  %v3512_v40 = vand.u32 2147483647, %v1787_v58  ;;  %v3511_v3 = vsel %vm6447_vm14, %v3510_v63, %v1786_v31 }
 0x26d   : > { %v1819_v60 = vmul.f32 %v3511_v3, %v6457_v36 }
 0x26e   : > { %v3515_v62 = vcvt.s32.f32 %v3514_v16  ;;  %vm6451_vm8 = vcmp.lt.f32.partialorder %v3512_v40, 8388608.0  ;;  %v4222_v40 = vmov 6  }
 0x26f   : > { %v1727_v48 = vpop.permute.xlu2 %1726 }
 0x270   : > { %v6440_v12 = vsub.f32 %v1727_v48, %v6419_v7  ;;  %2023 = vperm.xlu2 %4034, %v6362_v8   ;;  %2019 = vperm.xlu1 %4033, %v6365_v29   ;;  %v3516_v35 = vand.u32 2147483647, %v3515_v62 }
 0x271   : > { %2039 = vperm.xlu0 %4032, %v6371_v41  }
 0x272   : > { %v1790_v13 = vmul.f32 %v6426_v59, %v6440_v12  ;;  %v3518_v50 = vor.u32 %v3517_v0, %v3516_v35 }
 0x274   : > { %v3538_v5 = vcvt.f32.s32 %v1790_v13  ;;  %v3536_v19 = vand.u32 2147483647, %v1790_v13  ;;  %v3541_v15 = vand.u32 2147483648, %v1790_v13  ;;  %v3519_v37 = vsel %vm6451_vm8, %v3518_v50, %v1787_v58 }
 0x275   : > { %v1820_v61 = vmul.f32 %v3519_v37, %v6457_v36  ;;  %v1835_v58 = vsub.f32 %v6422_v9, %v1819_v60  ;;  %v6539_v60 = vperm.slane %v6416_v10, 1 }
 0x276   : > { %v3539_v54 = vcvt.s32.f32 %v3538_v5  ;;  %vm6473_vm5 = vcmp.lt.f32.partialorder %v3536_v19, 8388608.0 }
 0x277   : > { %v1742_v27 = vpop.permute.xlu2 %1741  ;;  %v1836_v0 = vsub.f32 %v6432_v53, %v1820_v61 }
 0x278   : > { %v3540_v32 = vand.u32 2147483647, %v3539_v54  ;;  %v6460_v18 = vsub.f32 %v1742_v27, %v6419_v7  ;;  %v1697_v33 = vpop.permute.xlu1 %1696  ;;  %2035 = vperm.xlu2 %4034, %v6374_v46   ;;  %2031 = vperm.xlu1 %4033, %v6377_v23   ;;  %v1687_v22 = vpop.permute.xlu0 %1686 }
 0x279   : > { %v6465_v1 = vsub.f32 %v1697_v33, %v6419_v7  ;;  %2051 = vperm.xlu0 %4032, %v6383_v51   ;;  %v6469_v25 = vsub.f32 %v1687_v22, %v6419_v7  ;;  %v6531_v33 = vmul.f32 %v1835_v58, %v1835_v58 }
 0x27a   : > { %v3542_v57 = vor.u32 %v3541_v15, %v3540_v32  ;;  %v6479_v44 = vmul.f32 %v6426_v59, %v6460_v18 }
 0x27b   : > { %v6484_v24 = vmul.f32 %v6426_v59, %v6465_v1  ;;  %v6488_v28 = vmul.f32 %v6426_v59, %v6469_v25 }
 0x27c   : > { %v3562_v30 = vcvt.f32.s32 %v6479_v44  ;;  %v3543_v34 = vsel %vm6473_vm5, %v3542_v57, %v1790_v13  ;;  %v3565_v5 = vand.u32 2147483648, %v6479_v44  ;;  %v3560_v53 = vand.u32 2147483647, %v6479_v44 }
 0x27d   : > { %v3490_v31 = vcvt.f32.s32 %v6484_v24  ;;  %v3474_v56 = vcvt.f32.s32 %v6488_v28  ;;  %v1823_v62 = vmul.f32 %v3543_v34, %v6457_v36  ;;  %v3477_v50 = vand.u32 2147483648, %v6488_v28 }
 0x27e   : > { %v3563_v45 = vcvt.s32.f32 %v3562_v30  ;;  %v3493_v54 = vand.u32 2147483648, %v6484_v24  ;;  %v3472_v15 = vand.u32 2147483647, %v6488_v28  ;;  %v3488_v32 = vand.u32 2147483647, %v6484_v24 }
 0x27f   : > { %v3491_v38 = vcvt.s32.f32 %v3490_v31  ;;  %v1757_v16 = vpop.permute.xlu2 %1756  ;;  %v3475_v52 = vcvt.s32.f32 %v3474_v56  ;;  %v1839_v27 = vsub.f32 %v6440_v12, %v1823_v62  ;;  %v6542_v30 = vstv %s6496_s30 }
 0x280   : > { %v3564_v48 = vand.u32 2147483647, %v3563_v45  ;;  %v6501_v2 = vsub.f32 %v1757_v16, %v6419_v7  ;;  %v1702_v43 = vpop.permute.xlu1 %1701  ;;  %2047 = vperm.xlu2 %4034, %v6386_v17   ;;  %2043 = vperm.xlu1 %4033, %v6389_v20   ;;  %v1692_v35 = vpop.permute.xlu0 %1691  ;;  %v6544_v12 = vmul.f32 %v1836_v0, %v1836_v0  ;;  %vm6546_vm13 = vcmp.lt.f32.partialorder %v3560_v53, 8388608.0 }
 0x281   : > { %v3492_v9 = vand.u32 2147483647, %v3491_v38  ;;  %v6509_v13 = vsub.f32 %v1702_v43, %v6419_v7  ;;  %4036 = vset.pattern.permute.xlu0 %v4222_v40  ;;  %v6513_v63 = vsub.f32 %v1692_v35, %v6419_v7  ;;  %v3476_v47 = vand.u32 2147483647, %v3475_v52 }
 0x282   : > { %8475 = vst [vmem:[#allocation28_spill] sm:$0xff] %v6501_v2  ;;  %v6519_v19 = vmul.f32 %v6426_v59, %v6501_v2  ;;  %2226 = vperm.xlu0 %4036, %v6353_v11   ;;  %v3566_v3 = vor.u32 %v3565_v5, %v3564_v48  ;;  %vm6550_vm2 = vcmp.lt.f32.partialorder %v3472_v15, 8388608.0  ;;  %v6555_v45 = vmul.f32 %v1839_v27, %v1839_v27 }
 0x283   : > { %v6527_v26 = vmul.f32 %v6426_v59, %v6509_v13  ;;  %v3494_v22 = vor.u32 %v3493_v54, %v3492_v9  ;;  %v6535_v37 = vmul.f32 %v6426_v59, %v6513_v63  ;;  %v3478_v21 = vor.u32 %v3477_v50, %v3476_v47 }
 0x284   : > { %v3586_v57 = vcvt.f32.s32 %v6519_v19  ;;  %8480 = vst [vmem:[#allocation29_spill] sm:$0xff] %v6555_v45  ;;  %v3567_v56 = vsel %vm6546_vm13, %v3566_v3, %v6479_v44  ;;  %vm6560_vm4 = vcmp.lt.f32.partialorder %v3488_v32, 8388608.0  ;;  %v6567_v62 = vstv %s6505_s5 }
 0x285   : > { %v3498_v31 = vcvt.f32.s32 %v6527_v26  ;;  %v3495_v48 = vsel %vm6560_vm4, %v3494_v22, %v6484_v24  ;;  %v3496_v52 = vand.u32 2147483647, %v6527_v26  ;;  %v3482_v44 = vcvt.f32.s32 %v6535_v37 }
 0x286   : > { %v3479_v0 = vsel %vm6550_vm2, %v3478_v21, %v6488_v28  ;;  %v3587_v9 = vcvt.s32.f32 %v3586_v57  ;;  %v3501_v5 = vand.u32 2147483648, %v6527_v26  ;;  %v3480_v47 = vand.u32 2147483647, %v6535_v37 }
 0x287   : > { %v3499_v43 = vcvt.s32.f32 %v3498_v31  ;;  %v3483_v50 = vcvt.s32.f32 %v3482_v44  ;;  %v3485_v53 = vand.u32 2147483648, %v6535_v37  ;;  %v1826_v15 = vmul.f32 %v3567_v56, %v6457_v36 }
 0x288   : > { %v1722_v38 = vpop.permute.xlu1 %1721  ;;  %4035 = vset.pattern.permute.xlu2 %v4222_v40  ;;  %2055 = vperm.xlu1 %4033, %v6395_v39   ;;  %v1717_v16 = vpop.permute.xlu0 %1716  ;;  %v1817_v27 = vmul.f32 %v3495_v48, %v6457_v36  ;;  %v1815_v32 = vmul.f32 %v3479_v0, %v6457_v36  ;;  %v3588_v61 = vand.u32 2147483647, %v3587_v9  ;;  %vm6598_vm1 = vcmp.lt.f32.partialorder %v3496_v52, 8388608.0 }
 0x289   : > { %v1853_v35 = vpop.permute.xlu2 %1852  ;;  %2222 = vperm.xlu2 %4035, %v6341_v42   ;;  %v3500_v24 = vand.u32 2147483647, %v3499_v43  ;;  %v6583_v54 = vsub.f32 %v1722_v38, %v6419_v7  ;;  %v6588_v28 = vsub.f32 %v1717_v16, %v6419_v7  ;;  %v3484_v21 = vand.u32 2147483647, %v3483_v50 }
 0x28a   : > { %2246 = vperm.xlu0 %4036, %v6365_v29   ;;  %v6591_v3 = vsub.f32 %v1853_v35, %v6539_v60  ;;  %vm6602_vm12 = vcmp.lt.f32.partialorder %v3480_v47, 8388608.0  ;;  %v3584_v58 = vand.u32 2147483647, %v6519_v19  ;;  %v6619_v52 = vsub.f32 %v6460_v18, %v1826_v15 }
 0x28b   : > { %v3502_v22 = vor.u32 %v3501_v5, %v3500_v24  ;;  %v6596_v57 = vmul.f32 %v6426_v59, %v6583_v54  ;;  %v6608_v56 = vmul.f32 %v6426_v59, %v6588_v28  ;;  %v3486_v16 = vor.u32 %v3485_v53, %v3484_v21 }
 0x28c   : > { %v6616_v48 = vmul.f32 %v6542_v30, %v6591_v3  ;;  %8487 = vst [vmem:[#allocation30_spill] sm:$0xff] %v6619_v52  ;;  %v3589_v43 = vand.u32 2147483648, %v6519_v19  ;;  %v1831_v5 = vsub.f32 %v6469_v25, %v1815_v32  ;;  %vm6681_vm11 = vcmp.lt.f32.partialorder %v3584_v58, 8388608.0 }
 0x28d   : > { %v3503_v38 = vsel %vm6598_vm1, %v3502_v22, %v6527_v26  ;;  %v3528_v44 = vand.u32 2147483647, %v6596_v57  ;;  %v3530_v35 = vcvt.f32.s32 %v6596_v57  ;;  %v1833_v26 = vsub.f32 %v6465_v1, %v1817_v27 }
 0x28e   : > { %v3487_v47 = vsel %vm6602_vm12, %v3486_v16, %v6535_v37  ;;  %v3522_v18 = vcvt.f32.s32 %v6608_v56  ;;  %v6633_v50 = vor.u32 %v3589_v43, %v3588_v61  ;;  %v3520_v1 = vand.u32 2147483647, %v6608_v56 }
 0x28f   : > { %v3531_v53 = vcvt.s32.f32 %v3530_v35  ;;  %v1816_v25 = vmul.f32 %v3487_v47, %v6457_v36  ;;  %v3525_v37 = vand.u32 2147483648, %v6608_v56  ;;  %v3610_v27 = vcvt.f32.s32 %v6616_v48 }
 0x290   : > { %v1737_v0 = vpop.permute.xlu1 %1736  ;;  %4037 = vset.pattern.permute.xlu1 %v4222_v40  ;;  %v1732_v9 = vpop.permute.xlu0 %1731  ;;  %v1818_v40 = vmul.f32 %v3503_v38, %v6457_v36  ;;  %v3523_v15 = vcvt.s32.f32 %v3522_v18  ;;  %vm6641_vm15 = vcmp.lt.f32.partialorder %v3528_v44, 8388608.0  ;;  %v3533_v21 = vand.u32 2147483648, %v6596_v57 }
 0x291   : > { %v1865_v24 = vpop.permute.xlu2 %1864  ;;  %2234 = vperm.xlu2 %4035, %v6350_v55   ;;  %2230 = vperm.xlu1 %4037, %v6338_v4   ;;  %v3532_v22 = vand.u32 2147483647, %v3531_v53  ;;  %v3608_v61 = vand.u32 2147483647, %v6616_v48  ;;  %v3611_v31 = vcvt.s32.f32 %v3610_v27  ;;  %v3613_v38 = vand.u32 2147483648, %v6616_v48 }
 0x292   : > { %2258 = vperm.xlu0 %4036, %v6377_v23   ;;  %v3524_v34 = vand.u32 2147483647, %v3523_v15  ;;  %v6649_v16 = vsub.f32 %v1737_v0, %v6419_v7  ;;  %vm6651_vm6 = vcmp.lt.f32.partialorder %v3520_v1, 8388608.0  ;;  %v6656_v44 = vsub.f32 %v1732_v9, %v6419_v7 }
 0x293   : > { %v3534_v43 = vor.u32 %v3533_v21, %v3532_v22  ;;  %v6659_v47 = vsub.f32 %v1865_v24, %v6539_v60  ;;  %v1832_v18 = vsub.f32 %v6513_v63, %v1816_v25  ;;  %v3612_v15 = vand.u32 2147483647, %v3611_v31 }
 0x294   : > { %v3526_v53 = vor.u32 %v3525_v37, %v3524_v34  ;;  %v6664_v27 = vmul.f32 %v6426_v59, %v6649_v16  ;;  %v6666_v0 = vmul.f32 %v1833_v26, %v1833_v26  ;;  %vm6671_vm0 = vcmp.lt.f32.partialorder %v3608_v61, 8388608.0 }
 0x295   : > { %v3535_v1 = vsel %vm6641_vm15, %v3534_v43, %v6596_v57  ;;  %v6677_v24 = vmul.f32 %v6426_v59, %v6656_v44  ;;  %v6679_v37 = vmul.f32 %v1831_v5, %v1831_v5  ;;  %v3614_v26 = vor.u32 %v3613_v38, %v3612_v15 }
 0x296   : > { %v3527_v57 = vsel %vm6651_vm6, %v3526_v53, %v6608_v56  ;;  %v3591_v5 = vsel %vm6681_vm11, %v6633_v50, %v6519_v19  ;;  %v1822_v58 = vmul.f32 %v3535_v1, %v6457_v36  ;;  %v3554_v21 = vcvt.f32.s32 %v6664_v27 }
 0x297   : > { %v1933_v61 = vmul.f32 %v6542_v30, %v6659_v47  ;;  %v1834_v56 = vsub.f32 %v6509_v13, %v1818_v40  ;;  %v2142_v34 = vmul.f32 %v1832_v18, %v1832_v18  ;;  %v3615_v31 = vsel %vm6671_vm0, %v3614_v26, %v6616_v48 }
 0x298   : > { %v1752_v63 = vpop.permute.xlu1 %1751  ;;  %v1747_v25 = vpop.permute.xlu0 %1746  ;;  %v3546_v38 = vcvt.f32.s32 %v6677_v24  ;;  %v1821_v19 = vmul.f32 %v3527_v57, %v6457_v36  ;;  %v1963_v50 = vmul.f32 %v3615_v31, %v6567_v62  ;;  %v3552_v43 = vand.u32 2147483647, %v6664_v27 }
 0x299   : > { %v1873_v32 = vpop.permute.xlu2 %1872  ;;  %2242 = vperm.xlu2 %4035, %v6347_v6   ;;  %2238 = vperm.xlu1 %4037, %v6335_v14   ;;  %v3555_v35 = vcvt.s32.f32 %v3554_v21  ;;  %v3557_v53 = vand.u32 2147483648, %v6664_v27  ;;  %v3549_v13 = vand.u32 2147483648, %v6677_v24  ;;  %v1838_v40 = vsub.f32 %v6583_v54, %v1822_v58 }
 0x29a   : > { %2270 = vperm.xlu0 %4036, %v6389_v20   ;;  %v3544_v20 = vand.u32 2147483647, %v6677_v24  ;;  %v3547_v15 = vcvt.s32.f32 %v3546_v38  ;;  %v1979_v48 = vsub.f32 %v6591_v3, %v1963_v50  ;;  %v3634_v1 = vcvt.f32.s32 %v1933_v61 }
 0x29b   : > { %v3556_v18 = vand.u32 2147483647, %v3555_v35  ;;  %v3632_v22 = vand.u32 2147483647, %v1933_v61  ;;  %v3637_v57 = vand.u32 2147483648, %v1933_v61  ;;  %v6713_v26 = vsub.f32 %v1752_v63, %v6419_v7 }
 0x29c   : > { %v3548_v9 = vand.u32 2147483647, %v3547_v15  ;;  %v2158_v21 = vmul.f32 %v1979_v48, %v1979_v48  ;;  %v3635_v2 = vcvt.s32.f32 %v3634_v1  ;;  %v6716_v52 = vsub.f32 %v1747_v25, %v6419_v7 }
 0x29d   : > { %v3558_v31 = vor.u32 %v3557_v53, %v3556_v18  ;;  %v1837_v45 = vsub.f32 %v6588_v28, %v1821_v19  ;;  %vm6719_vm10 = vcmp.lt.f32.partialorder %v3552_v43, 8388608.0  ;;  %v6725_v58 = vmul.f32 %v6426_v59, %v6713_v26 }
 0x29e   : > { %v3550_v3 = vor.u32 %v3549_v13, %v3548_v9  ;;  %v6728_v35 = vadd.f32 %v2158_v21, %v2142_v34  ;;  %vm6730_vm3 = vcmp.lt.f32.partialorder %v3544_v20, 8388608.0  ;;  %v3636_v28 = vand.u32 2147483647, %v3635_v2 }
 0x29f   : > { %v1794_v19 = vmul.f32 %v6426_v59, %v6716_v52  ;;  %v6739_v43 = vmul.f32 %v3591_v5, %v6457_v36  ;;  %v6741_v53 = vmul.f32 %v1834_v56, %v1834_v56  ;;  %vm3633_vm9 = vcmp.lt.f32.partialorder %v3632_v22, 8388608.0 }
 0x2a0   : > { %v1762_v38 = vpop.permute.xlu0 %1761  ;;  %v3638_v34 = vor.u32 %v3637_v57, %v3636_v28  ;;  %v6747_v2 = vsub.f32 %v1873_v32, %v6539_v60  ;;  %v3578_v5 = vcvt.f32.s32 %v6725_v58  ;;  %v6756_v13 = vmul.f32 %v1838_v40, %v1838_v40 }
 0x2a1   : > { %v1885_v63 = vpop.permute.xlu2 %1884  ;;  %2254 = vperm.xlu2 %4035, %v6359_v49   ;;  %v1849_v50 = vpop.permute.xlu1 %1848  ;;  %2250 = vperm.xlu1 %4037, %v6362_v8   ;;  %v3559_v49 = vsel %vm6719_vm10, %v3558_v31, %v6664_v27  ;;  %v6750_v20 = vsub.f32 %v1762_v38, %v6419_v7  ;;  %v3568_v56 = vand.u32 2147483647, %v1794_v19  ;;  %v3570_v15 = vcvt.f32.s32 %v1794_v19 }
 0x2a2   : > { %2282 = vperm.xlu0 %4036, %v6395_v39   ;;  %v3551_v39 = vsel %vm6730_vm3, %v3550_v3, %v6677_v24  ;;  %v6758_v48 = vmul.f32 %v1837_v45, %v1837_v45  ;;  %v1825_v27 = vmul.f32 %v3559_v49, %v6457_v36  ;;  %v3639_v18 = vsel %vm3633_vm9, %v3638_v34, %v1933_v61 }
 0x2a3   : > { %v1966_v32 = vmul.f32 %v3639_v18, %v6567_v62  ;;  %v3571_v1 = vcvt.s32.f32 %v3570_v15  ;;  %v3573_v9 = vand.u32 2147483648, %v1794_v19  ;;  %v1824_v22 = vmul.f32 %v3551_v39, %v6457_v36 }
 0x2a4   : > { %v3581_v24 = vand.u32 2147483648, %v6725_v58  ;;  %v1935_v57 = vmul.f32 %v6542_v30, %v6747_v2  ;;  %v6769_v45 = vmul.f32 %v6426_v59, %v6750_v20  ;;  %v3579_v61 = vcvt.s32.f32 %v3578_v5 }
 0x2a5   : > { %v1982_v40 = vsub.f32 %v6659_v47, %v1966_v32  ;;  %vm6772_vm7 = vcmp.lt.f32.partialorder %v3568_v56, 8388608.0  ;;  %v3572_v31 = vand.u32 2147483647, %v3571_v1  ;;  %v6778_v28 = vsub.f32 %v1885_v63, %v6539_v60 }
 0x2a6   : > { %v3648_v3 = vand.u32 2147483647, %v1935_v57  ;;  %v3650_v25 = vcvt.f32.s32 %v1935_v57  ;;  %v6781_v59 = vsub.f32 %v1849_v50, %v6539_v60  ;;  %v4223_v47 = vmov 3  }
 0x2a7   : > { %v2161_v34 = vmul.f32 %v1982_v40, %v1982_v40  ;;  %v3574_v39 = vor.u32 %v3573_v9, %v3572_v31  ;;  %v3592_v5 = vand.u32 2147483647, %v6769_v45  ;;  %v6789_v63 = vsub.f32 %v6649_v16, %v1825_v27 }
 0x2a8   : > { %v1840_v50 = vsub.f32 %v6656_v44, %v1824_v22  ;;  %v3651_v56 = vcvt.s32.f32 %v3650_v25  ;;  %v3653_v15 = vand.u32 2147483648, %v1935_v57  ;;  %v3597_v9 = vand.u32 2147483648, %v6769_v45 }
 0x2a9   : > { %v1897_v38 = vpop.permute.xlu2 %1896  ;;  %2266 = vperm.xlu2 %4035, %v6371_v41   ;;  %v1861_v54 = vpop.permute.xlu1 %1860  ;;  %2262 = vperm.xlu1 %4037, %v6374_v46   ;;  %v3594_v41 = vcvt.f32.s32 %v6769_v45  ;;  %v6793_v18 = vadd.f32 %v2161_v34, %v6531_v33  ;;  %v3575_v32 = vsel %vm6772_vm7, %v3574_v39, %v1794_v19  ;;  %v3580_v40 = vand.u32 2147483647, %v3579_v61 }
 0x2aa   : > { %4040 = vset.pattern.permute.xlu0 %v4223_v47  ;;  %v1857_v49 = vpop.permute.xlu0 %1856  ;;  %v1827_v31 = vmul.f32 %v3575_v32, %v6457_v36  ;;  %v1938_v16 = vmul.f32 %v6542_v30, %v6778_v28  ;;  %vm6801_vm14 = vcmp.lt.f32.partialorder %v3648_v3, 8388608.0  ;;  %vm6805_vm8 = vcmp.lt.f32.partialorder %v3592_v5, 8388608.0 }
 0x2ab   : > { %2535 = vperm.xlu0 %4040, %v6338_v4   ;;  %8502 = vst [vmem:[#allocation31_spill] sm:$0xff] %v6793_v18  ;;  %v3595_v1 = vcvt.s32.f32 %v3594_v41  ;;  %v3652_v4 = vand.u32 2147483647, %v3651_v56  ;;  %v1929_v19 = vmul.f32 %v6542_v30, %v6781_v59  ;;  %v6813_v25 = vsub.f32 %v1897_v38, %v6539_v60 }
 0x2ac   : > { %v1843_v22 = vsub.f32 %v6716_v52, %v1827_v31  ;;  %v3672_v21 = vand.u32 2147483647, %v1938_v16  ;;  %v3674_v3 = vcvt.f32.s32 %v1938_v16  ;;  %v6816_v41 = vsub.f32 %v1861_v54, %v6539_v60 }
 0x2ad   : > { %v3596_v27 = vand.u32 2147483647, %v3595_v1  ;;  %v3654_v61 = vor.u32 %v3653_v15, %v3652_v4  ;;  %v3600_v39 = vand.u32 2147483647, %v1929_v19  ;;  %v6819_v32 = vmul.f32 %v1840_v50, %v1840_v50 }
 0x2ae   : > { %v6821_v1 = vor.u32 %v3581_v24, %v3580_v40  ;;  %v3602_v15 = vcvt.f32.s32 %v1929_v19  ;;  %v3675_v31 = vcvt.s32.f32 %v3674_v3  ;;  %v3677_v4 = vand.u32 2147483648, %v1938_v16 }
 0x2af   : > { %v3598_v34 = vor.u32 %v3597_v9, %v3596_v27  ;;  %v3655_v52 = vsel %vm6801_vm14, %v3654_v61, %v1935_v57  ;;  %v6826_v9 = vmul.f32 %v1843_v22, %v1843_v22  ;;  %vm6833_vm5 = vcmp.lt.f32.partialorder %v3672_v21, 8388608.0 }
 0x2b0   : > { %v1968_v54 = vmul.f32 %v3655_v52, %v6567_v62  ;;  %v3603_v57 = vcvt.s32.f32 %v3602_v15  ;;  %v1941_v50 = vmul.f32 %v6542_v30, %v6813_v25  ;;  %v3676_v44 = vand.u32 2147483647, %v3675_v31 }
 0x2b1   : > { %v1909_v5 = vpop.permute.xlu2 %1908  ;;  %2278 = vperm.xlu2 %4035, %v6383_v51   ;;  %v1869_v56 = vpop.permute.xlu1 %1868  ;;  %2274 = vperm.xlu1 %4037, %v6386_v17   ;;  %v3599_v51 = vsel %vm6805_vm8, %v3598_v34, %v6769_v45  ;;  %vm6840_vm13 = vcmp.lt.f32.partialorder %v3600_v39, 8388608.0  ;;  %v3605_v45 = vand.u32 2147483648, %v1929_v19  ;;  %v6847_v52 = vsub.f32 %v1857_v49, %v6539_v60 }
 0x2b2   : > { %v1877_v38 = vpop.permute.xlu0 %1876  ;;  %v1984_v40 = vsub.f32 %v6747_v2, %v1968_v54  ;;  %v3604_v33 = vand.u32 2147483647, %v3603_v57  ;;  %v3696_v22 = vand.u32 2147483647, %v1941_v50  ;;  %v3698_v61 = vcvt.f32.s32 %v1941_v50 }
 0x2b3   : > { %2555 = vperm.xlu0 %4040, %v6362_v8   ;;  %v1932_v8 = vmul.f32 %v6542_v30, %v6816_v41  ;;  %v3678_v34 = vor.u32 %v3677_v4, %v3676_v44  ;;  %v1830_v2 = vmul.f32 %v3599_v51, %v6457_v36  ;;  %v3701_v54 = vand.u32 2147483648, %v1941_v50 }
 0x2b4   : > { %v2163_v21 = vmul.f32 %v1984_v40, %v1984_v40  ;;  %v3606_v15 = vor.u32 %v3605_v45, %v3604_v33  ;;  %v3699_v39 = vcvt.s32.f32 %v3698_v61  ;;  %vm6855_vm2 = vcmp.lt.f32.partialorder %v3696_v22, 8388608.0 }
 0x2b5   : > { %v3624_v3 = vand.u32 2147483647, %v1932_v8  ;;  %v3679_v57 = vsel %vm6833_vm5, %v3678_v34, %v1938_v16  ;;  %v3626_v4 = vcvt.f32.s32 %v1932_v8  ;;  %v1931_v22 = vmul.f32 %v6542_v30, %v6847_v52 }
 0x2b6   : > { %v6851_v31 = vadd.f32 %v2163_v21, %v6758_v48  ;;  %v1971_v40 = vmul.f32 %v3679_v57, %v6567_v62  ;;  %v3607_v51 = vsel %vm6840_vm13, %v3606_v15, %v1929_v19  ;;  %v3700_v44 = vand.u32 2147483647, %v3699_v39 }
 0x2b7   : > { %vm6863_vm4 = vcmp.lt.f32.partialorder %v3624_v3, 8388608.0  ;;  %v1962_v33 = vmul.f32 %v3607_v51, %v6567_v62  ;;  %v3627_v45 = vcvt.s32.f32 %v3626_v4  ;;  %v6875_v19 = vsub.f32 %v1909_v5, %v6539_v60 }
 0x2b8   : > { %v3702_v27 = vor.u32 %v3701_v54, %v3700_v44  ;;  %v3629_v61 = vand.u32 2147483648, %v1932_v8  ;;  %v6881_v21 = vsub.f32 %v1869_v56, %v6539_v60  ;;  %v3618_v3 = vcvt.f32.s32 %v1931_v22 }
 0x2b9   : > { %4039 = vset.pattern.permute.xlu2 %v4223_v47  ;;  %v1881_v49 = vpop.permute.xlu1 %1880  ;;  %4038 = vset.pattern.permute.xlu1 %v4223_v47  ;;  %v1987_v47 = vsub.f32 %v6778_v28, %v1971_v40  ;;  %v3628_v34 = vand.u32 2147483647, %v3627_v45  ;;  %v6885_v15 = vsub.f32 %v1877_v38, %v6539_v60  ;;  %v3616_v39 = vand.u32 2147483647, %v1931_v22 }
 0x2ba   : > { %v1889_v16 = vpop.permute.xlu0 %1888  ;;  %v6868_v24 = vpop.permute.xlu2 %2003  ;;  %2531 = vperm.xlu2 %4039, %v6353_v11   ;;  %2527 = vperm.xlu1 %4038, %v6341_v42   ;;  %v1978_v11 = vsub.f32 %v6781_v59, %v1962_v33  ;;  %v3703_v42 = vsel %vm6855_vm2, %v3702_v27, %v1941_v50  ;;  %v3621_v57 = vand.u32 2147483648, %v1931_v22  ;;  %v3619_v4 = vcvt.s32.f32 %v3618_v3 }
 0x2bb   : > { %2567 = vperm.xlu0 %4040, %v6374_v46   ;;  %v2166_v5 = vmul.f32 %v1987_v47, %v1987_v47  ;;  %v1944_v46 = vmul.f32 %v6542_v30, %v6875_v19  ;;  %v1974_v54 = vmul.f32 %v3703_v42, %v6567_v62  ;;  %v3630_v56 = vor.u32 %v3629_v61, %v3628_v34 }
 0x2bc   : > { %v2157_v28 = vmul.f32 %v1978_v11, %v1978_v11  ;;  %v1846_v51 = vsub.f32 %v6750_v20, %v1830_v2  ;;  %vm6905_vm1 = vcmp.lt.f32.partialorder %v3616_v39, 8388608.0  ;;  %v3620_v47 = vand.u32 2147483647, %v3619_v4 }
 0x2bd   : > { %v6893_v59 = vadd.f32 %v2166_v5, %v6819_v32  ;;  %v3720_v40 = vand.u32 2147483647, %v1944_v46  ;;  %v3722_v38 = vcvt.f32.s32 %v1944_v46  ;;  %v1990_v50 = vsub.f32 %v6813_v25, %v1974_v54 }
 0x2be   : > { %v6897_v7 = vadd.f32 %v2157_v28, %v6679_v37  ;;  %v3631_v44 = vsel %vm6863_vm4, %v3630_v56, %v1932_v8  ;;  %v3725_v25 = vand.u32 2147483648, %v1944_v46  ;;  %v1934_v8 = vmul.f32 %v6542_v30, %v6881_v21 }
 0x2bf   : > { %v1965_v45 = vmul.f32 %v3631_v44, %v6567_v62  ;;  %v3723_v27 = vcvt.s32.f32 %v3722_v38  ;;  %v2169_v37 = vmul.f32 %v1990_v50, %v1990_v50  ;;  %v1936_v2 = vmul.f32 %v6542_v30, %v6885_v15 }
 0x2c0   : > { %v3622_v11 = vor.u32 %v3621_v57, %v3620_v47  ;;  %vm6920_vm12 = vcmp.lt.f32.partialorder %v3720_v40, 8388608.0  ;;  %v3642_v5 = vcvt.f32.s32 %v1934_v8  ;;  %v6931_v42 = vsub.f32 %v1881_v49, %v6539_v60 }
 0x2c1   : > { %v6902_v33 = vpop.permute.xlu1 %1892  ;;  %v1981_v48 = vsub.f32 %v6816_v41, %v1965_v45  ;;  %v3724_v3 = vand.u32 2147483647, %v3723_v27  ;;  %v3640_v54 = vand.u32 2147483647, %v1934_v8  ;;  %v3658_v4 = vcvt.f32.s32 %v1936_v2 }
 0x2c2   : > { %v6909_v61 = vpop.permute.xlu0 %1900  ;;  %v6911_v20 = vpop.permute.xlu2 %2011  ;;  %2543 = vperm.xlu2 %4039, %v6335_v14   ;;  %2539 = vperm.xlu1 %4038, %v6350_v55   ;;  %v6928_v14 = vadd.f32 %v2169_v37, %v6826_v9  ;;  %v6934_v55 = vsub.f32 %v1889_v16, %v6539_v60  ;;  %v3623_v39 = vsel %vm6905_vm1, %v3622_v11, %v1931_v22  ;;  %v3643_v57 = vcvt.s32.f32 %v3642_v5 }
 0x2c3   : > { %2579 = vperm.xlu0 %4040, %v6386_v17   ;;  %v2160_v41 = vmul.f32 %v1981_v48, %v1981_v48  ;;  %v3726_v28 = vor.u32 %v3725_v25, %v3724_v3  ;;  %v1964_v56 = vmul.f32 %v3623_v39, %v6567_v62  ;;  %v3645_v17 = vand.u32 2147483648, %v1934_v8 }
 0x2c4   : > { %8519 = vst [vmem:[#allocation32_spill] sm:$0xff] %v6928_v14  ;;  %v3656_v40 = vand.u32 2147483647, %v1936_v2  ;;  %v3661_v16 = vand.u32 2147483648, %v1936_v2  ;;  %v3644_v22 = vand.u32 2147483647, %v3643_v57  ;;  %v3659_v44 = vcvt.s32.f32 %v3658_v4 }
 0x2c5   : > { %v6940_v9 = vadd.f32 %v2160_v41, %v6741_v53  ;;  %v3727_v49 = vsel %vm6920_vm12, %v3726_v28, %v1944_v46  ;;  %v1980_v38 = vsub.f32 %v6847_v52, %v1964_v56  ;;  %v8520_v32 = vand.u32 2147483647, %v6725_v58 }
 0x2c6   : > { %v1977_v50 = vmul.f32 %v3727_v49, %v6567_v62  ;;  %v2156_v53 = vmul.f32 %v1846_v51, %v1846_v51  ;;  %vm6954_vm6 = vcmp.lt.f32.partialorder %v3640_v54, 8388608.0  ;;  %v1937_v52 = vmul.f32 %v6542_v30, %v6931_v42 }
 0x2c7   : > { %vm6950_vm15 = vcmp.lt.f32.partialorder %v8520_v32, 8388608.0  ;;  %v6962_v27 = vmul.f32 %v6542_v30, %v6934_v55  ;;  %v2159_v25 = vmul.f32 %v1980_v38, %v1980_v38  ;;  %v3646_v11 = vor.u32 %v3645_v17, %v3644_v22 }
 0x2c8   : > { %v1993_v48 = vsub.f32 %v6875_v19, %v1977_v50  ;;  %v3660_v51 = vand.u32 2147483647, %v3659_v44  ;;  %vm6971_vm0 = vcmp.lt.f32.partialorder %v3656_v40, 8388608.0  ;;  %v3666_v5 = vcvt.f32.s32 %v1937_v52 }
 0x2c9   : > { %v6946_v45 = vpop.permute.xlu1 %1904  ;;  %v6976_v41 = vperm.slane %v6416_v10, 2  ;;  %v6979_v39 = vstv %s6924_s7  ;;  %v3647_v28 = vsel %vm6954_vm6, %v3646_v11, %v1934_v8  ;;  %v3664_v56 = vand.u32 2147483647, %v1937_v52 }
 0x2ca   : > { %v6964_v37 = vpop.permute.xlu2 %2023  ;;  %2551 = vperm.xlu2 %4039, %v6365_v29   ;;  %2547 = vperm.xlu1 %4038, %v6347_v6   ;;  %v6982_v29 = vadd.f32 %v2159_v25, %v6666_v0  ;;  %v2172_v19 = vmul.f32 %v1993_v48, %v1993_v48  ;;  %v3662_v6 = vor.u32 %v3661_v16, %v3660_v51  ;;  %v3667_v57 = vcvt.s32.f32 %v3666_v5  ;;  %v7025_v48 = vld [vmem:[%s4325_s24 + $0x40] sm:$0xff] }
 0x2cb   : > { %v6969_v34 = vpop.permute.xlu0 %1995  ;;  %v1967_v54 = vmul.f32 %v3647_v28, %v6567_v62  ;;  %v3669_v17 = vand.u32 2147483648, %v1937_v52  ;;  %v3680_v49 = vand.u32 2147483647, %v6962_v27  ;;  %v3682_v0 = vcvt.f32.s32 %v6962_v27  ;;  %8528 = vst [vmem:[#allocation34_spill] sm:$0xff] %v7025_v48 }
 0x2cc   : > { %v6987_v4 = vadd.f32 %v2172_v19, %v2156_v53  ;;  %v3663_v10 = vsel %vm6971_vm0, %v3662_v6, %v1936_v2  ;;  %v3668_v8 = vand.u32 2147483647, %v3667_v57  ;;  %v6997_v16 = vsub.f32 %v6868_v24, %v6976_v41 }
 0x2cd   : > { %v1983_v40 = vsub.f32 %v6881_v21, %v1967_v54  ;;  %v1969_v38 = vmul.f32 %v3663_v10, %v6567_v62  ;;  %v3683_v50 = vcvt.s32.f32 %v3682_v0  ;;  %v3685_v22 = vand.u32 2147483648, %v6962_v27 }
 0x2ce   : > { %8527 = vst [vmem:[#allocation33_spill] sm:$0xff] %v6987_v4  ;;  %v7002_v2 = vsub.f32 %v6902_v33, %v6539_v60  ;;  %v7006_v44 = vsub.f32 %v6909_v61, %v6539_v60  ;;  %v3670_v53 = vor.u32 %v3669_v17, %v3668_v8  ;;  %v7011_v24 = vmul.f32 %v6979_v39, %v6997_v16 }
 0x2cf   : > { %v2162_v21 = vmul.f32 %v1983_v40, %v1983_v40  ;;  %v1985_v32 = vsub.f32 %v6885_v15, %v1969_v38  ;;  %v3583_v33 = vsel %vm6950_vm15, %v6821_v1, %v6725_v58  ;;  %vm3665_vm11 = vcmp.lt.f32.partialorder %v3664_v56, 8388608.0 }
 0x2d0   : > { %v3684_v61 = vand.u32 2147483647, %v3683_v50  ;;  %v1940_v25 = vmul.f32 %v6542_v30, %v7002_v2  ;;  %v3671_v51 = vsel %vm3665_vm11, %v3670_v53, %v1937_v52  ;;  %vm3681_vm10 = vcmp.lt.f32.partialorder %v3680_v49, 8388608.0 }
 0x2d1   : > { %v2164_v11 = vmul.f32 %v1985_v32, %v1985_v32  ;;  %v1970_v58 = vmul.f32 %v3671_v51, %v6567_v62  ;;  %v3746_v47 = vcvt.f32.s32 %v7011_v24  ;;  %v1942_v5 = vmul.f32 %v6542_v30, %v7006_v44 }
 0x2d2   : > { %2563 = vperm.xlu2 %4039, %v6377_v23   ;;  %v7014_v46 = vpop.permute.xlu1 %1999  ;;  %v7022_v15 = vpop.permute.xlu2 %2035  ;;  %2559 = vperm.xlu1 %4038, %v7025_v48   ;;  %v7029_v23 = vadd.f32 %v2162_v21, %v6544_v12  ;;  %v3686_v1 = vor.u32 %v3685_v22, %v3684_v61  ;;  %v2151_v19 = vmul.f32 %v6789_v63, %v6789_v63  ;;  %v3690_v12 = vcvt.f32.s32 %v1940_v25  ;;  %v8531_v22 = vld [vmem:[#allocation29_spill] sm:$0xff] }
 0x2d3   : > { %v7031_v3 = vpop.permute.xlu0 %2015  ;;  %v7040_v28 = vadd.f32 %v2164_v11, %v6756_v13  ;;  %v7044_v52 = vsub.f32 %v6911_v20, %v6976_v41  ;;  %v1828_v6 = vmul.f32 %v3583_v33, %v6457_v36  ;;  %v1986_v54 = vsub.f32 %v6931_v42, %v1970_v58  ;;  %v7071_v33 = vld [vmem:[%s4325_s24 + $0x58] sm:$0xff] }
 0x2d4   : > { %v3687_v56 = vsel %vm3681_vm10, %v3686_v1, %v6962_v27  ;;  %v3744_v57 = vand.u32 2147483647, %v7011_v24  ;;  %v3747_v63 = vcvt.s32.f32 %v3746_v47  ;;  %v3749_v13 = vand.u32 2147483648, %v7011_v24  ;;  %v7058_v27 = vld [vmem:[%s4325_s24 + $0x60] sm:$0xff]  ;;  %8532 = vst [vmem:[#allocation29_spill] sm:$0xff] %v7071_v33  ;;  %v8533_v1 = vld [vmem:[#allocation30_spill] sm:$0xff] }
 0x2d5   : > { %8529 = vst [vmem:[#allocation35_spill] sm:$0xff] %v7040_v28  ;;  %v1972_v17 = vmul.f32 %v3687_v56, %v6567_v62  ;;  %v3691_v10 = vcvt.s32.f32 %v3690_v12  ;;  %v2165_v49 = vmul.f32 %v1986_v54, %v1986_v54  ;;  %v3688_v0 = vand.u32 2147483647, %v1940_v25  ;;  %v8534_v54 = vld [vmem:[#allocation28_spill] sm:$0xff] }
 0x2d6   : > { %v3693_v20 = vand.u32 2147483648, %v1940_v25  ;;  %v3706_v40 = vcvt.f32.s32 %v1942_v5  ;;  %v3704_v8 = vand.u32 2147483647, %v1942_v5  ;;  %v7055_v42 = vmul.f32 %v6979_v39, %v7044_v52  ;;  %8530 = vst [vmem:[#allocation36_spill] sm:$0xff] %v7058_v27 }
 0x2d7   : > { %v1988_v36 = vsub.f32 %v6934_v55, %v1972_v17  ;;  %v3692_v38 = vand.u32 2147483647, %v3691_v10  ;;  %v7064_v21 = vadd.f32 %v2165_v49, %v8531_v22  ;;  %v3709_v53 = vand.u32 2147483648, %v1942_v5 }
 0x2d8   : > { %v3707_v32 = vcvt.s32.f32 %v3706_v40  ;;  %v7068_v55 = vsub.f32 %v6946_v45, %v6539_v60  ;;  %v3748_v11 = vand.u32 2147483647, %v3747_v63  ;;  %v3762_v58 = vcvt.f32.s32 %v7055_v42 }
 0x2d9   : > { %v2167_v61 = vmul.f32 %v1988_v36, %v1988_v36  ;;  %v3694_v51 = vor.u32 %v3693_v20, %v3692_v38  ;;  %v2152_v47 = vmul.f32 %v8533_v1, %v8533_v1  ;;  %vm3689_vm3 = vcmp.lt.f32.partialorder %v3688_v0, 8388608.0 }
 0x2da   : > { %2575 = vperm.xlu2 %4039, %v7058_v27   ;;  %v7061_v50 = vpop.permute.xlu1 %2007  ;;  %2571 = vperm.xlu1 %4038, %v7071_v33   ;;  %v3708_v12 = vand.u32 2147483647, %v3707_v32  ;;  %v1943_v60 = vmul.f32 %v6542_v30, %v7068_v55  ;;  %v7081_v45 = vpop.permute.xlu2 %2047  ;;  %v7085_v56 = vsub.f32 %v8534_v54, %v6739_v43  ;;  %vm3705_vm9 = vcmp.lt.f32.partialorder %v3704_v8, 8388608.0  ;;  %v7110_v32 = vld [vmem:[%s4325_s24 + $0x78] sm:$0xff] }
 0x2db   : > { %v7087_v17 = vadd.f32 %v2167_v61, %v2151_v19  ;;  %v3695_v63 = vsel %vm3689_vm3, %v3694_v51, %v1940_v25  ;;  %v7089_v10 = vpop.permute.xlu0 %2027  ;;  %v1844_v49 = vsub.f32 %v6713_v26, %v1828_v6  ;;  %v3763_v40 = vcvt.s32.f32 %v3762_v58 }
 0x2dc   : > { %v1973_v0 = vmul.f32 %v3695_v63, %v6567_v62  ;;  %v3710_v20 = vor.u32 %v3709_v53, %v3708_v12  ;;  %vm7093_vm7 = vcmp.lt.f32.partialorder %v3744_v57, 8388608.0  ;;  %v3750_v36 = vor.u32 %v3749_v13, %v3748_v11  ;;  %v7118_v53 = vld [vmem:[%s4325_s24 + $0x70] sm:$0xff] }
 0x2dd   : > { %8535 = vst [vmem:[#allocation30_spill] sm:$0xff] %v7087_v17  ;;  %v3714_v43 = vcvt.f32.s32 %v1943_v60  ;;  %v7099_v25 = vsub.f32 %v6964_v37, %v6976_v41  ;;  %v3760_v26 = vand.u32 2147483647, %v7055_v42  ;;  %v3765_v6 = vand.u32 2147483648, %v7055_v42 }
 0x2de   : > { %v1989_v19 = vsub.f32 %v7002_v2, %v1973_v0  ;;  %v3711_v38 = vsel %vm3705_vm9, %v3710_v20, %v1942_v5  ;;  %v3712_v57 = vand.u32 2147483647, %v1943_v60  ;;  %v3764_v2 = vand.u32 2147483647, %v3763_v40  ;;  %8538 = vst [vmem:[#allocation28_spill] sm:$0xff] %v7118_v53  ;;  %v7135_v20 = vld [vmem:[%s4325_s24] sm:$0xff] }
 0x2df   : > { %v1975_v8 = vmul.f32 %v3711_v38, %v6567_v62  ;;  %v3715_v22 = vcvt.s32.f32 %v3714_v43  ;;  %v7107_v13 = vmul.f32 %v6979_v39, %v7099_v25  ;;  %v7115_v5 = vsub.f32 %v6969_v34, %v6976_v41 }
 0x2e0   : > { %v2168_v37 = vmul.f32 %v1989_v19, %v1989_v19  ;;  %v3717_v51 = vand.u32 2147483648, %v1943_v60  ;;  %v4224_v1 = vmov 4   ;;  %v2154_v54 = vmul.f32 %v1844_v49, %v1844_v49 }
 0x2e1   : > { %v1991_v61 = vsub.f32 %v7006_v44, %v1975_v8  ;;  %v3716_v11 = vand.u32 2147483647, %v3715_v22  ;;  %v3786_v58 = vcvt.f32.s32 %v7107_v13  ;;  %4041 = vset.pattern.permute.xlu0 %v4224_v1  ;;  %v7126_v63 = vstv %s7077_s20 }
 0x2e2   : > { %2587 = vperm.xlu2 %4039, %v7110_v32   ;;  %2583 = vperm.xlu1 %4038, %v7118_v53   ;;  %v7123_v12 = vpop.permute.xlu1 %2019  ;;  %v7128_v0 = vadd.f32 %v2168_v37, %v2152_v47  ;;  %v7132_v34 = vmul.f32 %v6979_v39, %v7115_v5  ;;  %v3751_v44 = vsel %vm7093_vm7, %v3750_v36, %v7011_v24  ;;  %vm7141_vm14 = vcmp.lt.f32.partialorder %v3760_v26, 8388608.0 }
 0x2e3   : > { %2624 = vperm.xlu0 %4041, %v7135_v20   ;;  %v2170_v40 = vmul.f32 %v1991_v61, %v1991_v61  ;;  %v3718_v49 = vor.u32 %v3717_v51, %v3716_v11  ;;  %v3766_v47 = vor.u32 %v3765_v6, %v3764_v2  ;;  %vm3713_vm8 = vcmp.lt.f32.partialorder %v3712_v57, 8388608.0  ;;  %v7146_v8 = vpop.permute.xlu2 %2222  ;;  %v7155_v30 = vpop.permute.xlu0 %2039 }
 0x2e4   : > { %v3787_v19 = vcvt.s32.f32 %v3786_v58  ;;  %v3730_v38 = vcvt.f32.s32 %v7132_v34  ;;  %v3728_v17 = vand.u32 2147483647, %v7132_v34  ;;  %v7153_v24 = vsub.f32 %v7022_v15, %v6976_v41 }
 0x2e5   : > { %v7148_v22 = vadd.f32 %v2170_v40, %v2154_v54  ;;  %v3719_v37 = vsel %vm3713_vm8, %v3718_v49, %v1943_v60  ;;  %v3789_v26 = vand.u32 2147483648, %v7107_v13  ;;  %v3733_v57 = vand.u32 2147483648, %v7132_v34  ;;  %v7177_v54 = vld [vmem:[%s4325_s24 + $0x10] sm:$0xff] }
 0x2e6   : > { %v1976_v36 = vmul.f32 %v3719_v37, %v6567_v62  ;;  %v3731_v6 = vcvt.s32.f32 %v3730_v38  ;;  %v3788_v2 = vand.u32 2147483647, %v3787_v19  ;;  %v7162_v60 = vmul.f32 %v6979_v39, %v7153_v24  ;;  %8542 = vst [vmem:[#allocation38_spill] sm:$0xff] %v7177_v54  ;;  %v7202_v19 = vld [vmem:[%s4325_s24 + $0x28] sm:$0xff] }
 0x2e7   : > { %8541 = vst [vmem:[#allocation37_spill] sm:$0xff] %v7148_v22  ;;  %v7166_v15 = vsub.f32 %v7014_v46, %v6976_v41  ;;  %v7170_v61 = vsub.f32 %v7031_v3, %v6976_v41  ;;  %v2155_v62 = vmul.f32 %v7085_v56, %v7085_v56  ;;  %v3784_v51 = vand.u32 2147483647, %v7107_v13  ;;  %v7191_v56 = vld [vmem:[%s4325_s24 + $0x8] sm:$0xff]  ;;  %v7252_v22 = vld [vmem:[%s4325_s24 + $0x18] sm:$0xff] }
 0x2e8   : > { %v1992_v11 = vsub.f32 %v7068_v55, %v1976_v36  ;;  %v3732_v58 = vand.u32 2147483647, %v3731_v6  ;;  %v2111_v46 = vmul.f32 %v3751_v44, %v7126_v63  ;;  %vm7181_vm5 = vcmp.lt.f32.partialorder %v3728_v17, 8388608.0  ;;  %8545 = vst [vmem:[#allocation39_spill] sm:$0xff] %v7202_v19 }
 0x2e9   : > { %v3810_v40 = vcvt.f32.s32 %v7162_v60  ;;  %v7188_v55 = vmul.f32 %v6979_v39, %v7166_v15  ;;  %v7199_v17 = vmul.f32 %v6979_v39, %v7170_v61  ;;  %v3790_v38 = vor.u32 %v3789_v26, %v3788_v2 }
 0x2ea   : > { %4043 = vset.pattern.permute.xlu2 %v4224_v1  ;;  %4042 = vset.pattern.permute.xlu1 %v4224_v1  ;;  %v3767_v1 = vsel %vm7141_vm14, %v3766_v47, %v7055_v42  ;;  %v2171_v49 = vmul.f32 %v1992_v11, %v1992_v11  ;;  %v3734_v44 = vor.u32 %v3733_v57, %v3732_v58  ;;  %v7209_v6 = vpop.permute.xlu1 %2031  ;;  %vm7213_vm13 = vcmp.lt.f32.partialorder %v3784_v51, 8388608.0  ;;  %v7245_v42 = vld [vmem:[%s4325_s24 + $0x20] sm:$0xff] }
 0x2eb   : > { %2632 = vperm.xlu2 %4043, %v7177_v54   ;;  %2628 = vperm.xlu1 %4042, %v7191_v56   ;;  %v3811_v37 = vcvt.s32.f32 %v3810_v40  ;;  %v7207_v36 = vsub.f32 %v7081_v45, %v6976_v41  ;;  %v3738_v57 = vcvt.f32.s32 %v7188_v55  ;;  %v2127_v26 = vsub.f32 %v6997_v16, %v2111_v46  ;;  %v7226_v40 = vpop.permute.xlu2 %2234  ;;  %8549 = vst [vmem:[#allocation41_spill] sm:$0xff] %v7245_v42 }
 0x2ec   : > { %2644 = vperm.xlu0 %4041, %v7202_v19   ;;  %v7211_v43 = vadd.f32 %v2171_v49, %v2155_v62  ;;  %v3735_v47 = vsel %vm7181_vm5, %v3734_v44, %v7132_v34  ;;  %v2113_v2 = vmul.f32 %v3767_v1, %v7126_v63  ;;  %v3808_v45 = vand.u32 2147483647, %v7162_v60  ;;  %v7237_v1 = vpop.permute.xlu0 %2051 }
 0x2ed   : > { %v3812_v11 = vand.u32 2147483647, %v3811_v37  ;;  %v3813_v62 = vand.u32 2147483648, %v7162_v60  ;;  %v3739_v51 = vcvt.s32.f32 %v3738_v57  ;;  %v3770_v58 = vcvt.f32.s32 %v7199_v17 }
 0x2ee   : > { %8546 = vst [vmem:[#allocation40_spill] sm:$0xff] %v7211_v43  ;;  %v3791_v34 = vsel %vm7213_vm13, %v3790_v38, %v7107_v13  ;;  %v2109_v16 = vmul.f32 %v3735_v47, %v7126_v63  ;;  %v3741_v46 = vand.u32 2147483648, %v7188_v55  ;;  %v7235_v3 = vmul.f32 %v6979_v39, %v7207_v36 }
 0x2ef   : > { %v3740_v49 = vand.u32 2147483647, %v3739_v51  ;;  %v3771_v44 = vcvt.s32.f32 %v3770_v58  ;;  %v3773_v37 = vand.u32 2147483648, %v7199_v17  ;;  %v7242_v57 = vsub.f32 %v7061_v50, %v6976_v41 }
 0x2f0   : > { %v2129_v13 = vsub.f32 %v7044_v52, %v2113_v2  ;;  %v3736_v38 = vand.u32 2147483647, %v7188_v55  ;;  %v3768_v47 = vand.u32 2147483647, %v7199_v17  ;;  %v2116_v51 = vmul.f32 %v3791_v34, %v7126_v63 }
 0x2f1   : > { %v3814_v58 = vor.u32 %v3813_v62, %v3812_v11  ;;  %v3742_v4 = vor.u32 %v3741_v46, %v3740_v49  ;;  %v3772_v50 = vand.u32 2147483647, %v3771_v44  ;;  %v2125_v19 = vsub.f32 %v7115_v5, %v2109_v16 }
 0x2f2   : > { %v2079_v52 = vmul.f32 %v6979_v39, %v7242_v57  ;;  %v7263_v2 = vsub.f32 %v7089_v10, %v6976_v41  ;;  %v7265_v28 = vpop.permute.xlu1 %2043  ;;  %v7267_v14 = vmul.f32 %v2127_v26, %v2127_v26  ;;  %vm7269_vm2 = vcmp.lt.f32.partialorder %v3808_v45, 8388608.0 }
 0x2f3   : > { %2640 = vperm.xlu2 %4043, %v7245_v42   ;;  %2636 = vperm.xlu1 %4042, %v7252_v22   ;;  %v3834_v42 = vcvt.f32.s32 %v7235_v3  ;;  %v3774_v62 = vor.u32 %v3773_v37, %v3772_v50  ;;  %vm7273_vm4 = vcmp.lt.f32.partialorder %v3736_v38, 8388608.0  ;;  %vm7277_vm1 = vcmp.lt.f32.partialorder %v3768_v47, 8388608.0  ;;  %v7321_v50 = vld [vmem:[%s4325_s24 + $0x30] sm:$0xff] }
 0x2f4   : > { %2656 = vperm.xlu0 %4041, %v7025_v48   ;;  %v3754_v10 = vcvt.f32.s32 %v2079_v52  ;;  %v7283_v16 = vsub.f32 %v7123_v12, %v6976_v41  ;;  %v7285_v26 = vmul.f32 %v2129_v13, %v2129_v13  ;;  %v3815_v45 = vsel %vm7269_vm2, %v3814_v58, %v7162_v60  ;;  %v7308_v58 = vld [vmem:[%s4325_s24 + $0x38] sm:$0xff] }
 0x2f5   : > { %v3743_v46 = vsel %vm7273_vm4, %v3742_v4, %v7188_v55  ;;  %v7295_v49 = vmul.f32 %v6979_v39, %v7263_v2  ;;  %v7298_v44 = vsub.f32 %v7099_v25, %v2116_v51  ;;  %v2189_v12 = vmul.f32 %v2125_v19, %v2125_v19  ;;  %v7305_v55 = vpop.permute.xlu2 %2242  ;;  %8557 = vst [vmem:[#allocation43_spill] sm:$0xff] %v7308_v58  ;;  %v7318_v51 = vpop.permute.xlu0 %2226 }
 0x2f6   : > { %8556 = vst [vmem:[#allocation42_spill] sm:$0xff] %v7285_v26  ;;  %v3835_v37 = vcvt.s32.f32 %v3834_v42  ;;  %v3752_v13 = vand.u32 2147483647, %v2079_v52  ;;  %v3775_v38 = vsel %vm7277_vm1, %v3774_v62, %v7199_v17  ;;  %v3832_v60 = vand.u32 2147483647, %v7235_v3 }
 0x2f7   : > { %v3755_v47 = vcvt.s32.f32 %v3754_v10  ;;  %v3794_v4 = vcvt.f32.s32 %v7295_v49  ;;  %v2119_v25 = vmul.f32 %v3815_v45, %v7126_v63  ;;  %v2110_v19 = vmul.f32 %v3743_v46, %v7126_v63  ;;  %v7375_v46 = vld [vmem:[%s4325_s24 + $0x50] sm:$0xff] }
 0x2f8   : > { %v3837_v42 = vand.u32 2147483648, %v7235_v3  ;;  %v7316_v17 = vmul.f32 %v6979_v39, %v7283_v16  ;;  %v3757_v62 = vand.u32 2147483648, %v2079_v52  ;;  %v3797_v34 = vand.u32 2147483648, %v7295_v49  ;;  %8567 = vst [vmem:[#allocation45_spill] sm:$0xff] %v7375_v46 }
 0x2f9   : > { %v3756_v11 = vand.u32 2147483647, %v3755_v47  ;;  %v3795_v5 = vcvt.s32.f32 %v3794_v4  ;;  %v2114_v10 = vmul.f32 %v3775_v38, %v7126_v63  ;;  %v3836_v45 = vand.u32 2147483647, %v3835_v37 }
 0x2fa   : > { %vm7327_vm12 = vcmp.lt.f32.partialorder %v3752_v13, 8388608.0  ;;  %v7332_v48 = vpop.permute.xlu1 %2055  ;;  %vm7334_vm15 = vcmp.lt.f32.partialorder %v3832_v60, 8388608.0  ;;  %v3792_v26 = vand.u32 2147483647, %v7295_v49  ;;  %v7341_v38 = vsub.f32 %v7155_v30, %v6976_v41 }
 0x2fb   : > { %2652 = vperm.xlu2 %4043, %v7308_v58   ;;  %2648 = vperm.xlu1 %4042, %v7321_v50   ;;  %v3778_v58 = vcvt.f32.s32 %v7316_v17  ;;  %v3758_v4 = vor.u32 %v3757_v62, %v3756_v11  ;;  %v3796_v18 = vand.u32 2147483647, %v3795_v5  ;;  %v3776_v37 = vand.u32 2147483647, %v7316_v17 }
 0x2fc   : > { %2668 = vperm.xlu0 %4041, %v7071_v33   ;;  %v7345_v33 = vld [vmem:[%s4330_s9] sm:$0xff]  ;;  %v7351_v60 = vadd.f32 %v2189_v12, %v6897_v7  ;;  %v3781_v5 = vand.u32 2147483648, %v7316_v17  ;;  %v2087_v30 = vmul.f32 %v6979_v39, %v7341_v38  ;;  %v7363_v7 = vsub.f32 %v7153_v24, %v2119_v25 }
 0x2fd   : > { %v3779_v13 = vcvt.s32.f32 %v3778_v58  ;;  %v7348_v54 = vperm.slane %v7345_v33, 6  ;;  %v3759_v11 = vsel %vm7327_vm12, %v3758_v4, %v2079_v52  ;;  %v3798_v62 = vor.u32 %v3797_v34, %v3796_v18 }
 0x2fe   : > { %v2112_v58 = vmul.f32 %v3759_v11, %v7126_v63  ;;  %vm2302_vm0 = vcmp.lt.f32.partialorder %v7351_v60, 0.81  ;;  %v2126_v52 = vsub.f32 %v7166_v15, %v2110_v19  ;;  %vm7366_vm11 = vcmp.lt.f32.partialorder %v3792_v26, 8388608.0  ;;  %v7382_v15 = vld [vmem:[%s4325_s24 + $0x48] sm:$0xff] }
 0x2ff   : > { %v3780_v43 = vand.u32 2147483647, %v3779_v13  ;;  %vm2286_vm6 = vcmp.ne.f32.partialorder %v7146_v8, %v7348_v54  ;;  %v3818_v12 = vcvt.f32.s32 %v2087_v30  ;;  %v8564_v34 = vmov 0 }
 0x300   : > { %vm7370_vm10 = vmand %vm2286_vm6, %vm2302_vm0  ;;  %v7378_v8 = vor.u32 %v3837_v42, %v3836_v45  ;;  %v2128_v24 = vsub.f32 %v7242_v57, %v2112_v58  ;;  %v3816_v4 = vand.u32 2147483647, %v2087_v30  ;;  %v3821_v19 = vand.u32 2147483648, %v2087_v30  ;;  %v7394_v42 = vpop.permute.xlu2 %2254 }
 0x301   : > { %v8565_v34 = vsel %vm7370_vm10, 4294967295, %v8564_v34  ;;  %v3782_v25 = vor.u32 %v3781_v5, %v3780_v43  ;;  %v3819_v26 = vcvt.s32.f32 %v3818_v12  ;;  %v7387_v13 = vsub.f32 %v7209_v6, %v6976_v41  ;;  %v7396_v43 = vpop.permute.xlu0 %2246 }
 0x302   : > { %8566 = vst [vmem:[#allocation44_spill] sm:$0xff] %v8565_v34  ;;  %v7391_v11 = vsub.f32 %v7237_v1, %v6976_v41  ;;  %v2130_v57 = vsub.f32 %v7170_v61, %v2114_v10  ;;  %v2192_v45 = vmul.f32 %v2128_v24, %v2128_v24  ;;  %v3799_v5 = vsel %vm7366_vm11, %v3798_v62, %v7295_v49 }
 0x303   : > { %2664 = vperm.xlu2 %4043, %v7375_v46   ;;  %2660 = vperm.xlu1 %4042, %v7382_v15   ;;  %vm3777_vm3 = vcmp.lt.f32.partialorder %v3776_v37, 8388608.0  ;;  %v7402_v6 = vpop.permute.xlu1 %2230  ;;  %v3820_v1 = vand.u32 2147483647, %v3819_v26  ;;  %v2085_v12 = vmul.f32 %v6979_v39, %v7387_v13  ;;  %vm7413_vm9 = vcmp.lt.f32.partialorder %v3816_v4, 8388608.0 }
 0x304   : > { %2680 = vperm.xlu0 %4041, %v7118_v53   ;;  %v3783_v58 = vsel %vm3777_vm3, %v3782_v25, %v7316_v17  ;;  %v2090_v34 = vmul.f32 %v6979_v39, %v7391_v11  ;;  %v2190_v53 = vmul.f32 %v2126_v52, %v2126_v52  ;;  %v7418_v17 = vadd.f32 %v2192_v45, %v6940_v9 }
 0x305   : > { %v2117_v10 = vmul.f32 %v3799_v5, %v7126_v63  ;;  %v3822_v37 = vor.u32 %v3821_v19, %v3820_v1  ;;  %v3802_v62 = vcvt.f32.s32 %v2085_v12  ;;  %v7423_v52 = vsub.f32 %v7265_v28, %v6976_v41  ;;  %v7431_v5 = vld [vmem:[%s4325_s24 + $0x68] sm:$0xff] }
 0x306   : > { %v2194_v18 = vmul.f32 %v2130_v57, %v2130_v57  ;;  %v2115_v24 = vmul.f32 %v3783_v58, %v7126_v63  ;;  %v3842_v25 = vcvt.f32.s32 %v2090_v34  ;;  %vm2289_vm7 = vcmp.ne.f32.partialorder %v7226_v40, %v7348_v54  ;;  %8570 = vst [vmem:[#allocation46_spill] sm:$0xff] %v7431_v5 }
 0x307   : > { %v3823_v4 = vsel %vm7413_vm9, %v3822_v37, %v2087_v30  ;;  %v3800_v9 = vand.u32 2147483647, %v2085_v12  ;;  %v3803_v26 = vcvt.s32.f32 %v3802_v62  ;;  %v3840_v45 = vand.u32 2147483647, %v2090_v34 }
 0x308   : > { %v2120_v28 = vmul.f32 %v3823_v4, %v7126_v63  ;;  %v3843_v19 = vcvt.s32.f32 %v3842_v25  ;;  %v3845_v57 = vand.u32 2147483648, %v2090_v34  ;;  %vm2305_vm14 = vcmp.lt.f32.partialorder %v7418_v17, 0.81  ;;  %v7447_v62 = vpop.permute.xlu2 %2266 }
 0x309   : > { %v2133_v58 = vsub.f32 %v7263_v2, %v2117_v10  ;;  %v3804_v1 = vand.u32 2147483647, %v3803_v26  ;;  %v3805_v49 = vand.u32 2147483648, %v2085_v12  ;;  %vm7441_vm8 = vmand %vm2289_vm7, %vm2305_vm14  ;;  %v8571_v30 = vmov 0  ;;  %v7449_v25 = vpop.permute.xlu0 %2258 }
 0x30a   : > { %v8572_v30 = vsel %vm7441_vm8, 4294967295, %v8571_v30  ;;  %v2088_v37 = vmul.f32 %v6979_v39, %v7423_v52  ;;  %v7452_v4 = vmax.f32 %v7351_v60, 0.0001  ;;  %v3844_v2 = vand.u32 2147483647, %v3843_v19 }
 0x30b   : > { %2676 = vperm.xlu2 %4043, %v7431_v5   ;;  %2672 = vperm.xlu1 %4042, %v7058_v27   ;;  %8573 = vst [vmem:[#allocation47_spill] sm:$0xff] %v8572_v30  ;;  %v7455_v10 = vadd.f32 %v2194_v18, %v7029_v23  ;;  %vm2291_vm5 = vcmp.ne.f32.partialorder %v7305_v55, %v7348_v54  ;;  %v7459_v40 = vpop.permute.xlu1 %2238  ;;  %vm3841_vm13 = vcmp.lt.f32.partialorder %v3840_v45, 8388608.0  ;;  %vm3801_vm2 = vcmp.lt.f32.partialorder %v3800_v9, 8388608.0 }
 0x30c   : > { %v2131_v26 = vsub.f32 %v7283_v16, %v2115_v24  ;;  %v3806_v61 = vor.u32 %v3805_v49, %v3804_v1  ;;  %v3826_v30 = vcvt.f32.s32 %v2088_v37  ;;  %v2136_v5 = vsub.f32 %v7341_v38, %v2120_v28 }
 0x30d   : > { %v3846_v46 = vor.u32 %v3845_v57, %v3844_v2  ;;  %vm2307_vm4 = vcmp.lt.f32.partialorder %v7455_v10, 0.81  ;;  %v2197_v60 = vmul.f32 %v2133_v58, %v2133_v58  ;;  %v3824_v23 = vand.u32 2147483647, %v2088_v37 }
 0x30e   : > { %v3807_v19 = vsel %vm3801_vm2, %v3806_v61, %v2085_v12  ;;  %v3827_v18 = vcvt.s32.f32 %v3826_v30  ;;  %vm7464_vm1 = vmand %vm2291_vm5, %vm2307_vm4  ;;  %v2206_v24 = vadd.f32 %v2190_v53, %v6728_v35  ;;  %vm2287_vm12 = vcmp.ne.f32.partialorder %v7318_v51, %v7348_v54 }
 0x30f   : > { %v2118_v55 = vmul.f32 %v3807_v19, %v7126_v63  ;;  %v3847_v16 = vsel %vm3841_vm13, %v3846_v46, %v2090_v34  ;;  %v3829_v45 = vand.u32 2147483648, %v2088_v37  ;;  %v2195_v28 = vmul.f32 %v2131_v26, %v2131_v26 }
 0x310   : > { %v2123_v38 = vmul.f32 %v3847_v16, %v7126_v63  ;;  %v3828_v9 = vand.u32 2147483647, %v3827_v18  ;;  %v2200_v12 = vmul.f32 %v2136_v5, %v2136_v5  ;;  %vm2303_vm6 = vcmp.lt.f32.partialorder %v2206_v24, 0.81  ;;  %v7488_v46 = vpop.permute.xlu2 %2278  ;;  %v8588_v16 = vld [vmem:[#allocation38_spill] sm:$0xff] }
 0x311   : > { %v4225_v61 = vmov 5   ;;  %v7475_v57 = vsub.f32 %v7332_v48, %v6976_v41  ;;  %v2134_v34 = vsub.f32 %v7387_v13, %v2118_v55  ;;  %vm7478_vm0 = vmand %vm2287_vm12, %vm2303_vm6  ;;  %v7484_v51 = vadd.f32 %v2197_v60, %v7064_v21  ;;  %v7490_v41 = vpop.permute.xlu0 %2270 }
 0x312   : > { %4045 = vset.pattern.permute.xlu0 %v4225_v61  ;;  %v3830_v35 = vor.u32 %v3829_v45, %v3828_v9  ;;  %vm2294_vm11 = vcmp.ne.f32.partialorder %v7394_v42, %v7348_v54  ;;  %v8578_v48 = vsel %vm7334_vm15, %v7378_v8, %v7235_v3  ;;  %vm3825_vm3 = vcmp.lt.f32.partialorder %v3824_v23, 8388608.0 }
 0x313   : > { %4044 = vset.pattern.permute.xlu2 %v4225_v61  ;;  %2709 = vperm.xlu0 %4045, %v7191_v56   ;;  %v2122_v13 = vmul.f32 %v8578_v48, %v7126_v63  ;;  %v7498_v5 = vmax.f32 %v2206_v24, 0.0001  ;;  %v2091_v21 = vmul.f32 %v6979_v39, %v7475_v57  ;;  %v7503_v56 = vpop.permute.xlu1 %2250  ;;  %v7508_v58 = vmul.f32 %v7298_v44, %v7298_v44 }
 0x314   : > { %2684 = vperm.xlu1 %4042, %v7110_v32   ;;  %2705 = vperm.xlu2 %4044, %v7135_v20   ;;  %v2139_v47 = vsub.f32 %v7391_v11, %v2123_v38  ;;  %v3831_v3 = vsel %vm3825_vm3, %v3830_v35, %v2088_v37  ;;  %vm2310_vm15 = vcmp.lt.f32.partialorder %v7484_v51, 0.81  ;;  %v7514_v8 = vmul.f32 %v7363_v7, %v7363_v7 }
 0x315   : > { %4047 = vrsqrt.f32 %v7452_v4  ;;  %v2121_v39 = vmul.f32 %v3831_v3, %v7126_v63  ;;  %v3850_v1 = vcvt.f32.s32 %v2091_v21  ;;  %vm7521_vm9 = vmand %vm2294_vm11, %vm2310_vm15  ;;  %v2198_v44 = vmul.f32 %v2134_v34, %v2134_v34  ;;  %v8596_v34 = vld [vmem:[#allocation32_spill] sm:$0xff] }
 0x316   : > { %v2211_v11 = vadd.f32 %v2195_v28, %v6851_v31  ;;  %vm2292_vm7 = vcmp.ne.f32.partialorder %v7396_v43, %v7348_v54  ;;  %v7529_v7 = vadd.f32 %v2200_v12, %v7128_v0  ;;  %v7532_v49 = vsub.f32 %v7207_v36, %v2122_v13  ;;  %v8594_v28 = vld [vmem:[#allocation31_spill] sm:$0xff]  ;;  %v8595_v12 = vld [vmem:[#allocation42_spill] sm:$0xff] }
 0x317   : > { %v2137_v30 = vsub.f32 %v7423_v52, %v2121_v39  ;;  %4049 = vrsqrt.f32 %v7498_v5  ;;  %v3851_v42 = vcvt.s32.f32 %v3850_v1  ;;  %v2203_v37 = vmul.f32 %v2139_v47, %v2139_v47 }
 0x318   : > { %v3848_v2 = vand.u32 2147483647, %v2091_v21  ;;  %vm2308_vm14 = vcmp.lt.f32.partialorder %v2211_v11, 0.81  ;;  %vm2297_vm5 = vcmp.ne.f32.partialorder %v7447_v62, %v7348_v54  ;;  %v3853_v26 = vand.u32 2147483648, %v2091_v21  ;;  %v7560_v23 = vpop.permute.xlu2 %2531 }
 0x319   : > { %v3852_v31 = vand.u32 2147483647, %v3851_v42  ;;  %vm7538_vm13 = vmand %vm2292_vm7, %vm2308_vm14  ;;  %vm2313_vm2 = vcmp.lt.f32.partialorder %v7529_v7, 0.81  ;;  %v2207_v0 = vadd.f32 %v7267_v14, %v6982_v29  ;;  %v7546_v36 = vmax.f32 %v7418_v17, 0.0001  ;;  %v7558_v19 = vpop.permute.xlu0 %2282 }
 0x31a   : > { %v7548_v52 = vmax.f32 %v2211_v11, 0.0001  ;;  %vm7550_vm4 = vmand %vm2297_vm5, %vm2313_vm2  ;;  %vm2288_vm12 = vcmp.ne.f32.partialorder %v7402_v6, %v7348_v54  ;;  %v2214_v62 = vadd.f32 %v2198_v44, %v6893_v59  ;;  %v2201_v29 = vmul.f32 %v2137_v30, %v2137_v30  ;;  %v8603_v44 = vld [vmem:[#allocation39_spill] sm:$0xff]  ;;  %v8608_v30 = vld [vmem:[#allocation33_spill] sm:$0xff] }
 0x31b   : > { %2729 = vperm.xlu0 %4045, %v7321_v50   ;;  %v7562_v14 = vpop.eup %4047  ;;  %v3854_v17 = vor.u32 %v3853_v26, %v3852_v31  ;;  %vm2304_vm6 = vcmp.lt.f32.partialorder %v2207_v0, 0.81  ;;  %v7564_v18 = vmax.f32 %v2207_v0, 0.0001  ;;  %v7566_v55 = vpop.permute.xlu1 %2262  ;;  %vm3849_vm11 = vcmp.lt.f32.partialorder %v3848_v2, 8388608.0  ;;  %v8587_v50 = vld [vmem:[#allocation40_spill] sm:$0xff] }
 0x31c   : > { %4046 = vset.pattern.permute.xlu1 %v4225_v61  ;;  %2717 = vperm.xlu2 %4044, %v7252_v22   ;;  %vm7569_vm3 = vmand %vm2288_vm12, %vm2304_vm6  ;;  %vm2295_vm15 = vcmp.ne.f32.partialorder %v7449_v25, %v7348_v54  ;;  %vm2311_vm7 = vcmp.lt.f32.partialorder %v2214_v62, 0.81  ;;  %v7576_v6 = vadd.f32 %v2203_v37, %v8587_v50  ;;  %v7582_v38 = vmax.f32 %v7455_v10, 0.0001  ;;  %v8609_v31 = vld [vmem:[#allocation41_spill] sm:$0xff] }
 0x31d   : > { %2713 = vperm.xlu1 %4046, %v8588_v16   ;;  %v7579_v24 = vpop.eup %4049  ;;  %v3855_v22 = vsel %vm3849_vm11, %v3854_v17, %v2091_v21  ;;  %4051 = vrsqrt.f32 %v7564_v18  ;;  %vm7585_vm14 = vmand %vm2295_vm15, %vm2311_vm7  ;;  %vm2300_vm5 = vcmp.ne.f32.partialorder %v7488_v46, %v7348_v54  ;;  %v7594_v45 = vmax.f32 %v7484_v51, 0.0001  ;;  %v8597_v46 = vld [vmem:[#allocation35_spill] sm:$0xff] }
 0x31e   : > { %4053 = vrsqrt.f32 %v7546_v36  ;;  %v2124_v25 = vmul.f32 %v3855_v22, %v7126_v63  ;;  %vm2316_vm2 = vcmp.lt.f32.partialorder %v7576_v6, 0.81  ;;  %v8591_v10 = vmov 0  ;;  %v8613_v22 = vld [vmem:[#allocation30_spill] sm:$0xff] }
 0x31f   : > { %4055 = vrsqrt.f32 %v7548_v52  ;;  %vm7598_vm12 = vmand %vm2300_vm5, %vm2316_vm2  ;;  %v2209_v61 = vadd.f32 %v8595_v12, %v8594_v28  ;;  %vm2290_vm6 = vcmp.ne.f32.partialorder %v7459_v40, %v7348_v54  ;;  %v2217_v35 = vadd.f32 %v2201_v29, %v8596_v34 }
 0x320   : > { %v8592_v10 = vsel %vm7598_vm12, 4294967295, %v8591_v10  ;;  %v2361_v63 = vmul.f32 %v7579_v24, %v7498_v5  ;;  %v2140_v51 = vsub.f32 %v7475_v57, %v2124_v25  ;;  %vm2298_vm11 = vcmp.ne.f32.partialorder %v7490_v41, %v7348_v54 }
 0x321   : > { %8593 = vst [vmem:[#allocation40_spill] sm:$0xff] %v8592_v10  ;;  %v2212_v48 = vadd.f32 %v7508_v58, %v8597_v46  ;;  %4057 = vrsqrt.f32 %v7582_v38  ;;  %vm2306_vm15 = vcmp.lt.f32.partialorder %v2209_v61, 0.81  ;;  %v7615_v13 = vmax.f32 %v2209_v61, 0.0001  ;;  %v7627_v58 = vpop.permute.xlu2 %2543  ;;  %v2536_v2 = vpop.permute.xlu0 %2535  ;;  %v8614_v46 = vld [vmem:[#allocation36_spill] sm:$0xff] }
 0x322   : > { %v2204_v40 = vmul.f32 %v2140_v51, %v2140_v51  ;;  %4059 = vrsqrt.f32 %v7594_v45  ;;  %v7620_v21 = vmax.f32 %v2214_v62, 0.0001  ;;  %vm7622_vm5 = vmand %vm2290_vm6, %vm2306_vm15  ;;  %v8598_v57 = vmov 0 }
 0x323   : > { %v8599_v57 = vsel %vm7622_vm5, 4294967295, %v8598_v57  ;;  %vm2314_vm2 = vcmp.lt.f32.partialorder %v2217_v35, 0.81  ;;  %2741 = vperm.xlu0 %4045, %v7382_v15   ;;  %v7629_v47 = vpop.eup %4051  ;;  %v7632_v3 = vmax.f32 %v7529_v7, 0.0001  ;;  %4061 = vrsqrt.f32 %v7615_v13  ;;  %v7644_v15 = vpop.permute.xlu1 %2274 }
 0x324   : > { %vm7638_vm7 = vmand %vm2298_vm11, %vm2314_vm2  ;;  %v8600_v39 = vmov 0  ;;  %vm2309_vm6 = vcmp.lt.f32.partialorder %v2212_v48, 0.81  ;;  %v7642_v1 = vmax.f32 %v2212_v48, 0.0001  ;;  %2725 = vperm.xlu2 %4044, %v8603_v44   ;;  %v7647_v11 = vpop.eup %4053  ;;  %v2371_v7 = vmul.f32 %v7629_v47, %v7564_v18 }
 0x325   : > { %v8601_v39 = vsel %vm7638_vm7, 4294967295, %v8600_v39  ;;  %vm8604_vm15 = vcmp.ne.f32.partialorder %v7503_v56, %v7348_v54  ;;  %v8605_v41 = vmov 0  ;;  %v2220_v42 = vadd.f32 %v2204_v40, %v8608_v30  ;;  %2721 = vperm.xlu1 %4046, %v8609_v31   ;;  %v7663_v26 = vpop.eup %4055 }
 0x326   : > { %8602 = vst [vmem:[#allocation38_spill] sm:$0xff] %v8601_v39  ;;  %vm7654_vm12 = vmand %vm8604_vm15, %vm2309_vm6  ;;  %vm2301_vm11 = vcmp.ne.f32.partialorder %v7558_v19, %v7348_v54  ;;  %v2362_v37 = vmul.f32 %v7579_v24, %v2361_v63  ;;  %v2202_v0 = vmul.f32 %v7532_v49, %v7532_v49  ;;  %v7667_v56 = vmax.f32 %v2217_v35, 0.0001 }
 0x327   : > { %v8606_v41 = vsel %vm7654_vm12, 4294967295, %v8605_v41  ;;  %4063 = vrsqrt.f32 %v7642_v1  ;;  %v7671_v62 = vperm.slane %v7345_v33, 3  ;;  %v7675_v29 = vmul.f32 %v7562_v14, %v7452_v4  ;;  %v7678_v50 = vpop.eup %4057 }
 0x328   : > { %8607 = vst [vmem:[#allocation31_spill] sm:$0xff] %v8606_v41  ;;  %4065 = vrsqrt.f32 %v7620_v21  ;;  %vm2317_vm2 = vcmp.lt.f32.partialorder %v2220_v42, 0.81  ;;  %v2363_v17 = vmul.f32 0.5, %v2362_v37  ;;  %v7682_v49 = vmul.f32 %v7647_v11, %v7546_v36  ;;  %v7696_v28 = vpop.eup %4059 }
 0x329   : > { %4067 = vrsqrt.f32 %v7632_v3  ;;  %vm7688_vm6 = vmand %vm2301_vm11, %vm2317_vm2  ;;  %v8610_v16 = vmov 0  ;;  %v2215_v25 = vadd.f32 %v7514_v8, %v8613_v22  ;;  %vm2296_vm15 = vcmp.ne.f32.partialorder %v7566_v55, %v7348_v54  ;;  %v7702_v34 = vpop.eup %4061  ;;  %v2552_v40 = vpop.permute.xlu2 %2551  ;;  %v8620_v55 = vld [vmem:[#allocation34_spill] sm:$0xff] }
 0x32a   : > { %v8611_v16 = vsel %vm7688_vm6, 4294967295, %v8610_v16  ;;  %v2411_v12 = vmul.f32 %v7663_v26, %v7548_v52  ;;  %v2364_v61 = vsub.f32 1.5, %v2363_v17  ;;  %v2372_v19 = vmul.f32 %v7629_v47, %v2371_v7 }
 0x32b   : > { %8612 = vst [vmem:[#allocation42_spill] sm:$0xff] %v8611_v16  ;;  %4069 = vrsqrt.f32 %v7667_v56  ;;  %v2592_v8 = vmul.f32 %v7671_v62, %v7560_v23  ;;  %vm2312_vm11 = vcmp.lt.f32.partialorder %v2215_v25, 0.81  ;;  %v7707_v35 = vmax.f32 %v2215_v25, 0.0001  ;;  %2753 = vperm.xlu0 %4045, %v8614_v46  }
 0x32c   : > { %v2391_v63 = vmul.f32 %v7702_v34, %v7615_v13  ;;  %v2365_v51 = vmul.f32 %v7579_v24, %v2364_v61  ;;  %vm2366_vm2 = vweird.f32 %v7498_v5  ;;  %vm7717_vm12 = vmand %vm2296_vm15, %vm2312_vm11  ;;  %v8615_v48 = vmov 0  ;;  %v8619_v5 = vld [vmem:[#allocation37_spill] sm:$0xff]  ;;  %2737 = vperm.xlu2 %4044, %v8620_v55   ;;  %v7731_v37 = vpop.permute.xlu1 %2527  ;;  %v8621_v61 = vld [vmem:[#allocation43_spill] sm:$0xff] }
 0x32d   : > { %v8616_v48 = vsel %vm7717_vm12, 4294967295, %v8615_v48  ;;  %v2373_v23 = vmul.f32 0.5, %v2372_v19  ;;  %v7721_v44 = vpop.eup %4063  ;;  %v7723_v7 = vmax.f32 %v2220_v42, 0.0001  ;;  %vm8618_vm6 = vweird.f32 %v7579_v24  ;;  %2733 = vperm.xlu1 %4046, %v8621_v61  }
 0x32e   : > { %8617 = vst [vmem:[#allocation32_spill] sm:$0xff] %v8616_v48  ;;  %vm2368_vm7 = vmor %vm2366_vm2, %vm8618_vm6  ;;  %4071 = vrsqrt.f32 %v7707_v35  ;;  %vm2377_vm5 = vweird.f32 %v7629_v47  ;;  %v2218_v30 = vadd.f32 %v2202_v0, %v8619_v5  ;;  %v7733_v31 = vpop.eup %4065  ;;  %v2392_v42 = vmul.f32 %v7702_v34, %v2391_v63  ;;  %v8628_v48 = vld [vmem:[#allocation28_spill] sm:$0xff] }
 0x32f   : > { %v7736_v17 = vsel %vm2368_vm7, %v7579_v24, %v2365_v51  ;;  %v2374_v22 = vsub.f32 1.5, %v2373_v23  ;;  %v2593_v25 = vmul.f32 %v7671_v62, %v2536_v2  ;;  %v7741_v19 = vpop.eup %4067  ;;  %v2421_v0 = vmul.f32 %v7721_v44, %v7642_v1  ;;  %v2556_v23 = vpop.permute.xlu0 %2555 }
 0x330   : > { %v7746_v46 = vmul.f32 %v2592_v8, %v7736_v17  ;;  %vm2299_vm6 = vcmp.ne.f32.partialorder %v7644_v15, %v7348_v54  ;;  %vm2315_vm7 = vcmp.lt.f32.partialorder %v2218_v30, 0.81  ;;  %v2393_v24 = vmul.f32 0.5, %v2392_v42 }
 0x331   : > { %v2375_v63 = vmul.f32 %v7629_v47, %v2374_v22  ;;  %vm2376_vm15 = vweird.f32 %v7564_v18  ;;  %vm7752_vm11 = vmand %vm2299_vm6, %vm2315_vm7  ;;  %v8622_v2 = vmov 0  ;;  %v2412_v51 = vmul.f32 %v7663_v26, %v2411_v12  ;;  %v7757_v5 = vpop.eup %4069 }
 0x332   : > { %v8623_v2 = vsel %vm7752_vm11, 4294967295, %v8622_v2  ;;  %v7761_v8 = vmul.f32 %v7678_v50, %v7582_v38  ;;  %v2441_v54 = vmul.f32 %v7733_v31, %v7620_v21  ;;  %4073 = vrsqrt.f32 %v7723_v7  ;;  %vm2378_vm2 = vmor %vm2376_vm15, %vm2377_vm5 }
 0x333   : > { %8624 = vst [vmem:[#allocation35_spill] sm:$0xff] %v8623_v2  ;;  %v7768_v18 = vmax.f32 %v2218_v30, 0.0001  ;;  %v2394_v15 = vsub.f32 1.5, %v2393_v24  ;;  %vm2397_vm6 = vweird.f32 %v7702_v34  ;;  %v7772_v12 = vsel %vm2378_vm2, %v7629_v47, %v2375_v63  ;;  %2765 = vperm.xlu0 %4045, %v7110_v32   ;;  %v2564_v63 = vpop.permute.xlu2 %2563 }
 0x334   : > { %v2413_v55 = vmul.f32 0.5, %v2412_v51  ;;  %v7774_v42 = vpop.eup %4071  ;;  %v7777_v22 = vmax.f32 %v7576_v6, 0.0001  ;;  %v2595_v61 = vmul.f32 %v7671_v62, %v7627_v58  ;;  %v7782_v2 = vmul.f32 %v2593_v25, %v7772_v12  ;;  %v8625_v51 = vld [vmem:[#allocation29_spill] sm:$0xff] }
 0x335   : > { %v2422_v30 = vmul.f32 %v7721_v44, %v2421_v0  ;;  %v2395_v24 = vmul.f32 %v7702_v34, %v2394_v15  ;;  %vm2396_vm5 = vweird.f32 %v7615_v13  ;;  %vm2417_vm7 = vweird.f32 %v7663_v26  ;;  %2749 = vperm.xlu2 %4044, %v8625_v51   ;;  %v7793_v0 = vpop.permute.xlu1 %2539 }
 0x336   : > { %v2414_v47 = vsub.f32 1.5, %v2413_v55  ;;  %vm2398_vm15 = vmor %vm2396_vm5, %vm2397_vm6  ;;  %4075 = vrsqrt.f32 %v7768_v18  ;;  %v2597_v6 = vmul.f32 %v7671_v62, %v2552_v40  ;;  %v2442_v25 = vmul.f32 %v7733_v31, %v2441_v54  ;;  %v8626_v55 = vld [vmem:[#allocation45_spill] sm:$0xff] }
 0x337   : > { %v2423_v58 = vmul.f32 0.5, %v2422_v30  ;;  %v2451_v13 = vmul.f32 %v7774_v42, %v7707_v35  ;;  %v7798_v32 = vsel %vm2398_vm15, %v7702_v34, %v2395_v24  ;;  %vm2416_vm2 = vweird.f32 %v7548_v52  ;;  %2745 = vperm.xlu1 %4046, %v8626_v55  }
 0x338   : > { %v2415_v15 = vmul.f32 %v7663_v26, %v2414_v47  ;;  %v7803_v40 = vpop.eup %4073  ;;  %v7806_v54 = vmul.f32 %v2595_v61, %v7798_v32  ;;  %vm2418_vm6 = vmor %vm2416_vm2, %vm2417_vm7  ;;  %vm2427_vm5 = vweird.f32 %v7721_v44  ;;  %v2443_v51 = vmul.f32 0.5, %v2442_v25 }
 0x339   : > { %v2424_v30 = vsub.f32 1.5, %v2423_v58  ;;  %4077 = vrsqrt.f32 %v7777_v22  ;;  %v2598_v52 = vmul.f32 %v7671_v62, %v2556_v23  ;;  %v2352_v24 = vmul.f32 %v7562_v14, %v7675_v29 }
 0x33a   : > { %v7813_v34 = vsel %vm2418_vm6, %v7663_v26, %v2415_v15  ;;  %v2471_v61 = vmul.f32 %v7757_v5, %v7667_v56  ;;  %vm2426_vm7 = vweird.f32 %v7642_v1  ;;  %v2444_v25 = vsub.f32 1.5, %v2443_v51  ;;  %v2568_v15 = vpop.permute.xlu0 %2567 }
 0x33b   : > { %v7821_v47 = vmul.f32 %v2597_v6, %v7813_v34  ;;  %v2425_v58 = vmul.f32 %v7721_v44, %v2424_v30  ;;  %vm2428_vm15 = vmor %vm2426_vm7, %vm2427_vm5  ;;  %vm2447_vm2 = vweird.f32 %v7733_v31  ;;  %v2353_v26 = vmul.f32 0.5, %v2352_v24 }
 0x33c   : > { %v2452_v23 = vmul.f32 %v7774_v42, %v2451_v13  ;;  %v7827_v55 = vpop.eup %4075  ;;  %v2501_v29 = vmul.f32 %v7803_v40, %v7723_v7  ;;  %vm2446_vm6 = vweird.f32 %v7620_v21  ;;  %v2600_v1 = vmul.f32 %v7671_v62, %v2564_v63  ;;  %v2576_v13 = vpop.permute.xlu2 %2575 }
 0x33d   : > { %v7832_v6 = vsel %vm2428_vm15, %v7721_v44, %v2425_v58  ;;  %v2445_v51 = vmul.f32 %v7733_v31, %v2444_v25  ;;  %v2354_v24 = vsub.f32 1.5, %v2353_v26  ;;  %vm2357_vm5 = vweird.f32 %v7562_v14  ;;  %vm2448_vm7 = vmor %vm2446_vm6, %vm2447_vm2  ;;  %2761 = vperm.xlu2 %4044, %v8628_v48   ;;  %v7846_v63 = vpop.permute.xlu1 %2547 }
 0x33e   : > { %v7837_v30 = vmul.f32 %v2598_v52, %v7832_v6  ;;  %vm2356_vm11 = vweird.f32 %v7452_v4  ;;  %v2591_v44 = vmul.f32 %v7671_v62, %v7731_v37  ;;  %v2453_v58 = vmul.f32 0.5, %v2452_v23  ;;  %v8629_v23 = vld [vmem:[#allocation46_spill] sm:$0xff] }
 0x33f   : > { %v2472_v21 = vmul.f32 %v7757_v5, %v2471_v61  ;;  %v7848_v52 = vpop.eup %4077  ;;  %v2481_v25 = vmul.f32 %v7827_v55, %v7768_v18  ;;  %v7853_v26 = vsel %vm2448_vm7, %v7733_v31, %v2445_v51  ;;  %v2355_v4 = vmul.f32 %v7562_v14, %v2354_v24  ;;  %2757 = vperm.xlu1 %4046, %v8629_v23   ;;  %vm2358_vm15 = vmor %vm2356_vm11, %vm2357_vm5 }
 0x340   : > { %8627 = vst [vmem:[#allocation39_spill] sm:$0xff] %v7837_v30  ;;  %v2382_v37 = vmul.f32 %v7647_v11, %v7682_v49  ;;  %v7860_v61 = vmul.f32 %v2600_v1, %v7853_v26  ;;  %v2454_v48 = vsub.f32 1.5, %v2453_v58  ;;  %vm2457_vm2 = vweird.f32 %v7774_v42 }
 0x341   : > { %v2473_v16 = vmul.f32 0.5, %v2472_v21  ;;  %v7866_v31 = vsel %vm2358_vm15, %v7562_v14, %v2355_v4  ;;  %vm2456_vm6 = vweird.f32 %v7707_v35  ;;  %v2601_v51 = vmul.f32 %v7671_v62, %v2568_v15 }
 0x342   : > { %v2383_v49 = vmul.f32 0.5, %v2382_v37  ;;  %v7871_v24 = vmul.f32 %v2591_v44, %v7866_v31  ;;  %v2455_v1 = vmul.f32 %v7774_v42, %v2454_v48  ;;  %vm2477_vm11 = vweird.f32 %v7757_v5  ;;  %vm2458_vm5 = vmor %vm2456_vm6, %vm2457_vm2  ;;  %v2580_v4 = vpop.permute.xlu0 %2579 }
 0x343   : > { %v2474_v23 = vsub.f32 1.5, %v2473_v16  ;;  %v2603_v58 = vmul.f32 %v7671_v62, %v2576_v13  ;;  %vm2387_vm7 = vweird.f32 %v7647_v11  ;;  %v2482_v14 = vmul.f32 %v7827_v55, %v2481_v25 }
 0x344   : > { %v2384_v21 = vsub.f32 1.5, %v2383_v49  ;;  %v7879_v35 = vsel %vm2458_vm5, %v7774_v42, %v2455_v1  ;;  %vm2476_vm15 = vweird.f32 %v7667_v56  ;;  %v2594_v16 = vmul.f32 %v7671_v62, %v7793_v0  ;;  %v2588_v37 = vpop.permute.xlu2 %2587 }
 0x345   : > { %v2475_v15 = vmul.f32 %v7757_v5, %v2474_v23  ;;  %v7886_v44 = vmul.f32 %v2601_v51, %v7879_v35  ;;  %vm2478_vm2 = vmor %vm2476_vm15, %vm2477_vm11  ;;  %vm2386_vm6 = vweird.f32 %v7546_v36  ;;  %v2483_v25 = vmul.f32 0.5, %v2482_v14  ;;  %v2560_v0 = vpop.permute.xlu1 %2559 }
 0x346   : > { %v2385_v13 = vmul.f32 %v7647_v11, %v2384_v21  ;;  %v2431_v42 = vmul.f32 %v7696_v28, %v7594_v45  ;;  %vm2388_vm5 = vmor %vm2386_vm6, %vm2387_vm7  ;;  %v2502_v56 = vmul.f32 %v7803_v40, %v2501_v29  ;;  %vm2487_vm11 = vweird.f32 %v7827_v55 }
 0x347   : > { %8630 = vst [vmem:[#allocation33_spill] sm:$0xff] %v7886_v44  ;;  %v7893_v48 = vsel %vm2478_vm2, %v7757_v5, %v2475_v15  ;;  %v2484_v49 = vsub.f32 1.5, %v2483_v25  ;;  %v2604_v5 = vmul.f32 %v7671_v62, %v2580_v4  ;;  %v2461_v21 = vmul.f32 %v7741_v19, %v7632_v3 }
 0x348   : > { %v7899_v51 = vmul.f32 %v2603_v58, %v7893_v48  ;;  %v7902_v36 = vsel %vm2388_vm5, %v7647_v11, %v2385_v13  ;;  %v2503_v23 = vmul.f32 0.5, %v2502_v56  ;;  %vm2486_vm7 = vweird.f32 %v7768_v18 }
 0x349   : > { %v7906_v1 = vmul.f32 %v2594_v16, %v7902_v36  ;;  %v2485_v29 = vmul.f32 %v7827_v55, %v2484_v49  ;;  %v2402_v11 = vmul.f32 %v7678_v50, %v7761_v8  ;;  %vm2488_vm15 = vmor %vm2486_vm7, %vm2487_vm11  ;;  %vm2507_vm2 = vweird.f32 %v7803_v40 }
 0x34a   : > { %8631 = vst [vmem:[#allocation41_spill] sm:$0xff] %v7899_v51  ;;  %v2504_v58 = vsub.f32 1.5, %v2503_v23  ;;  %v2432_v14 = vmul.f32 %v7696_v28, %v2431_v42  ;;  %v2491_v15 = vmul.f32 %v7848_v52, %v7777_v22  ;;  %v2606_v13 = vmul.f32 %v7671_v62, %v2588_v37 }
 0x34b   : > { %v7920_v16 = vsel %vm2488_vm15, %v7827_v55, %v2485_v29  ;;  %v2403_v4 = vmul.f32 0.5, %v2402_v11  ;;  %vm2506_vm6 = vweird.f32 %v7723_v7  ;;  %vm2406_vm11 = vweird.f32 %v7582_v38 }
 0x34c   : > { %v7924_v18 = vmul.f32 %v2604_v5, %v7920_v16  ;;  %v2505_v8 = vmul.f32 %v7803_v40, %v2504_v58  ;;  %v2433_v25 = vmul.f32 0.5, %v2432_v14  ;;  %vm2508_vm5 = vmor %vm2506_vm6, %vm2507_vm2  ;;  %vm2407_vm7 = vweird.f32 %v7678_v50  ;;  %v7930_v42 = vpop.permute.xlu2 %2632 }
 0x34d   : > { %v2404_v56 = vsub.f32 1.5, %v2403_v4  ;;  %v2462_v55 = vmul.f32 %v7741_v19, %v2461_v21  ;;  %v2596_v49 = vmul.f32 %v7671_v62, %v7846_v63  ;;  %vm2437_vm15 = vweird.f32 %v7696_v28  ;;  %v2572_v7 = vpop.permute.xlu1 %2571  ;;  %vm2408_vm2 = vmor %vm2406_vm11, %vm2407_vm7 }
 0x34e   : > { %8632 = vst [vmem:[#allocation30_spill] sm:$0xff] %v7924_v18  ;;  %v7934_v37 = vsel %vm2508_vm5, %v7803_v40, %v2505_v8  ;;  %v2434_v5 = vsub.f32 1.5, %v2433_v25  ;;  %v2599_v29 = vmul.f32 %v7671_v62, %v2560_v0  ;;  %vm2436_vm6 = vweird.f32 %v7594_v45 }
 0x34f   : > { %v7940_v23 = vmul.f32 %v2606_v13, %v7934_v37  ;;  %v2405_v38 = vmul.f32 %v7678_v50, %v2404_v56  ;;  %v2463_v11 = vmul.f32 0.5, %v2462_v55  ;;  %v2492_v40 = vmul.f32 %v7848_v52, %v2491_v15  ;;  %vm2438_vm5 = vmor %vm2436_vm6, %vm2437_vm15 }
 0x350   : > { %v2435_v21 = vmul.f32 %v7696_v28, %v2434_v5  ;;  %vm2467_vm12 = vweird.f32 %v7741_v19  ;;  %v2602_v0 = vmul.f32 %v7671_v62, %v2572_v7  ;;  %vm2466_vm11 = vweird.f32 %v7632_v3 }
 0x351   : > { %8633 = vst [vmem:[#allocation36_spill] sm:$0xff] %v7940_v23  ;;  %v2409_v63 = vsel %vm2408_vm2, %v7678_v50, %v2405_v38  ;;  %v2464_v58 = vsub.f32 1.5, %v2463_v11  ;;  %v2493_v15 = vmul.f32 0.5, %v2492_v40  ;;  %vm2468_vm7 = vmor %vm2466_vm11, %vm2467_vm12  ;;  %vm2497_vm15 = vweird.f32 %v7848_v52 }
 0x352   : > { %v7949_v14 = vmul.f32 %v2596_v49, %v2409_v63  ;;  %v7952_v13 = vsel %vm2438_vm5, %v7696_v28, %v2435_v21  ;;  %vm2496_vm2 = vweird.f32 %v7777_v22  ;;  %v7976_v5 = vperm.slane %v7345_v33, 4 }
 0x353   : > { %v7956_v4 = vmul.f32 %v2599_v29, %v7952_v13  ;;  %v2465_v45 = vmul.f32 %v7741_v19, %v2464_v58  ;;  %v2494_v25 = vsub.f32 1.5, %v2493_v15  ;;  %vm2498_vm12 = vmor %vm2496_vm2, %vm2497_vm15  ;;  %v7998_v41 = vperm.slane %v7345_v33, 5 }
 0x354   : > { %v7963_v8 = vpop.permute.xlu2 %2640 }
 0x355   : > { %v7961_v50 = vsel %vm2468_vm7, %v7741_v19, %v2465_v45  ;;  %v2584_v56 = vpop.permute.xlu1 %2583  ;;  %v2625_v55 = vpop.permute.xlu0 %2624  ;;  %v2495_v49 = vmul.f32 %v7848_v52, %v2494_v25 }
 0x356   : > { %v7967_v28 = vmul.f32 %v2602_v0, %v7961_v50  ;;  %v2605_v3 = vmul.f32 %v7671_v62, %v2584_v56  ;;  %v2688_v29 = vadd.f32 %v7976_v5, %v2625_v55  ;;  %v2510_v62 = vmul.f32 %v7866_v31, %v7866_v31 }
 0x357   : > { %v7973_v19 = vsel %vm2498_vm12, %v7848_v52, %v2495_v49  ;;  %v2513_v56 = vmul.f32 %v7902_v36, %v7902_v36 }
 0x358   : > { %v7979_v7 = vmul.f32 %v2605_v3, %v7973_v19  ;;  %v2785_v40 = vmul.f32 %v2688_v29, %v2688_v29 }
 0x35a   : > { %v2801_v52 = vmul.f32 %v2785_v40, %v2510_v62 }
 0x35c   : > { %v7981_v38 = vpop.permute.xlu2 %2652  ;;  %v2817_v45 = vmul.f32 %v2801_v52, %v2801_v52 }
 0x35d   : > { %v2629_v11 = vpop.permute.xlu1 %2628 }
 0x35e   : > { %v2645_v21 = vpop.permute.xlu0 %2644  ;;  %v2689_v49 = vadd.f32 %v7976_v5, %v2629_v11  ;;  %v2833_v29 = vmul.f32 %v2817_v45, %v2801_v52 }
 0x35f   : > { %v2693_v55 = vadd.f32 %v7976_v5, %v2645_v21 }
 0x360   : > { %v2786_v40 = vmul.f32 %v2689_v49, %v2689_v49  ;;  %v2849_v23 = vmul.f32 %v2833_v29, %v2833_v29 }
 0x361   : > { %v2790_v44 = vmul.f32 %v2693_v55, %v2693_v55 }
 0x364   : > { %v7986_v22 = vpop.permute.xlu2 %2664 }
 0x365   : > { %v2637_v58 = vpop.permute.xlu1 %2636 }
 0x366   : > { %v2691_v0 = vadd.f32 %v7976_v5, %v2637_v58  ;;  %v2657_v25 = vpop.permute.xlu0 %2656  ;;  %v2511_v58 = vmul.f32 %v7736_v17, %v7736_v17  ;;  %v2690_v17 = vadd.f32 %v7976_v5, %v7930_v42 }
 0x367   : > { %v2696_v52 = vadd.f32 %v7976_v5, %v2657_v25  ;;  %v2516_v25 = vmul.f32 %v7813_v34, %v7813_v34 }
 0x368   : > { %v2788_v15 = vmul.f32 %v2691_v0, %v2691_v0  ;;  %v2515_v0 = vmul.f32 %v2409_v63, %v2409_v63  ;;  %v2802_v30 = vmul.f32 %v2786_v40, %v2511_v58 }
 0x36a   : > { %v2804_v31 = vmul.f32 %v2788_v15, %v2513_v56  ;;  %v2806_v36 = vmul.f32 %v2790_v44, %v2515_v0  ;;  %v2865_v56 = vsub.f32 %v2849_v23, %v2833_v29  ;;  %v2818_v63 = vmul.f32 %v2802_v30, %v2802_v30 }
 0x36b   : > { %v2793_v44 = vmul.f32 %v2696_v52, %v2696_v52 }
 0x36c   : > { %v7993_v3 = vpop.permute.xlu2 %2676  ;;  %v2820_v62 = vmul.f32 %v2804_v31, %v2804_v31  ;;  %v2822_v10 = vmul.f32 %v2806_v36, %v2806_v36 }
 0x36d   : > { %v2649_v18 = vpop.permute.xlu1 %2648 }
 0x36e   : > { %v2669_v21 = vpop.permute.xlu0 %2668  ;;  %v2694_v11 = vadd.f32 %v7976_v5, %v2649_v18  ;;  %v2836_v45 = vmul.f32 %v2820_v62, %v2804_v31  ;;  %v2787_v31 = vmul.f32 %v2690_v17, %v2690_v17  ;;  %v2834_v62 = vmul.f32 %v2818_v63, %v2802_v30 }
 0x36f   : > { %v2699_v23 = vadd.f32 %v7976_v5, %v2669_v21  ;;  %v2692_v21 = vadd.f32 %v7976_v5, %v7963_v8  ;;  %v2514_v8 = vmul.f32 %v7798_v32, %v7798_v32  ;;  %v2695_v32 = vadd.f32 %v7976_v5, %v7981_v38 }
 0x370   : > { %v2791_v33 = vmul.f32 %v2694_v11, %v2694_v11  ;;  %v2852_v18 = vmul.f32 %v2836_v45, %v2836_v45  ;;  %v2838_v11 = vmul.f32 %v2822_v10, %v2806_v36  ;;  %v2517_v38 = vmul.f32 %v7832_v6, %v7832_v6 }
 0x371   : > { %v2796_v42 = vmul.f32 %v2699_v23, %v2699_v23 }
 0x372   : > { %v2807_v58 = vmul.f32 %v2791_v33, %v2516_v25  ;;  %v2868_v34 = vsub.f32 %v2852_v18, %v2836_v45  ;;  %v2850_v33 = vmul.f32 %v2834_v62, %v2834_v62  ;;  %v2789_v18 = vmul.f32 %v2692_v21, %v2692_v21 }
 0x374   : > { %v2706_v39 = vpop.permute.xlu2 %2705  ;;  %v2823_v63 = vmul.f32 %v2807_v58, %v2807_v58 }
 0x375   : > { %v2769_v15 = vmul.f32 %v7998_v41, %v2706_v39  ;;  %v2661_v55 = vpop.permute.xlu1 %2660  ;;  %v2518_v39 = vmul.f32 %v7952_v13, %v7952_v13  ;;  %v2512_v13 = vmul.f32 %v7772_v12, %v7772_v12  ;;  %v2519_v12 = vmul.f32 %v7853_v26, %v7853_v26 }
 0x376   : > { %v2697_v0 = vadd.f32 %v7976_v5, %v2661_v55  ;;  %v2521_v55 = vmul.f32 %v7961_v50, %v7961_v50 }
 0x377   : > { %v2881_v49 = vmul.f32 %v2865_v56, %v2769_v15  ;;  %v2809_v52 = vmul.f32 %v2793_v44, %v2518_v39  ;;  %v2803_v30 = vmul.f32 %v2787_v31, %v2512_v13  ;;  %v2854_v44 = vmul.f32 %v2838_v11, %v2838_v11 }
 0x378   : > { %v2794_v10 = vmul.f32 %v2697_v0, %v2697_v0  ;;  %v2812_v25 = vmul.f32 %v2796_v42, %v2521_v55  ;;  %v2839_v0 = vmul.f32 %v2823_v63, %v2807_v58  ;;  %v2866_v13 = vsub.f32 %v2850_v33, %v2834_v62 }
 0x379   : > { %v8006_v40 = vadd.f32 %v2881_v49, %v7871_v24  ;;  %v2681_v49 = vpop.permute.xlu0 %2680  ;;  %v2825_v36 = vmul.f32 %v2809_v52, %v2809_v52  ;;  %v2819_v31 = vmul.f32 %v2803_v30, %v2803_v30  ;;  %v2870_v21 = vsub.f32 %v2854_v44, %v2838_v11 }
 0x37a   : > { %v2702_v39 = vadd.f32 %v7976_v5, %v2681_v49  ;;  %v2828_v49 = vmul.f32 %v2812_v25, %v2812_v25  ;;  %v2524_v62 = vmul.f32 %v7973_v19, %v7973_v19  ;;  %v2522_v33 = vmul.f32 %v7893_v48, %v7893_v48 }
 0x37b   : > { %v2835_v63 = vmul.f32 %v2819_v31, %v2803_v30 }
 0x37c   : > { %v2718_v24 = vpop.permute.xlu2 %2717  ;;  %v2799_v55 = vmul.f32 %v2702_v39, %v2702_v39  ;;  %v2844_v30 = vmul.f32 %v2828_v49, %v2812_v25 }
 0x37d   : > { %v2772_v15 = vmul.f32 %v7998_v41, %v2718_v24  ;;  %v2673_v56 = vpop.permute.xlu1 %2672  ;;  %v2810_v24 = vmul.f32 %v2794_v10, %v2519_v12  ;;  %v2851_v25 = vmul.f32 %v2835_v63, %v2835_v63 }
 0x37f   : > { %v2884_v17 = vmul.f32 %v2868_v34, %v2772_v15  ;;  %v2841_v34 = vmul.f32 %v2825_v36, %v2809_v52  ;;  %v2826_v10 = vmul.f32 %v2810_v24, %v2810_v24  ;;  %v2867_v29 = vsub.f32 %v2851_v25, %v2835_v63 }
 0x381   : > { %v8025_v45 = vadd.f32 %v2884_v17, %v7906_v1  ;;  %v2700_v1 = vadd.f32 %v7976_v5, %v2673_v56  ;;  %v2805_v17 = vmul.f32 %v2789_v18, %v2514_v8  ;;  %v2855_v56 = vmul.f32 %v2839_v0, %v2839_v0 }
 0x382   : > { %v2857_v36 = vmul.f32 %v2841_v34, %v2841_v34  ;;  %v2792_v18 = vmul.f32 %v2695_v32, %v2695_v32  ;;  %v2815_v8 = vmul.f32 %v2799_v55, %v2524_v62 }
 0x383   : > { %v2797_v12 = vmul.f32 %v2700_v1, %v2700_v1  ;;  %v2821_v44 = vmul.f32 %v2805_v17, %v2805_v17 }
 0x384   : > { %v2726_v15 = vpop.permute.xlu2 %2725  ;;  %v2831_v32 = vmul.f32 %v2815_v8, %v2815_v8 }
 0x385   : > { %v2774_v26 = vmul.f32 %v7998_v41, %v2726_v15  ;;  %v2710_v42 = vpop.permute.xlu0 %2709  ;;  %v2873_v15 = vsub.f32 %v2857_v36, %v2841_v34  ;;  %v2860_v34 = vmul.f32 %v2844_v30, %v2844_v30 }
 0x386   : > { %v2770_v23 = vmul.f32 %v7998_v41, %v2710_v42  ;;  %v2685_v58 = vpop.permute.xlu1 %2684  ;;  %v2847_v36 = vmul.f32 %v2831_v32, %v2815_v8 }
 0x387   : > { %v2886_v51 = vmul.f32 %v2870_v21, %v2774_v26  ;;  %v2703_v31 = vadd.f32 %v7976_v5, %v2685_v58  ;;  %v2837_v21 = vmul.f32 %v2821_v44, %v2805_v17  ;;  %v2525_v17 = vmul.f32 %v7934_v37, %v7934_v37 }
 0x388   : > { %v2882_v52 = vmul.f32 %v2866_v13, %v2770_v23  ;;  %v2842_v23 = vmul.f32 %v2826_v10, %v2810_v24  ;;  %v2808_v13 = vmul.f32 %v2792_v18, %v2517_v38  ;;  %v8636_v24 = vsel %vm7370_vm10, %v8006_v40, 0.0 }
 0x389   : > { %v8043_v11 = vadd.f32 %v2886_v51, %v7949_v14  ;;  %v2871_v51 = vsub.f32 %v2855_v56, %v2839_v0  ;;  %v2813_v14 = vmul.f32 %v2797_v12, %v2522_v33  ;;  %v2800_v58 = vmul.f32 %v2703_v31, %v2703_v31 }
 0x38a   : > { %v2898_v39 = vadd.f32 %v2882_v52, %v7746_v46  ;;  %v2698_v46 = vadd.f32 %v7976_v5, %v7986_v22  ;;  %v2858_v55 = vmul.f32 %v2842_v23, %v2842_v23  ;;  %v2520_v40 = vmul.f32 %v7879_v35, %v7879_v35 }
 0x38b   : > { %v2918_v19 = vsel %vm7464_vm1, %v8043_v11, 0.0  ;;  %v2829_v49 = vmul.f32 %v2813_v14, %v2813_v14  ;;  %v2824_v62 = vmul.f32 %v2808_v13, %v2808_v13  ;;  %v2853_v8 = vmul.f32 %v2837_v21, %v2837_v21  ;;  %v8645_v11 = vld [vmem:[#allocation31_spill] sm:$0xff] }
 0x38c   : > { %v2738_v1 = vpop.permute.xlu2 %2737  ;;  %v2914_v6 = vsel %vm7478_vm0, %v2898_v39, 0.0  ;;  %v2795_v52 = vmul.f32 %v2698_v46, %v2698_v46  ;;  %v2874_v18 = vsub.f32 %v2858_v55, %v2842_v23  ;;  %v2816_v39 = vmul.f32 %v2800_v58, %v2525_v17 }
 0x38d   : > { %v2777_v48 = vmul.f32 %v7998_v41, %v2738_v1  ;;  %v2929_v0 = vadd.f32 %v2914_v6, %v8636_v24  ;;  %v2730_v26 = vpop.permute.xlu0 %2729  ;;  %v2845_v44 = vmul.f32 %v2829_v49, %v2813_v14  ;;  %v2840_v1 = vmul.f32 %v2824_v62, %v2808_v13 }
 0x38e   : > { %v2775_v42 = vmul.f32 %v7998_v41, %v2730_v26  ;;  %v2863_v46 = vmul.f32 %v2847_v36, %v2847_v36  ;;  %v2869_v32 = vsub.f32 %v2853_v8, %v2837_v21  ;;  %vm8638_vm10 = vnez %v8599_v57  ;;  %v8640_v57 = vld [vmem:[#allocation40_spill] sm:$0xff] }
 0x38f   : > { %v2889_v53 = vmul.f32 %v2873_v15, %v2777_v48  ;;  %v2714_v10 = vpop.permute.xlu1 %2713  ;;  %v2701_v48 = vadd.f32 %v7976_v5, %v7993_v3  ;;  %v2832_v15 = vmul.f32 %v2816_v39, %v2816_v39  ;;  %v2861_v43 = vmul.f32 %v2845_v44, %v2845_v44 }
 0x390   : > { %v2887_v56 = vmul.f32 %v2871_v51, %v2775_v42  ;;  %v2771_v22 = vmul.f32 %v7998_v41, %v2714_v10  ;;  %v2876_v51 = vsub.f32 %v2860_v34, %v2844_v30  ;;  %v8637_v5 = vsel %vm7441_vm8, %v8025_v45, 0.0 }
 0x391   : > { %v8065_v12 = vadd.f32 %v2889_v53, %v7956_v4  ;;  %v2798_v49 = vmul.f32 %v2701_v48, %v2701_v48  ;;  %v2877_v55 = vsub.f32 %v2861_v43, %v2845_v44  ;;  %v2879_v58 = vsub.f32 %v2863_v46, %v2847_v36  ;;  %v8639_v44 = vld [vmem:[#allocation41_spill] sm:$0xff]  ;;  %v8647_v46 = vld [vmem:[#allocation36_spill] sm:$0xff] }
 0x392   : > { %v2903_v38 = vadd.f32 %v2887_v56, %v7821_v47  ;;  %v2883_v4 = vmul.f32 %v2867_v29, %v2771_v22  ;;  %v2811_v47 = vmul.f32 %v2795_v52, %v2520_v40  ;;  %v2856_v34 = vmul.f32 %v2840_v1, %v2840_v1 }
 0x393   : > { %v2921_v33 = vsel %vm7521_vm9, %v8065_v12, 0.0  ;;  %v2848_v50 = vmul.f32 %v2832_v15, %v2816_v39  ;;  %vm8641_vm8 = vnez %v8640_v57  ;;  %vm8646_vm1 = vnez %v8645_v11 }
 0x394   : > { %v2750_v63 = vpop.permute.xlu2 %2749  ;;  %v2919_v35 = vsel %vm7538_vm13, %v2903_v38, 0.0  ;;  %v2899_v31 = vadd.f32 %v2883_v4, %v7782_v2  ;;  %v2827_v42 = vmul.f32 %v2811_v47, %v2811_v47  ;;  %v2872_v52 = vsub.f32 %v2856_v34, %v2840_v1  ;;  %v8653_v34 = vld [vmem:[#allocation30_spill] sm:$0xff] }
 0x395   : > { %v2780_v37 = vmul.f32 %v7998_v41, %v2750_v63  ;;  %v2742_v6 = vpop.permute.xlu0 %2741  ;;  %v2864_v38 = vmul.f32 %v2848_v50, %v2848_v50 }
 0x396   : > { %v2778_v14 = vmul.f32 %v7998_v41, %v2742_v6  ;;  %v2915_v30 = vsel %vm7569_vm3, %v2899_v31, 0.0  ;;  %v2843_v40 = vmul.f32 %v2827_v42, %v2811_v47  ;;  %v8642_v31 = vld [vmem:[#allocation38_spill] sm:$0xff] }
 0x397   : > { %v2892_v23 = vmul.f32 %v2876_v51, %v2780_v37  ;;  %v2930_v25 = vadd.f32 %v2929_v0, %v2915_v30  ;;  %v2722_v24 = vpop.permute.xlu1 %2721  ;;  %vm8643_vm0 = vnez %v8642_v31  ;;  %v2880_v1 = vsub.f32 %v2864_v38, %v2848_v50  ;;  %v8654_v50 = vld [vmem:[#allocation35_spill] sm:$0xff] }
 0x398   : > { %v2890_v26 = vmul.f32 %v2874_v18, %v2778_v14  ;;  %v2773_v13 = vmul.f32 %v7998_v41, %v2722_v24  ;;  %v2859_v6 = vmul.f32 %v2843_v40, %v2843_v40  ;;  %vm8655_vm9 = vnez %v8654_v50 }
 0x399   : > { %v8086_v2 = vadd.f32 %v2892_v23, %v7967_v28  ;;  %v2931_v3 = vadd.f32 %v2930_v25, %v8637_v5  ;;  %v8650_v5 = vld [vmem:[#allocation33_spill] sm:$0xff] }
 0x39a   : > { %v2906_v59 = vadd.f32 %v2890_v26, %v7860_v61  ;;  %v2885_v53 = vmul.f32 %v2869_v32, %v2773_v13  ;;  %v2523_v61 = vmul.f32 %v7920_v16, %v7920_v16  ;;  %v8648_v13 = vld [vmem:[#allocation42_spill] sm:$0xff] }
 0x39b   : > { %v2924_v0 = vsel %vm7550_vm4, %v8086_v2, 0.0  ;;  %vm8649_vm13 = vnez %v8648_v13 }
 0x39c   : > { %v2762_v28 = vpop.permute.xlu2 %2761  ;;  %v2922_v21 = vsel %vm7585_vm14, %v2906_v59, 0.0  ;;  %v2901_v10 = vadd.f32 %v2885_v53, %v7806_v54  ;;  %v2814_v17 = vmul.f32 %v2798_v49, %v2523_v61  ;;  %v8651_v59 = vld [vmem:[#allocation32_spill] sm:$0xff] }
 0x39d   : > { %v2783_v45 = vmul.f32 %v7998_v41, %v2762_v28  ;;  %v2754_v56 = vpop.permute.xlu0 %2753  ;;  %vm8652_vm4 = vnez %v8651_v59 }
 0x39e   : > { %v2781_v60 = vmul.f32 %v7998_v41, %v2754_v56  ;;  %v2917_v29 = vsel %vm8638_vm10, %v2901_v10, 0.0  ;;  %v2830_v51 = vmul.f32 %v2814_v17, %v2814_v17 }
 0x39f   : > { %v2895_v22 = vmul.f32 %v2879_v58, %v2783_v45  ;;  %v2932_v62 = vadd.f32 %v2931_v3, %v2917_v29  ;;  %v2734_v9 = vpop.permute.xlu1 %2733 }
 0x3a0   : > { %v2893_v36 = vmul.f32 %v2877_v55, %v2781_v60  ;;  %v2776_v54 = vmul.f32 %v7998_v41, %v2734_v9  ;;  %v2846_v30 = vmul.f32 %v2830_v51, %v2814_v17 }
 0x3a1   : > { %v2911_v4 = vadd.f32 %v2895_v22, %v7979_v7  ;;  %v2933_v16 = vadd.f32 %v2932_v62, %v2918_v19  ;;  %v8644_v7 = vld [vmem:[#allocation39_spill] sm:$0xff] }
 0x3a2   : > { %v2909_v18 = vadd.f32 %v2893_v36, %v8639_v44  ;;  %v2888_v63 = vmul.f32 %v2872_v52, %v2776_v54  ;;  %v2862_v42 = vmul.f32 %v2846_v30, %v2846_v30  ;;  %v1660_v62 = vld [vmem:[%s4334_s10] sm:$0x1] }
 0x3a3   : > { %v2927_v39 = vsel %vm8641_vm8, %v2911_v4, 0.0  ;;  %v2934_v37 = vadd.f32 %v2933_v16, %v2919_v35  ;;  %v2875_v35 = vsub.f32 %v2859_v6, %v2843_v40 }
 0x3a4   : > { %v2925_v8 = vsel %vm8643_vm0, %v2909_v18, 0.0  ;;  %v2904_v47 = vadd.f32 %v2888_v63, %v8644_v7  ;;  %v2878_v12 = vsub.f32 %v2862_v42, %v2846_v30 }
 0x3a5   : > { %v2766_v48 = vpop.permute.xlu0 %2765 }
 0x3a6   : > { %v2784_v27 = vmul.f32 %v7998_v41, %v2766_v48  ;;  %v2920_v19 = vsel %vm8646_vm1, %v2904_v47, 0.0 }
 0x3a7   : > { %v2935_v14 = vadd.f32 %v2934_v37, %v2920_v19 }
 0x3a8   : > { %v2896_v15 = vmul.f32 %v2880_v1, %v2784_v27 }
 0x3a9   : > { %v2746_v23 = vpop.permute.xlu1 %2745  ;;  %v2936_v25 = vadd.f32 %v2935_v14, %v2921_v33 }
 0x3aa   : > { %v2779_v43 = vmul.f32 %v7998_v41, %v2746_v23  ;;  %v2912_v24 = vadd.f32 %v2896_v15, %v8647_v46 }
 0x3ab   : > { %v2937_v2 = vadd.f32 %v2936_v25, %v2922_v21 }
 0x3ac   : > { %v2891_v26 = vmul.f32 %v2875_v35, %v2779_v43  ;;  %v2928_v32 = vsel %vm8649_vm13, %v2912_v24, 0.0 }
 0x3ae   : > { %v2907_v3 = vadd.f32 %v2891_v26, %v8650_v5 }
 0x3b0   : > { %v2923_v53 = vsel %vm8652_vm4, %v2907_v3, 0.0 }
 0x3b1   : > { %v2938_v49 = vadd.f32 %v2937_v2, %v2923_v53  ;;  %v2758_v55 = vpop.permute.xlu1 %2757 }
 0x3b2   : > { %v2782_v20 = vmul.f32 %v7998_v41, %v2758_v55 }
 0x3b3   : > { %v2939_v33 = vadd.f32 %v2938_v49, %v2924_v0 }
 0x3b4   : > { %v2894_v28 = vmul.f32 %v2878_v12, %v2782_v20 }
 0x3b5   : > { %v2940_v58 = vadd.f32 %v2939_v33, %v2925_v8 }
 0x3b6   : > { %v2910_v21 = vadd.f32 %v2894_v28, %v8653_v34 }
 0x3b8   : > { %v2926_v45 = vsel %vm8655_vm9, %v2910_v21, 0.0 }
 0x3b9   : > { %v2941_v10 = vadd.f32 %v2940_v58, %v2926_v45 }
 0x3bb   : > { %v2942_v61 = vadd.f32 %v2941_v10, %v2927_v39 }
 0x3bd   : > { %v2943_v56 = vadd.f32 %v2942_v61, %v2928_v32 }
 0x3bf   : > { %v2944_v60 = vrot.slane %v2943_v56, 4 }
 0x3c1   : > { %v2945_v22 = vadd.f32 %v2944_v60, %v2943_v56 }
 0x3c3   : > { %v2946_v29 = vrot.slane %v2945_v22, 2 }
 0x3c5   : > { %v2947_v40 = vadd.f32 %v2946_v29, %v2945_v22 }
 0x3c7   : > { %v2948_v17 = vrot.slane %v2947_v40, 1 }
 0x3c9   : > { %v2949_v41 = vadd.f32 %v2948_v17, %v2947_v40 }
 0x3cb   : > { %v2950_v9 = vadd.f32 %v2949_v41, %v1660_v62 }
 0x3cd   : > { %2951 = vst [vmem:[%s4334_s10] sm:$0x1] %v2950_v9 }
 0x3ce PF: > { %s2961_s6 = scalar_lea.hbm %s8186_s3, %s4197_s16  ;;  %s2963_s8 = sshll.u32 %s4334_s10, 4  ;;  %s2964_s8 = int_to_ptr.vmem [resolvable:$true] %s2963_s8 }
 0x3cf   : > { %s2965_s11 = sshll.u32 %s2961_s6, 4  ;;  %s8656_s21 = sand.u32 1, %s4185_s13   ;;  %s2966_s11 = int_to_ptr.hbm [resolvable:$true] %s2965_s11 }
 0x3d0   : > { %s2953_s27 = scalar_lea.sflag [#allocation3], %s8656_s21  ;;  %s4125_s28 = sshra.s32 %s2966_s11, 4  ;;  %s4126_s28 = int_to_ptr.hbm [resolvable:$true] %s4125_s28 }
 0x3d1   : > { %s4127_s15 = scalar_lea.hbm %s4126_s28, 1  ;;  %s4131_s5 = scalar_lea.hbm %s8186_s3, 3 }
 0x3d2   : > { %p4128_p8 = scmp.ne.s32.totalorder %s4126_s28, %s4127_s15  ;;  %p4132_p12 = scmp.lt.s32.totalorder %s4126_s28, %s8186_s3 }
 0x3d3   : > { %p4133_p13 = scmp.lt.s32.totalorder %s4131_s5, %s4127_s15 }
 0x3d4   : > { %p4129_p10 = pnand %p4128_p8, %p4296_p3 }
 0x3d5   : > { %p4134_p0 = por %p4133_p13, %p4132_p12 }
 0x3d6   : > { %p4130_p11 = pneg %p4129_p10 }
 0x3d8   : > { %p4135_p1 = pnand %p4134_p0, %p4130_p11 }
 0x3da   : > { %4138 = shalt.err (!%p4135_p1)
}
 0x3db   : > { %3860 = dma.vmem_to_hbm [thread:$0]  (%p4296_p3), %s2964_s8, 16, %s2966_s11, %s2953_s27  }
 0x3dc PF: > { %p3872_p2 = scmp.ge.s32.totalorder %s4209_s19, 2  ;;  %s2977_s16 = sand.u32 1, %s4181_s12  }
 0x3dd   : > { %s2978_s10 = scalar_lea.sflag [#allocation3], %s2977_s16 }
 0x3de   : > { %p3867_p4 = pnand %p3872_p2, %p4306_p9 }
 0x3e0   : > { %p3868_p5 = pneg %p3867_p4 }
 0x3e2   : > { %4176 = dma.done.wait (%p3868_p5), %s2978_s10, 16  }
 0x3e3   : > { %4178 = vsyncadd (%p3868_p5), %s2978_s10, 4294967280  ;;  %s17_s19 = sadd.s32 1, %s4209_s19   ;;  %s8657_s12 = smov %s4185_s13 }
 0x3e4   : > { %p14_p6 = scmp.ge.s32.totalorder %s17_s19, 8   ;;  %s8658_s13 = smov %s4189_s14 }
 0x3e5   : > { %s8659_s14 = smov %s4316_s4  ;;  %s8660_s15 = smov %s4201_s17 }
 0x3e6   : > { %s8661_s16 = smov %s4205_s18  ;;  %s8662_s17 = smov %s8665_s22 }
 0x3e7   : > { %s8663_s18 = smov %s8669_s23  ;;  %16 = sbr.rel (!%p14_p6) target bundleno = 6 (0x6), region = 83 }
 0x3ec   :  { %2983 = vsyncpa [#allocation3], 1 }
 0x3ed   :  { %2985 = vsyncpa [#allocation3 + $0x1], 1 }
 0x3ee   :  { %2986 = vsyncpa [#allocation4], 1 }
 0x3ef   :  { %2988 = vsyncpa [#allocation4 + $0x1], 1 }

</bundles_post_ra>
